<compile_context>
chip_gen: v6e
topology: v6e:2x2x1
jax: 0.10.0
libtpu: 0.0.40
codegen_flags: <defaults>
</compile_context>

<pallas_src>
import functools

import jax
import jax.numpy as jnp
from jax.experimental import pallas as pl
from jax.experimental.pallas import tpu as pltpu

X_DIM = 784
Z_DIM = 4
H_DIM = 512
# TODO(synk): pixyz's RelaxedBernoulli temperature default is a hyperparameter;
# using 1.0 here (the /temperature is elided since it is exactly 1.0).
TEMPERATURE = 1.0

WEIGHT_DTYPE = jnp.bfloat16  # weights are the mem-bound payload; halve the bytes


def _softplus(x):
    # matches torch.nn.functional.softplus (beta=1, threshold=20)
    return jnp.where(x > 20.0, x, jnp.log1p(jnp.exp(jnp.minimum(x, 20.0))))


def vae_kernel(
    x_ref, eps_ref, noise_ref,
    qw1, qb1, qw2, qb2, qw3, qb3,          # qw3/qb3 are fused [loc | scale] heads
    pw1, pb1, pw2, pb2, pw3, pb3,
    z_ref, xr_ref,
):
    bf16 = jnp.bfloat16
    x = x_ref[...].astype(bf16)

    # ---- Inference network q(z | x) ----
    h = jnp.maximum(
        jnp.dot(x, qw1[...], preferred_element_type=jnp.float32) + qb1[...], 0.0)
    h = jnp.maximum(
        jnp.dot(h.astype(bf16), qw2[...], preferred_element_type=jnp.float32)
        + qb2[...], 0.0)
    # Single fused matmul for the (loc, scale) heads: (B, 2*Z_DIM).
    ls = jnp.dot(h.astype(bf16), qw3[...], preferred_element_type=jnp.float32) + qb3[...]
    loc = ls[:, :Z_DIM]
    scale = _softplus(ls[:, Z_DIM:])

    # Reparameterized Normal sample: z = loc + scale * eps
    z = loc + scale * eps_ref[...]
    z_ref[...] = z

    # ---- Generator network p(x | z) ----
    g = jnp.maximum(
        jnp.dot(z.astype(bf16), pw1[...], preferred_element_type=jnp.float32)
        + pb1[...], 0.0)
    g = jnp.maximum(
        jnp.dot(g.astype(bf16), pw2[...], preferred_element_type=jnp.float32)
        + pb2[...], 0.0)
    logits = jnp.dot(g.astype(bf16), pw3[...], preferred_element_type=jnp.float32) + pb3[...]

    # RelaxedBernoulli reparameterized sample (Concrete / Gumbel-sigmoid):
    #   x_recon = sigmoid((logits + logistic_noise) / T), with T == 1.0 elided.
    xr_ref[...] = jax.nn.sigmoid(logits + noise_ref[...])


def init_linear(key, fan_in, fan_out):
    # Deterministic PyTorch-style Linear init: U(-1/sqrt(fan_in), 1/sqrt(fan_in)).
    kw, kb = jax.random.split(key)
    bound = 1.0 / (fan_in ** 0.5)
    w = jax.random.uniform(kw, (fan_in, fan_out), jnp.float32, -bound, bound)
    b = jax.random.uniform(kb, (1, fan_out), jnp.float32, -bound, bound)
    return w, b


def init_params(key):
    keys = jax.random.split(key, 7)
    # Inference q(z|x)
    qw1, qb1 = init_linear(keys[0], X_DIM, H_DIM)
    qw2, qb2 = init_linear(keys[1], H_DIM, H_DIM)
    qw31, qb31 = init_linear(keys[2], H_DIM, Z_DIM)
    qw32, qb32 = init_linear(keys[3], H_DIM, Z_DIM)
    # Fuse the loc/scale heads into one (H_DIM, 2*Z_DIM) matmul.
    qw3 = jnp.concatenate([qw31, qw32], axis=1)
    qb3 = jnp.concatenate([qb31, qb32], axis=1)
    # Generator p(x|z)
    pw1, pb1 = init_linear(keys[4], Z_DIM, H_DIM)
    pw2, pb2 = init_linear(keys[5], H_DIM, H_DIM)
    pw3, pb3 = init_linear(keys[6], H_DIM, X_DIM)

    def cast_w(w):
        return w.astype(WEIGHT_DTYPE)

    # Weights in bf16 (mem-bound payload); biases stay f32.
    return (cast_w(qw1), qb1, cast_w(qw2), qb2, cast_w(qw3), qb3,
            cast_w(pw1), pb1, cast_w(pw2), pb2, cast_w(pw3), pb3)


@functools.partial(jax.jit, static_argnames=())
def vae_forward(x, params, key):
    """Returns (z, z_hat, x_recon) like VAE.forward."""
    B = x.shape[0]
    k_eps, k_prior, k_noise = jax.random.split(key, 3)

    # Reparameterization noise for q(z|x)
    eps = jax.random.normal(k_eps, (B, Z_DIM), jnp.float32)
    # Prior sample: sample_shape = z.shape, features_shape = [1], then squeeze.
    z_hat = jax.random.normal(k_prior, (B, Z_DIM, 1), jnp.float32).squeeze()
    # Logistic noise for the RelaxedBernoulli sample (log(u) - log1p(-u)),
    # drawn directly instead of uniform + two in-kernel transcendental passes.
    logistic_noise = jax.random.logistic(k_noise, (B, X_DIM), jnp.float32)

    # Batch tiling: single block for small B; tile by 128 (and shard across
    # TensorCores via "parallel") once the batch grows.
    TB = B if B <= 128 else 128
    assert B % TB == 0 and TB % 8 == 0, "batch must be a multiple of 8 (and 128 if > 128)"
    grid = (B // TB,)

    row_spec = lambda ncols: pl.BlockSpec((TB, ncols), lambda i: (i, 0))
    # Weights/biases: constant index_map -> resident in VMEM across grid steps.
    const_spec = lambda shape: pl.BlockSpec(shape, lambda i: (0, 0))

    weight_specs = []
    for p in params:
        weight_specs.append(const_spec(p.shape))

    args = (x, eps, logistic_noise) + tuple(params)

    # Advisory cost estimate so XLA overlaps the RNG draws with the weight DMA.
    flops = 2 * B * (X_DIM * H_DIM + H_DIM * H_DIM + H_DIM * 2 * Z_DIM
                     + Z_DIM * H_DIM + H_DIM * H_DIM + H_DIM * X_DIM)
    transcendentals = B * (2 * Z_DIM + X_DIM)
    bytes_accessed = (sum(int(p.size) * p.dtype.itemsize for p in params)
                      + 4 * B * (2 * X_DIM + 2 * Z_DIM)     # x, noise, eps, z in/out
                      + 4 * B * X_DIM)                       # x_recon out

    z, x_recon = pl.pallas_call(
        vae_kernel,
        out_shape=(
            jax.ShapeDtypeStruct((B, Z_DIM), jnp.float32),
            jax.ShapeDtypeStruct((B, X_DIM), jnp.float32),
        ),
        grid=grid,
        in_specs=[row_spec(X_DIM), row_spec(Z_DIM), row_spec(X_DIM)] + weight_specs,
        out_specs=(row_spec(Z_DIM), row_spec(X_DIM)),
        compiler_params=pltpu.CompilerParams(
            dimension_semantics=("parallel",),
            # Working set is ~3 MB (bf16 weights) + activations; 32 MiB fits
            # every generation including v7x's 64 MiB physical VMEM.
            vmem_limit_bytes=32 * 1024 * 1024,
        ),
        cost_estimate=pl.CostEstimate(
            flops=flops,
            transcendentals=transcendentals,
            bytes_accessed=bytes_accessed,
        ),
    )(*args)

    return z, z_hat, x_recon


if __name__ == "__main__":
    key = jax.random.PRNGKey(0)
    k_param, k_data, k_noise = jax.random.split(key, 3)

    B = 8
    # MNIST-like input in [0, 1], flattened to (B, 784).
    x = jax.random.uniform(k_data, (B, X_DIM), jnp.float32)
    params = init_params(k_param)

    z, z_hat, x_recon = vae_forward(x, params, k_noise)
    jax.block_until_ready((z, z_hat, x_recon))

    assert z.shape == (B, Z_DIM)
    assert z_hat.shape == (B, Z_DIM)
    assert x_recon.shape == (B, X_DIM)
    assert bool(jnp.all(jnp.isfinite(z)))
    assert bool(jnp.all(jnp.isfinite(x_recon)))
    assert bool(jnp.all((x_recon >= 0.0) & (x_recon <= 1.0)))

    print("KERNEL_OK")
</pallas_src>

<mosaic_0001>
module attributes {stable_mosaic.version = 11 : i64} {
  func.func @vae_kernel(%arg0: i32, %arg1: memref<8x784xf32, #tpu.memory_space<vmem>>, %arg2: memref<8x4xf32, #tpu.memory_space<vmem>>, %arg3: memref<8x784xf32, #tpu.memory_space<vmem>>, %arg4: memref<784x512xbf16, #tpu.memory_space<vmem>>, %arg5: memref<1x512xf32, #tpu.memory_space<vmem>>, %arg6: memref<512x512xbf16, #tpu.memory_space<vmem>>, %arg7: memref<1x512xf32, #tpu.memory_space<vmem>>, %arg8: memref<512x8xbf16, #tpu.memory_space<vmem>>, %arg9: memref<1x8xf32, #tpu.memory_space<vmem>>, %arg10: memref<4x512xbf16, #tpu.memory_space<vmem>>, %arg11: memref<1x512xf32, #tpu.memory_space<vmem>>, %arg12: memref<512x512xbf16, #tpu.memory_space<vmem>>, %arg13: memref<1x512xf32, #tpu.memory_space<vmem>>, %arg14: memref<512x784xbf16, #tpu.memory_space<vmem>>, %arg15: memref<1x784xf32, #tpu.memory_space<vmem>>, %arg16: memref<8x4xf32, #tpu.memory_space<vmem>>, %arg17: memref<8x784xf32, #tpu.memory_space<vmem>>) attributes {dimension_semantics = [#tpu.dimension_semantics<parallel>], iteration_bounds = array<i64: 1>, scalar_prefetch = 0 : i64, scratch_operands = 0 : i64, tpu.core_type = #tpu.core_type<tc>, window_params = [{transform_indices = @transform_0, window_bounds = array<i64: 8, 784>}, {transform_indices = @transform_1, window_bounds = array<i64: 8, 4>}, {transform_indices = @transform_2, window_bounds = array<i64: 8, 784>}, {pipeline_mode = #tpu.pipeline_mode<synchronous>, transform_indices = @transform_3, window_bounds = array<i64: 784, 512>}, {pipeline_mode = #tpu.pipeline_mode<synchronous>, transform_indices = @transform_4, window_bounds = array<i64: 1, 512>}, {pipeline_mode = #tpu.pipeline_mode<synchronous>, transform_indices = @transform_5, window_bounds = array<i64: 512, 512>}, {pipeline_mode = #tpu.pipeline_mode<synchronous>, transform_indices = @transform_6, window_bounds = array<i64: 1, 512>}, {pipeline_mode = #tpu.pipeline_mode<synchronous>, transform_indices = @transform_7, window_bounds = array<i64: 512, 8>}, {pipeline_mode = #tpu.pipeline_mode<synchronous>, transform_indices = @transform_8, window_bounds = array<i64: 1, 8>}, {pipeline_mode = #tpu.pipeline_mode<synchronous>, transform_indices = @transform_9, window_bounds = array<i64: 4, 512>}, {pipeline_mode = #tpu.pipeline_mode<synchronous>, transform_indices = @transform_10, window_bounds = array<i64: 1, 512>}, {pipeline_mode = #tpu.pipeline_mode<synchronous>, transform_indices = @transform_11, window_bounds = array<i64: 512, 512>}, {pipeline_mode = #tpu.pipeline_mode<synchronous>, transform_indices = @transform_12, window_bounds = array<i64: 1, 512>}, {pipeline_mode = #tpu.pipeline_mode<synchronous>, transform_indices = @transform_13, window_bounds = array<i64: 512, 784>}, {pipeline_mode = #tpu.pipeline_mode<synchronous>, transform_indices = @transform_14, window_bounds = array<i64: 1, 784>}, {transform_indices = @transform_15, window_bounds = array<i64: 8, 4>}, {transform_indices = @transform_16, window_bounds = array<i64: 8, 784>}]} {
    %c0 = arith.constant 0 : index
    %c0_0 = arith.constant 0 : index
    %0 = vector.load %arg1[%c0, %c0_0] : memref<8x784xf32, #tpu.memory_space<vmem>>, vector<8x784xf32>
    %1 = arith.truncf %0 : vector<8x784xf32> to vector<8x784xbf16>
    %c0_1 = arith.constant 0 : index
    %c0_2 = arith.constant 0 : index
    %2 = vector.load %arg4[%c0_1, %c0_2] : memref<784x512xbf16, #tpu.memory_space<vmem>>, vector<784x512xbf16>
    %cst = arith.constant dense<0.000000e+00> : vector<8x512xf32>
    %3 = tpu.matmul %1, %2, %cst {dimension_numbers = #tpu.dot_dimension_numbers<[1], [0], [0], [1], [0, 0, 1, 1], [], []>} : vector<8x784xbf16>, vector<784x512xbf16>, vector<8x512xf32> -> vector<8x512xf32>
    %c0_3 = arith.constant 0 : index
    %c0_4 = arith.constant 0 : index
    %4 = vector.load %arg5[%c0_3, %c0_4] : memref<1x512xf32, #tpu.memory_space<vmem>>, vector<1x512xf32>
    %5 = vector.broadcast %4 : vector<1x512xf32> to vector<8x512xf32>
    %6 = arith.addf %3, %5 : vector<8x512xf32>
    %cst_5 = arith.constant 0.000000e+00 : f32
    %7 = vector.broadcast %cst_5 : f32 to vector<8x512xf32>
    %8 = arith.maximumf %6, %7 : vector<8x512xf32>
    %9 = arith.truncf %8 : vector<8x512xf32> to vector<8x512xbf16>
    %c0_6 = arith.constant 0 : index
    %c0_7 = arith.constant 0 : index
    %10 = vector.load %arg6[%c0_6, %c0_7] : memref<512x512xbf16, #tpu.memory_space<vmem>>, vector<512x512xbf16>
    %cst_8 = arith.constant dense<0.000000e+00> : vector<8x512xf32>
    %11 = tpu.matmul %9, %10, %cst_8 {dimension_numbers = #tpu.dot_dimension_numbers<[1], [0], [0], [1], [0, 0, 1, 1], [], []>} : vector<8x512xbf16>, vector<512x512xbf16>, vector<8x512xf32> -> vector<8x512xf32>
    %c0_9 = arith.constant 0 : index
    %c0_10 = arith.constant 0 : index
    %12 = vector.load %arg7[%c0_9, %c0_10] : memref<1x512xf32, #tpu.memory_space<vmem>>, vector<1x512xf32>
    %13 = vector.broadcast %12 : vector<1x512xf32> to vector<8x512xf32>
    %14 = arith.addf %11, %13 : vector<8x512xf32>
    %cst_11 = arith.constant 0.000000e+00 : f32
    %15 = vector.broadcast %cst_11 : f32 to vector<8x512xf32>
    %16 = arith.maximumf %14, %15 : vector<8x512xf32>
    %17 = arith.truncf %16 : vector<8x512xf32> to vector<8x512xbf16>
    %c0_12 = arith.constant 0 : index
    %c0_13 = arith.constant 0 : index
    %18 = vector.load %arg8[%c0_12, %c0_13] : memref<512x8xbf16, #tpu.memory_space<vmem>>, vector<512x8xbf16>
    %cst_14 = arith.constant dense<0.000000e+00> : vector<8x8xf32>
    %19 = tpu.matmul %17, %18, %cst_14 {dimension_numbers = #tpu.dot_dimension_numbers<[1], [0], [0], [1], [0, 0, 1, 1], [], []>} : vector<8x512xbf16>, vector<512x8xbf16>, vector<8x8xf32> -> vector<8x8xf32>
    %c0_15 = arith.constant 0 : index
    %c0_16 = arith.constant 0 : index
    %20 = vector.load %arg9[%c0_15, %c0_16] : memref<1x8xf32, #tpu.memory_space<vmem>>, vector<1x8xf32>
    %21 = vector.broadcast %20 : vector<1x8xf32> to vector<8x8xf32>
    %22 = arith.addf %19, %21 : vector<8x8xf32>
    %23 = vector.extract_strided_slice %22 {offsets = [0, 0], sizes = [8, 4], strides = [1, 1]} : vector<8x8xf32> to vector<8x4xf32>
    %24 = vector.extract_strided_slice %22 {offsets = [0, 4], sizes = [8, 4], strides = [1, 1]} : vector<8x8xf32> to vector<8x4xf32>
    %cst_17 = arith.constant 2.000000e+01 : f32
    %25 = vector.broadcast %cst_17 : f32 to vector<8x4xf32>
    %26 = arith.cmpf ogt, %24, %25 : vector<8x4xf32>
    %cst_18 = arith.constant 2.000000e+01 : f32
    %27 = vector.broadcast %cst_18 : f32 to vector<8x4xf32>
    %28 = arith.minimumf %24, %27 : vector<8x4xf32>
    %29 = math.exp %28 : vector<8x4xf32>
    %30 = math.log1p %29 : vector<8x4xf32>
    %31 = arith.select %26, %24, %30 : vector<8x4xi1>, vector<8x4xf32>
    %c0_19 = arith.constant 0 : index
    %c0_20 = arith.constant 0 : index
    %32 = vector.load %arg2[%c0_19, %c0_20] : memref<8x4xf32, #tpu.memory_space<vmem>>, vector<8x4xf32>
    %33 = arith.mulf %31, %32 : vector<8x4xf32>
    %34 = arith.addf %23, %33 : vector<8x4xf32>
    %c0_21 = arith.constant 0 : index
    %c0_22 = arith.constant 0 : index
    %35 = vector.load %arg16[%c0_21, %c0_22] : memref<8x4xf32, #tpu.memory_space<vmem>>, vector<8x4xf32>
    tpu.vector_store %arg16[%c0_21, %c0_22], %34 {strides = array<i32>} : memref<8x4xf32, #tpu.memory_space<vmem>>, vector<8x4xf32>,
    %36 = arith.truncf %34 : vector<8x4xf32> to vector<8x4xbf16>
    %c0_23 = arith.constant 0 : index
    %c0_24 = arith.constant 0 : index
    %37 = vector.load %arg10[%c0_23, %c0_24] : memref<4x512xbf16, #tpu.memory_space<vmem>>, vector<4x512xbf16>
    %cst_25 = arith.constant dense<0.000000e+00> : vector<8x512xf32>
    %38 = tpu.matmul %36, %37, %cst_25 {dimension_numbers = #tpu.dot_dimension_numbers<[1], [0], [0], [1], [0, 0, 1, 1], [], []>} : vector<8x4xbf16>, vector<4x512xbf16>, vector<8x512xf32> -> vector<8x512xf32>
    %c0_26 = arith.constant 0 : index
    %c0_27 = arith.constant 0 : index
    %39 = vector.load %arg11[%c0_26, %c0_27] : memref<1x512xf32, #tpu.memory_space<vmem>>, vector<1x512xf32>
    %40 = vector.broadcast %39 : vector<1x512xf32> to vector<8x512xf32>
    %41 = arith.addf %38, %40 : vector<8x512xf32>
    %cst_28 = arith.constant 0.000000e+00 : f32
    %42 = vector.broadcast %cst_28 : f32 to vector<8x512xf32>
    %43 = arith.maximumf %41, %42 : vector<8x512xf32>
    %44 = arith.truncf %43 : vector<8x512xf32> to vector<8x512xbf16>
    %c0_29 = arith.constant 0 : index
    %c0_30 = arith.constant 0 : index
    %45 = vector.load %arg12[%c0_29, %c0_30] : memref<512x512xbf16, #tpu.memory_space<vmem>>, vector<512x512xbf16>
    %cst_31 = arith.constant dense<0.000000e+00> : vector<8x512xf32>
    %46 = tpu.matmul %44, %45, %cst_31 {dimension_numbers = #tpu.dot_dimension_numbers<[1], [0], [0], [1], [0, 0, 1, 1], [], []>} : vector<8x512xbf16>, vector<512x512xbf16>, vector<8x512xf32> -> vector<8x512xf32>
    %c0_32 = arith.constant 0 : index
    %c0_33 = arith.constant 0 : index
    %47 = vector.load %arg13[%c0_32, %c0_33] : memref<1x512xf32, #tpu.memory_space<vmem>>, vector<1x512xf32>
    %48 = vector.broadcast %47 : vector<1x512xf32> to vector<8x512xf32>
    %49 = arith.addf %46, %48 : vector<8x512xf32>
    %cst_34 = arith.constant 0.000000e+00 : f32
    %50 = vector.broadcast %cst_34 : f32 to vector<8x512xf32>
    %51 = arith.maximumf %49, %50 : vector<8x512xf32>
    %52 = arith.truncf %51 : vector<8x512xf32> to vector<8x512xbf16>
    %c0_35 = arith.constant 0 : index
    %c0_36 = arith.constant 0 : index
    %53 = vector.load %arg14[%c0_35, %c0_36] : memref<512x784xbf16, #tpu.memory_space<vmem>>, vector<512x784xbf16>
    %cst_37 = arith.constant dense<0.000000e+00> : vector<8x784xf32>
    %54 = tpu.matmul %52, %53, %cst_37 {dimension_numbers = #tpu.dot_dimension_numbers<[1], [0], [0], [1], [0, 0, 1, 1], [], []>} : vector<8x512xbf16>, vector<512x784xbf16>, vector<8x784xf32> -> vector<8x784xf32>
    %c0_38 = arith.constant 0 : index
    %c0_39 = arith.constant 0 : index
    %55 = vector.load %arg15[%c0_38, %c0_39] : memref<1x784xf32, #tpu.memory_space<vmem>>, vector<1x784xf32>
    %56 = vector.broadcast %55 : vector<1x784xf32> to vector<8x784xf32>
    %57 = arith.addf %54, %56 : vector<8x784xf32>
    %c0_40 = arith.constant 0 : index
    %c0_41 = arith.constant 0 : index
    %58 = vector.load %arg3[%c0_40, %c0_41] : memref<8x784xf32, #tpu.memory_space<vmem>>, vector<8x784xf32>
    %59 = arith.addf %57, %58 : vector<8x784xf32>
    %60 = arith.negf %59 : vector<8x784xf32>
    %61 = math.exp %60 : vector<8x784xf32>
    %cst_42 = arith.constant 1.000000e+00 : f32
    %62 = vector.broadcast %cst_42 : f32 to vector<8x784xf32>
    %63 = arith.addf %62, %61 : vector<8x784xf32>
    %64 = arith.divf %62, %63 : vector<8x784xf32>
    %c0_43 = arith.constant 0 : index
    %c0_44 = arith.constant 0 : index
    %65 = vector.load %arg17[%c0_43, %c0_44] : memref<8x784xf32, #tpu.memory_space<vmem>>, vector<8x784xf32>
    tpu.vector_store %arg17[%c0_43, %c0_44], %64 {strides = array<i32>} : memref<8x784xf32, #tpu.memory_space<vmem>>, vector<8x784xf32>,
    return
  }
  func.func @transform_0(%arg0: i32) -> (i32, i32) {
    %c0_i32 = arith.constant 0 : i32
    %c0_i32_0 = arith.constant 0 : i32
    return %arg0, %c0_i32 : i32, i32
  }
  func.func @transform_1(%arg0: i32) -> (i32, i32) {
    %c0_i32 = arith.constant 0 : i32
    %c0_i32_0 = arith.constant 0 : i32
    return %arg0, %c0_i32 : i32, i32
  }
  func.func @transform_2(%arg0: i32) -> (i32, i32) {
    %c0_i32 = arith.constant 0 : i32
    %c0_i32_0 = arith.constant 0 : i32
    return %arg0, %c0_i32 : i32, i32
  }
  func.func @transform_3(%arg0: i32) -> (i32, i32) {
    %c0_i32 = arith.constant 0 : i32
    %c0_i32_0 = arith.constant 0 : i32
    %c0_i32_1 = arith.constant 0 : i32
    return %c0_i32, %c0_i32_0 : i32, i32
  }
  func.func @transform_4(%arg0: i32) -> (i32, i32) {
    %c0_i32 = arith.constant 0 : i32
    %c0_i32_0 = arith.constant 0 : i32
    %c0_i32_1 = arith.constant 0 : i32
    return %c0_i32, %c0_i32_0 : i32, i32
  }
  func.func @transform_5(%arg0: i32) -> (i32, i32) {
    %c0_i32 = arith.constant 0 : i32
    %c0_i32_0 = arith.constant 0 : i32
    %c0_i32_1 = arith.constant 0 : i32
    return %c0_i32, %c0_i32_0 : i32, i32
  }
  func.func @transform_6(%arg0: i32) -> (i32, i32) {
    %c0_i32 = arith.constant 0 : i32
    %c0_i32_0 = arith.constant 0 : i32
    %c0_i32_1 = arith.constant 0 : i32
    return %c0_i32, %c0_i32_0 : i32, i32
  }
  func.func @transform_7(%arg0: i32) -> (i32, i32) {
    %c0_i32 = arith.constant 0 : i32
    %c0_i32_0 = arith.constant 0 : i32
    %c0_i32_1 = arith.constant 0 : i32
    return %c0_i32, %c0_i32_0 : i32, i32
  }
  func.func @transform_8(%arg0: i32) -> (i32, i32) {
    %c0_i32 = arith.constant 0 : i32
    %c0_i32_0 = arith.constant 0 : i32
    %c0_i32_1 = arith.constant 0 : i32
    return %c0_i32, %c0_i32_0 : i32, i32
  }
  func.func @transform_9(%arg0: i32) -> (i32, i32) {
    %c0_i32 = arith.constant 0 : i32
    %c0_i32_0 = arith.constant 0 : i32
    %c0_i32_1 = arith.constant 0 : i32
    return %c0_i32, %c0_i32_0 : i32, i32
  }
  func.func @transform_10(%arg0: i32) -> (i32, i32) {
    %c0_i32 = arith.constant 0 : i32
    %c0_i32_0 = arith.constant 0 : i32
    %c0_i32_1 = arith.constant 0 : i32
    return %c0_i32, %c0_i32_0 : i32, i32
  }
  func.func @transform_11(%arg0: i32) -> (i32, i32) {
    %c0_i32 = arith.constant 0 : i32
    %c0_i32_0 = arith.constant 0 : i32
    %c0_i32_1 = arith.constant 0 : i32
    return %c0_i32, %c0_i32_0 : i32, i32
  }
  func.func @transform_12(%arg0: i32) -> (i32, i32) {
    %c0_i32 = arith.constant 0 : i32
    %c0_i32_0 = arith.constant 0 : i32
    %c0_i32_1 = arith.constant 0 : i32
    return %c0_i32, %c0_i32_0 : i32, i32
  }
  func.func @transform_13(%arg0: i32) -> (i32, i32) {
    %c0_i32 = arith.constant 0 : i32
    %c0_i32_0 = arith.constant 0 : i32
    %c0_i32_1 = arith.constant 0 : i32
    return %c0_i32, %c0_i32_0 : i32, i32
  }
  func.func @transform_14(%arg0: i32) -> (i32, i32) {
    %c0_i32 = arith.constant 0 : i32
    %c0_i32_0 = arith.constant 0 : i32
    %c0_i32_1 = arith.constant 0 : i32
    return %c0_i32, %c0_i32_0 : i32, i32
  }
  func.func @transform_15(%arg0: i32) -> (i32, i32) {
    %c0_i32 = arith.constant 0 : i32
    %c0_i32_0 = arith.constant 0 : i32
    return %arg0, %c0_i32 : i32, i32
  }
  func.func @transform_16(%arg0: i32) -> (i32, i32) {
    %c0_i32 = arith.constant 0 : i32
    %c0_i32_0 = arith.constant 0 : i32
    return %arg0, %c0_i32 : i32, i32
  }
}

</mosaic_0001>

<bundles_post_ra>
// kernel: vae_forward.3
= control target key start
LH: loop header
LB: loop body
LE: loop exit
PB: predicated region body
PF: predicated region fallthrough
CT: control target
= control target key end

     0   :  { %s10226_s0 = inlined_call_operand.vmem [shape: f32[8,784], index: 0, kind: input, shape index: {}]   ;;  %s10227_s1 = inlined_call_operand.vmem [shape: f32[8,4], index: 1, kind: input, shape index: {}]   ;;  %s10228_s2 = inlined_call_operand.vmem [shape: f32[8,784], index: 2, kind: input, shape index: {}]   ;;  %s10229_s3 = inlined_call_operand.vmem [shape: bf16[784,512], index: 3, kind: input, shape index: {}]   ;;  %s10230_s4 = inlined_call_operand.vmem [shape: f32[1,512], index: 4, kind: input, shape index: {}]   ;;  %s10231_s5 = inlined_call_operand.vmem [shape: bf16[512,512], index: 5, kind: input, shape index: {}]   ;;  %s10232_s6 = inlined_call_operand.vmem [shape: f32[1,512], index: 6, kind: input, shape index: {}]   ;;  %s10233_s7 = inlined_call_operand.vmem [shape: bf16[512,8], index: 7, kind: input, shape index: {}]   ;;  %s10234_s8 = inlined_call_operand.vmem [shape: f32[1,8], index: 8, kind: input, shape index: {}]   ;;  %s10235_s9 = inlined_call_operand.vmem [shape: bf16[4,512], index: 9, kind: input, shape index: {}]   ;;  %s10236_s10 = inlined_call_operand.vmem [shape: f32[1,512], index: 10, kind: input, shape index: {}]   ;;  %s10237_s11 = inlined_call_operand.vmem [shape: bf16[512,512], index: 11, kind: input, shape index: {}]   ;;  %s10238_s12 = inlined_call_operand.vmem [shape: f32[1,512], index: 12, kind: input, shape index: {}]   ;;  %s10239_s13 = inlined_call_operand.vmem [shape: bf16[512,784], index: 13, kind: input, shape index: {}]   ;;  %s10240_s14 = inlined_call_operand.vmem [shape: f32[1,784], index: 14, kind: input, shape index: {}]   ;;  %s10241_s15 = inlined_call_operand.vmem [shape: f32[8,4], index: 15, kind: output, shape index: {0}]   ;;  %s10242_s16 = inlined_call_operand.hbm [shape: f32[8,784], index: 16, kind: output, shape index: {1}]  }
   0x1   :  { %10244 = sst [smem:[#allocation5_spill]] %s10226_s0 }
   0x2   :  { %v6715_v0 = vld [vmem:[%s10229_s3 + $0xe4] ss:$16 sps:$4 sm:$0xff]   ;;  %v6719_v2 = vld [vmem:[%s10229_s3 + $0xe0] ss:$16 sps:$4 sm:$0xff]   ;;  %s10245_s25 = sld [smem:[#allocation5_spill]]  ;;  %vm1266_vm0 = vcmask 130048  }
   0x3   :  { %v6717_v1 = vld [vmem:[%s10229_s3 + $0x2e4] ss:$16 sps:$4 sm:$0xff]   ;;  %1270 = vmatprep.subr.bf16.mxu0 %v6715_v0  ;;  %v6720_v3 = vld [vmem:[%s10229_s3 + $0x2e0] ss:$16 sps:$4 sm:$0xff]  }
   0x4   :  { %1311 = vmatprep.subr.bf16.mxu1 %v6717_v1  ;;  %v6721_v4 = vld [vmem:[%s10229_s3 + $0xc4] ss:$16 sps:$4 sm:$0xff]   ;;  %1271 = vmatpush1.bf16.msra.mxu0 %v6719_v2  ;;  %v6725_v6 = vld [vmem:[%s10229_s3 + $0xc0] ss:$16 sps:$4 sm:$0xff]  }
   0x5   :  { %1312 = vmatpush1.bf16.msra.mxu1 %v6720_v3  ;;  %v6723_v5 = vld [vmem:[%s10229_s3 + $0x2c4] ss:$16 sps:$4 sm:$0xff]   ;;  %1272 = vmatprep.subr.bf16.mxu0 %v6721_v4  ;;  %v6726_v7 = vld [vmem:[%s10229_s3 + $0x2c0] ss:$16 sps:$4 sm:$0xff]  }
   0x6   :  { %1313 = vmatprep.subr.bf16.mxu1 %v6723_v5  ;;  %v6727_v8 = vld [vmem:[%s10229_s3 + $0xa4] ss:$16 sps:$4 sm:$0xff]   ;;  %v6731_v10 = vld [vmem:[%s10229_s3 + $0xa0] ss:$16 sps:$4 sm:$0xff]  }
   0x7   :  { %v6729_v9 = vld [vmem:[%s10229_s3 + $0x2a4] ss:$16 sps:$4 sm:$0xff]   ;;  %v6732_v11 = vld [vmem:[%s10229_s3 + $0x2a0] ss:$16 sps:$4 sm:$0xff]  }
   0x8   :  { %1273 = vmatpush1.bf16.msra.mxu0 %v6725_v6  ;;  %v6733_v12 = vld [vmem:[%s10229_s3 + $0x84] ss:$16 sps:$4 sm:$0xff]   ;;  %v6737_v14 = vld [vmem:[%s10229_s3 + $0x80] ss:$16 sps:$4 sm:$0xff]   ;;  %v55_v46 = vld [vmem:[%s10245_s25 + $0x8] sm:$0xff] }
   0x9   :  { %1314 = vmatpush1.bf16.msra.mxu1 %v6726_v7  ;;  %1274 = vmatprep.subr.bf16.mxu0 %v6727_v8  ;;  %v6735_v13 = vld [vmem:[%s10229_s3 + $0x284] ss:$16 sps:$4 sm:$0xff]   ;;  %v6738_v15 = vld [vmem:[%s10229_s3 + $0x280] ss:$16 sps:$4 sm:$0xff]   ;;  %v8037_v49 = vpack.c.bf16 %v55_v46, %v55_v46  ;;  %v57_v50 = vld [vmem:[%s10245_s25 + $0x18] sm:$0xff] }
   0xa   :  { %1315 = vmatprep.subr.bf16.mxu1 %v6729_v9  ;;  %v6739_v16 = vld [vmem:[%s10229_s3 + $0x64] ss:$16 sps:$4 sm:$0xff]   ;;  %v6743_v18 = vld [vmem:[%s10229_s3 + $0x60] ss:$16 sps:$4 sm:$0xff]   ;;  %v8045_v52 = vpack.c.bf16 %v57_v50, %v57_v50 }
   0xb   :  { %v6741_v17 = vld [vmem:[%s10229_s3 + $0x264] ss:$16 sps:$4 sm:$0xff]   ;;  %v6744_v19 = vld [vmem:[%s10229_s3 + $0x260] ss:$16 sps:$4 sm:$0xff]   ;;  %1302 = vmatprep.mubr.bf16.mxu0 %v8037_v49 }
   0xc   :  { %1275 = vmatpush1.bf16.msra.mxu0 %v6731_v10  ;;  %v6745_v20 = vld [vmem:[%s10229_s3 + $0x44] ss:$16 sps:$4 sm:$0xff]   ;;  %v6749_v22 = vld [vmem:[%s10229_s3 + $0x40] ss:$16 sps:$4 sm:$0xff]   ;;  %1343 = vmatprep.mubr.bf16.mxu1 %v8045_v52 }
   0xd   :  { %1316 = vmatpush1.bf16.msra.mxu1 %v6732_v11  ;;  %1276 = vmatprep.subr.bf16.mxu0 %v6733_v12  ;;  %v6747_v21 = vld [vmem:[%s10229_s3 + $0x244] ss:$16 sps:$4 sm:$0xff]   ;;  %v6750_v23 = vld [vmem:[%s10229_s3 + $0x240] ss:$16 sps:$4 sm:$0xff]  }
   0xe   :  { %1317 = vmatprep.subr.bf16.mxu1 %v6735_v13  ;;  %v6751_v24 = vld [vmem:[%s10229_s3 + $0x24] ss:$16 sps:$4 sm:$0xff]   ;;  %v6755_v26 = vld [vmem:[%s10229_s3 + $0x20] ss:$16 sps:$4 sm:$0xff]   ;;  %v6822_v13 = vld [vmem:[%s10229_s3 + $0xec] ss:$16 sps:$4 sm:$0xff]  }
   0xf   :  { %v6753_v25 = vld [vmem:[%s10229_s3 + $0x224] ss:$16 sps:$4 sm:$0xff]   ;;  %v6756_v27 = vld [vmem:[%s10229_s3 + $0x220] ss:$16 sps:$4 sm:$0xff]  }
  0x10   :  { %1277 = vmatpush1.bf16.msra.mxu0 %v6737_v14  ;;  %v6757_v28 = vld [vmem:[%s10229_s3 + $0x4] ss:$16 sps:$4 sm:$0xff]   ;;  %v6761_v30 = vld [vmem:[%s10229_s3] ss:$16 sps:$4 sm:$0xff]  }
  0x11   :  { %1318 = vmatpush1.bf16.msra.mxu1 %v6738_v15  ;;  %1278 = vmatprep.subr.bf16.mxu0 %v6739_v16  ;;  %v6759_v29 = vld [vmem:[%s10229_s3 + $0x204] ss:$16 sps:$4 sm:$0xff]   ;;  %v6762_v31 = vld [vmem:[%s10229_s3 + $0x200] ss:$16 sps:$4 sm:$0xff]   ;;  %v7800_v16 = vmov 0  }
  0x12   :  { %1319 = vmatprep.subr.bf16.mxu1 %v6741_v17  ;;  %v6763_v32 = vld [vmem:[%s10229_s3 + $0x1e4] ss:$16 sps:$4 sm:$0xff]   ;;  %v6767_v34 = vld [vmem:[%s10229_s3 + $0x1e0] ss:$16 sps:$4 sm:$0xff]  }
  0x13   :  { %v6765_v33 = vld [vmem:[%s10229_s3 + $0x3e4] ss:$16 sps:$4 sm:$0xff]   ;;  %v6768_v35 = vld [vmem:[%s10229_s3 + $0x3e0] ss:$16 sps:$4 sm:$0xff]  }
  0x14   :  { %1279 = vmatpush1.bf16.msra.mxu0 %v6743_v18  ;;  %v6769_v36 = vld [vmem:[%s10229_s3 + $0x1c4] ss:$16 sps:$4 sm:$0xff]   ;;  %v6773_v38 = vld [vmem:[%s10229_s3 + $0x1c0] ss:$16 sps:$4 sm:$0xff]   ;;  %v6820_v18 = vld [vmem:[%s10229_s3 + $0xe8] ss:$16 sps:$4 sm:$0xff]  }
  0x15   :  { %1320 = vmatpush1.bf16.msra.mxu1 %v6744_v19  ;;  %1280 = vmatprep.subr.bf16.mxu0 %v6745_v20  ;;  %v6771_v37 = vld [vmem:[%s10229_s3 + $0x3c4] ss:$16 sps:$4 sm:$0xff]   ;;  %v6774_v39 = vld [vmem:[%s10229_s3 + $0x3c0] ss:$16 sps:$4 sm:$0xff]  }
  0x16   :  { %1321 = vmatprep.subr.bf16.mxu1 %v6747_v21  ;;  %v6775_v40 = vld [vmem:[%s10229_s3 + $0x1a4] ss:$16 sps:$4 sm:$0xff]   ;;  %v6779_v42 = vld [vmem:[%s10229_s3 + $0x1a0] ss:$16 sps:$4 sm:$0xff]   ;;  %v6828_v21 = vld [vmem:[%s10229_s3 + $0xcc] ss:$16 sps:$4 sm:$0xff]  }
  0x17   :  { %v6777_v41 = vld [vmem:[%s10229_s3 + $0x3a4] ss:$16 sps:$4 sm:$0xff]   ;;  %v6780_v43 = vld [vmem:[%s10229_s3 + $0x3a0] ss:$16 sps:$4 sm:$0xff]  }
  0x18   :  { %1281 = vmatpush1.bf16.msra.mxu0 %v6749_v22  ;;  %v6781_v44 = vld [vmem:[%s10229_s3 + $0x184] ss:$16 sps:$4 sm:$0xff]   ;;  %v6785_v47 = vld [vmem:[%s10229_s3 + $0x180] ss:$16 sps:$4 sm:$0xff]  }
  0x19   :  { %1322 = vmatpush1.bf16.msra.mxu1 %v6750_v23  ;;  %1282 = vmatprep.subr.bf16.mxu0 %v6751_v24  ;;  %v6783_v45 = vld [vmem:[%s10229_s3 + $0x384] ss:$16 sps:$4 sm:$0xff]   ;;  %v6786_v48 = vld [vmem:[%s10229_s3 + $0x380] ss:$16 sps:$4 sm:$0xff]   ;;  %v6826_v23 = vld [vmem:[%s10229_s3 + $0xc8] ss:$16 sps:$4 sm:$0xff]  }
  0x1a   :  { %1323 = vmatprep.subr.bf16.mxu1 %v6753_v25  ;;  %v6787_v51 = vld [vmem:[%s10229_s3 + $0x164] ss:$16 sps:$4 sm:$0xff]   ;;  %v6791_v54 = vld [vmem:[%s10229_s3 + $0x160] ss:$16 sps:$4 sm:$0xff]   ;;  %v6834_v25 = vld [vmem:[%s10229_s3 + $0xac] ss:$16 sps:$4 sm:$0xff]  }
  0x1b   :  { %v6789_v53 = vld [vmem:[%s10229_s3 + $0x364] ss:$16 sps:$4 sm:$0xff]   ;;  %v6792_v55 = vld [vmem:[%s10229_s3 + $0x360] ss:$16 sps:$4 sm:$0xff]  }
  0x1c   :  { %1283 = vmatpush1.bf16.msra.mxu0 %v6755_v26  ;;  %v6793_v56 = vld [vmem:[%s10229_s3 + $0x144] ss:$16 sps:$4 sm:$0xff]   ;;  %v6797_v58 = vld [vmem:[%s10229_s3 + $0x140] ss:$16 sps:$4 sm:$0xff]  }
  0x1d   :  { %1324 = vmatpush1.bf16.msra.mxu1 %v6756_v27  ;;  %1284 = vmatprep.subr.bf16.mxu0 %v6757_v28  ;;  %v6795_v57 = vld [vmem:[%s10229_s3 + $0x344] ss:$16 sps:$4 sm:$0xff]   ;;  %v6798_v59 = vld [vmem:[%s10229_s3 + $0x340] ss:$16 sps:$4 sm:$0xff]   ;;  %v6832_v27 = vld [vmem:[%s10229_s3 + $0xa8] ss:$16 sps:$4 sm:$0xff]  }
  0x1e   :  { %1325 = vmatprep.subr.bf16.mxu1 %v6759_v29  ;;  %v6799_v60 = vld [vmem:[%s10229_s3 + $0x124] ss:$16 sps:$4 sm:$0xff]   ;;  %v6803_v62 = vld [vmem:[%s10229_s3 + $0x120] ss:$16 sps:$4 sm:$0xff]   ;;  %v6840_v29 = vld [vmem:[%s10229_s3 + $0x8c] ss:$16 sps:$4 sm:$0xff]  }
  0x1f   :  { %v6801_v61 = vld [vmem:[%s10229_s3 + $0x324] ss:$16 sps:$4 sm:$0xff]   ;;  %v6804_v63 = vld [vmem:[%s10229_s3 + $0x320] ss:$16 sps:$4 sm:$0xff]  }
  0x20   :  { %1285 = vmatpush1.bf16.msra.mxu0 %v6761_v30  ;;  %v6805_v0 = vld [vmem:[%s10229_s3 + $0x104] ss:$16 sps:$4 sm:$0xff]   ;;  %v6809_v2 = vld [vmem:[%s10229_s3 + $0x100] ss:$16 sps:$4 sm:$0xff]  }
  0x21   :  { %1326 = vmatpush1.bf16.msra.mxu1 %v6762_v31  ;;  %1286 = vmatprep.subr.bf16.mxu0 %v6763_v32  ;;  %v6807_v1 = vld [vmem:[%s10229_s3 + $0x304] ss:$16 sps:$4 sm:$0xff]   ;;  %v6810_v3 = vld [vmem:[%s10229_s3 + $0x300] ss:$16 sps:$4 sm:$0xff]   ;;  %v6838_v31 = vld [vmem:[%s10229_s3 + $0x88] ss:$16 sps:$4 sm:$0xff]  }
  0x22   :  { %1327 = vmatprep.subr.bf16.mxu1 %v6765_v33  ;;  %v54_v4 = vld [vmem:[%s10245_s25] sm:$0xff]  ;;  %v56_v5 = vld [vmem:[%s10245_s25 + $0x10] sm:$0xff]  ;;  %v6846_v33 = vld [vmem:[%s10229_s3 + $0x6c] ss:$16 sps:$4 sm:$0xff]  }
  0x23   :  { %v6813_v6 = vld [vmem:[%s10229_s3 + $0x4e4] ss:$16 sps:$4 sm:$0xff]   ;;  %v8106_v8 = vpack.c.bf16 %v54_v4, %v54_v4  ;;  %v8108_v9 = vpack.c.bf16 %v56_v5, %v56_v5  ;;  %v6811_v10 = vld [vmem:[%s10229_s3 + $0x4e0] ss:$16 sps:$4 sm:$0xff]   ;;  %v6894_v4 = vld [vmem:[%s10229_s3 + $0x16c] ss:$16 sps:$4 sm:$0xff]  }
  0x24   :  { %1287 = vmatpush2.bf16.msra.mxu0 %v6767_v34  ;;  %v6816_v7 = vld [vmem:[%s10229_s3 + $0x604] ss:$16 sps:$4 sm:$0xff]   ;;  %v6814_v11 = vld [vmem:[%s10229_s3 + $0x600] ss:$16 sps:$4 sm:$0xff]  }
  0x25   :  { %1328 = vmatpush2.bf16.msra.mxu1 %v6768_v35  ;;  %1288 = vmatprep.subr.bf16.mxu0 %v6769_v36  ;;  %v6819_v12 = vld [vmem:[%s10229_s3 + $0x4c4] ss:$16 sps:$4 sm:$0xff]   ;;  %v6817_v14 = vld [vmem:[%s10229_s3 + $0x4c0] ss:$16 sps:$4 sm:$0xff]   ;;  %v59_v35 = vld [vmem:[%s10245_s25 + $0x28] sm:$0xff] }
  0x26   :  { %1329 = vmatprep.subr.bf16.mxu1 %v6771_v37  ;;  %v60_v15 = vld [vmem:[%s10245_s25 + $0x30] sm:$0xff]  ;;  %v8190_v36 = vpack.c.bf16 %v59_v35, %v59_v35  ;;  %v6844_v37 = vld [vmem:[%s10229_s3 + $0x68] ss:$16 sps:$4 sm:$0xff]  }
  0x27   :  { %v6825_v17 = vld [vmem:[%s10229_s3 + $0x4a4] ss:$16 sps:$4 sm:$0xff]   ;;  %v8137_v19 = vpack.c.bf16 %v60_v15, %v60_v15  ;;  %v6823_v20 = vld [vmem:[%s10229_s3 + $0x4a0] ss:$16 sps:$4 sm:$0xff]   ;;  %v6928_v35 = vld [vmem:[%s10229_s3 + $0x4a8] ss:$16 sps:$4 sm:$0xff]  }
  0x28   :  { %1289 = vmatpush2.bf16.msra.mxu0 %v6773_v38  ;;  %v6831_v22 = vld [vmem:[%s10229_s3 + $0x484] ss:$16 sps:$4 sm:$0xff]   ;;  %v6829_v24 = vld [vmem:[%s10229_s3 + $0x480] ss:$16 sps:$4 sm:$0xff]  }
  0x29   :  { %1330 = vmatpush2.bf16.msra.mxu1 %v6774_v39  ;;  %1290 = vmatprep.subr.bf16.mxu0 %v6775_v40  ;;  %v6837_v26 = vld [vmem:[%s10229_s3 + $0x464] ss:$16 sps:$4 sm:$0xff]   ;;  %v6835_v28 = vld [vmem:[%s10229_s3 + $0x460] ss:$16 sps:$4 sm:$0xff]   ;;  %v6852_v39 = vld [vmem:[%s10229_s3 + $0x4c] ss:$16 sps:$4 sm:$0xff]  }
  0x2a   :  { %1331 = vmatprep.subr.bf16.mxu1 %v6777_v41  ;;  %v6843_v30 = vld [vmem:[%s10229_s3 + $0x444] ss:$16 sps:$4 sm:$0xff]   ;;  %v6841_v32 = vld [vmem:[%s10229_s3 + $0x440] ss:$16 sps:$4 sm:$0xff]   ;;  %v6850_v41 = vld [vmem:[%s10229_s3 + $0x48] ss:$16 sps:$4 sm:$0xff]  }
  0x2b   :  { %v6849_v34 = vld [vmem:[%s10229_s3 + $0x424] ss:$16 sps:$4 sm:$0xff]   ;;  %v6847_v38 = vld [vmem:[%s10229_s3 + $0x420] ss:$16 sps:$4 sm:$0xff]  }
  0x2c   :  { %1291 = vmatpush2.bf16.msra.mxu0 %v6779_v42  ;;  %v6855_v40 = vld [vmem:[%s10229_s3 + $0x404] ss:$16 sps:$4 sm:$0xff]   ;;  %v6853_v42 = vld [vmem:[%s10229_s3 + $0x400] ss:$16 sps:$4 sm:$0xff]  }
  0x2d   :  { %1332 = vmatpush2.bf16.msra.mxu1 %v6780_v43  ;;  %1292 = vmatprep.subr.bf16.mxu0 %v6781_v44  ;;  %v6858_v43 = vld [vmem:[%s10229_s3 + $0x2c] ss:$16 sps:$4 sm:$0xff]   ;;  %v6861_v44 = vld [vmem:[%s10229_s3 + $0x5e4] ss:$16 sps:$4 sm:$0xff]   ;;  %v6859_v46 = vld [vmem:[%s10229_s3 + $0x5e0] ss:$16 sps:$4 sm:$0xff]  }
  0x2e   :  { %1333 = vmatprep.subr.bf16.mxu1 %v6783_v45  ;;  %v6856_v45 = vld [vmem:[%s10229_s3 + $0x28] ss:$16 sps:$4 sm:$0xff]   ;;  %v6865_v50 = vld [vmem:[%s10229_s3 + $0x5c0] ss:$16 sps:$4 sm:$0xff]   ;;  %v6897_v5 = vld [vmem:[%s10229_s3 + $0x524] ss:$16 sps:$4 sm:$0xff]  }
  0x2f   :  { %v58_v15 = vld [vmem:[%s10245_s25 + $0x20] sm:$0xff] }
  0x30   :  { %1293 = vmatpush2.bf16.msra.mxu0 %v6785_v47  ;;  %v6864_v47 = vld [vmem:[%s10229_s3 + $0xc] ss:$16 sps:$4 sm:$0xff]  }
  0x31   :  { %1334 = vmatpush2.bf16.msra.mxu1 %v6786_v48  ;;  %1294 = vmatprep.subr.bf16.mxu0 %v6787_v51  ;;  %v6867_v48 = vld [vmem:[%s10229_s3 + $0x5c4] ss:$16 sps:$4 sm:$0xff]   ;;  %v6870_v51 = vld [vmem:[%s10229_s3 + $0x1ec] ss:$16 sps:$4 sm:$0xff]  }
  0x32   :  { %1335 = vmatprep.subr.bf16.mxu1 %v6789_v53  ;;  %v6873_v53 = vld [vmem:[%s10229_s3 + $0x5a4] ss:$16 sps:$4 sm:$0xff]  }
  0x34   :  { %1295 = vmatpush2.bf16.msra.mxu0 %v6791_v54  ;;  %v6868_v54 = vld [vmem:[%s10229_s3 + $0x1e8] ss:$16 sps:$4 sm:$0xff]  }
  0x35   :  { %1336 = vmatpush2.bf16.msra.mxu1 %v6792_v55  ;;  %1296 = vmatprep.subr.bf16.mxu0 %v6793_v56  ;;  %v6871_v55 = vld [vmem:[%s10229_s3 + $0x5a0] ss:$16 sps:$4 sm:$0xff]   ;;  %v6876_v56 = vld [vmem:[%s10229_s3 + $0x1cc] ss:$16 sps:$4 sm:$0xff]  }
  0x36   :  { %1337 = vmatprep.subr.bf16.mxu1 %v6795_v57  ;;  %v6879_v57 = vld [vmem:[%s10229_s3 + $0x584] ss:$16 sps:$4 sm:$0xff]  }
  0x38   :  { %1297 = vmatpush2.bf16.msra.mxu0 %v6797_v58  ;;  %v6874_v58 = vld [vmem:[%s10229_s3 + $0x1c8] ss:$16 sps:$4 sm:$0xff]  }
  0x39   :  { %1338 = vmatpush2.bf16.msra.mxu1 %v6798_v59  ;;  %1298 = vmatprep.subr.bf16.mxu0 %v6799_v60  ;;  %v6877_v59 = vld [vmem:[%s10229_s3 + $0x580] ss:$16 sps:$4 sm:$0xff]   ;;  %v6882_v60 = vld [vmem:[%s10229_s3 + $0x1ac] ss:$16 sps:$4 sm:$0xff]  }
  0x3a   :  { %1339 = vmatprep.subr.bf16.mxu1 %v6801_v61  ;;  %v6885_v61 = vld [vmem:[%s10229_s3 + $0x564] ss:$16 sps:$4 sm:$0xff]  }
  0x3c   :  { %1299 = vmatpush2.bf16.msra.mxu0 %v6803_v62  ;;  %v6880_v62 = vld [vmem:[%s10229_s3 + $0x1a8] ss:$16 sps:$4 sm:$0xff]  }
  0x3d   :  { %1340 = vmatpush2.bf16.msra.mxu1 %v6804_v63  ;;  %1300 = vmatprep.subr.bf16.mxu0 %v6805_v0  ;;  %v6883_v63 = vld [vmem:[%s10229_s3 + $0x560] ss:$16 sps:$4 sm:$0xff]   ;;  %v6888_v0 = vld [vmem:[%s10229_s3 + $0x18c] ss:$16 sps:$4 sm:$0xff]  }
  0x3e   :  { %1341 = vmatprep.subr.bf16.mxu1 %v6807_v1  ;;  %v6891_v1 = vld [vmem:[%s10229_s3 + $0x544] ss:$16 sps:$4 sm:$0xff]  }
  0x40   :  { %1301 = vmatpush2.bf16.msra.mxu0 %v6809_v2  ;;  %v6886_v2 = vld [vmem:[%s10229_s3 + $0x188] ss:$16 sps:$4 sm:$0xff]  }
  0x41   :  { %1342 = vmatpush2.bf16.msra.mxu1 %v6810_v3  ;;  %1352 = vmatprep.subr.bf16.mxu0 %v6813_v6  ;;  %v6889_v3 = vld [vmem:[%s10229_s3 + $0x540] ss:$16 sps:$4 sm:$0xff]   ;;  %v6892_v6 = vld [vmem:[%s10229_s3 + $0x168] ss:$16 sps:$4 sm:$0xff]  }
  0x42   :  { %1407 = vmatprep.subr.bf16.mxu1 %v6816_v7  ;;  %v6895_v7 = vld [vmem:[%s10229_s3 + $0x520] ss:$16 sps:$4 sm:$0xff]  }
  0x43   :  { %1303 = vmatmul.mubr.bf16.vlgmr.msra.gmra.mxu0 %v8106_v8 }
  0x44   :  { %1344 = vmatmul.mubr.bf16.vlgmr.msra.gmra.mxu1 %v8108_v9  ;;  %1353 = vmatpush1.bf16.msra.mxu0 %v6811_v10  ;;  %v6900_v10 = vld [vmem:[%s10229_s3 + $0x14c] ss:$16 sps:$4 sm:$0xff]  }
  0x45   :  { %1408 = vmatpush1.bf16.msra.mxu1 %v6814_v11  ;;  %1354 = vmatprep.subr.bf16.mxu0 %v6819_v12  ;;  %v6903_v11 = vld [vmem:[%s10229_s3 + $0x504] ss:$16 sps:$4 sm:$0xff]   ;;  %v6898_v12 = vld [vmem:[%s10229_s3 + $0x148] ss:$16 sps:$4 sm:$0xff]  }
  0x46   :  { %1425 = vmatprep.mubr.bf16.mxu1 %v7800_v16  ;;  %1434 = vmatprep.subr.bf16.mxu1 %v6822_v13  ;;  %v6901_v13 = vld [vmem:[%s10229_s3 + $0x500] ss:$16 sps:$4 sm:$0xff]  }
  0x47   :  { %1384 = vmatprep.mubr.bf16.mxu0 %v8190_v36 }
  0x48   :  { %1355 = vmatpush1.bf16.msra.mxu0 %v6817_v14  ;;  %v6906_v14 = vld [vmem:[%s10229_s3 + $0x12c] ss:$16 sps:$4 sm:$0xff]  }
  0x49   :  { %1356 = vmatprep.subr.bf16.mxu0 %v6825_v17  ;;  %v6909_v17 = vld [vmem:[%s10229_s3 + $0x2ec] ss:$16 sps:$4 sm:$0xff]  }
  0x4c   :  { %6096 = vmatmul.mubr.msk.bf16.vlgmr.msra.gmra.mxu1 %vm1266_vm0, %v8137_v19  ;;  %1357 = vmatpush1.bf16.msra.mxu0 %v6823_v20  ;;  %v8319_v20 = vpack.c.bf16 %v58_v15, %v58_v15  ;;  %v6996_v15 = vld [vmem:[%s10229_s3 + $0x54c] ss:$16 sps:$4 sm:$0xff]  }
  0x4d   :  { %1435 = vmatpush1.bf16.msra.mxu1 %v6820_v18  ;;  %1358 = vmatprep.subr.bf16.mxu0 %v6831_v22  ;;  %v6904_v18 = vld [vmem:[%s10229_s3 + $0x128] ss:$16 sps:$4 sm:$0xff]   ;;  %v6912_v22 = vld [vmem:[%s10229_s3 + $0x10c] ss:$16 sps:$4 sm:$0xff]  }
  0x4e   :  { %1436 = vmatprep.subr.bf16.mxu1 %v6828_v21  ;;  %1466 = vmatprep.mubr.bf16.mxu1 %v8037_v49  ;;  %v6862_v49 = vld [vmem:[%s10229_s3 + $0x8] ss:$16 sps:$4 sm:$0xff]  }
  0x4f   :  { %v6907_v21 = vld [vmem:[%s10229_s3 + $0x2e8] ss:$16 sps:$4 sm:$0xff]  }
  0x50   :  { %1359 = vmatpush1.bf16.msra.mxu0 %v6829_v24  ;;  %v6910_v24 = vld [vmem:[%s10229_s3 + $0x108] ss:$16 sps:$4 sm:$0xff]  }
  0x51   :  { %1437 = vmatpush1.bf16.msra.mxu1 %v6826_v23  ;;  %1360 = vmatprep.subr.bf16.mxu0 %v6837_v26  ;;  %v6915_v23 = vld [vmem:[%s10229_s3 + $0x2cc] ss:$16 sps:$4 sm:$0xff]  }
  0x52   :  { %1438 = vmatprep.subr.bf16.mxu1 %v6834_v25  ;;  %v6913_v25 = vld [vmem:[%s10229_s3 + $0x2c8] ss:$16 sps:$4 sm:$0xff]   ;;  %v6918_v26 = vld [vmem:[%s10229_s3 + $0x4ec] ss:$16 sps:$4 sm:$0xff]  }
  0x54   :  { %1361 = vmatpush1.bf16.msra.mxu0 %v6835_v28  ;;  %v6916_v28 = vld [vmem:[%s10229_s3 + $0x4e8] ss:$16 sps:$4 sm:$0xff]  }
  0x55   :  { %1439 = vmatpush1.bf16.msra.mxu1 %v6832_v27  ;;  %1362 = vmatprep.subr.bf16.mxu0 %v6843_v30  ;;  %v6921_v27 = vld [vmem:[%s10229_s3 + $0x2ac] ss:$16 sps:$4 sm:$0xff]  }
  0x56   :  { %1440 = vmatprep.subr.bf16.mxu1 %v6840_v29  ;;  %v6919_v29 = vld [vmem:[%s10229_s3 + $0x2a8] ss:$16 sps:$4 sm:$0xff]   ;;  %v6924_v30 = vld [vmem:[%s10229_s3 + $0x4cc] ss:$16 sps:$4 sm:$0xff]  }
  0x58   :  { %1363 = vmatpush1.bf16.msra.mxu0 %v6841_v32  ;;  %v6922_v32 = vld [vmem:[%s10229_s3 + $0x4c8] ss:$16 sps:$4 sm:$0xff]  }
  0x59   :  { %1441 = vmatpush1.bf16.msra.mxu1 %v6838_v31  ;;  %1364 = vmatprep.subr.bf16.mxu0 %v6849_v34  ;;  %v6927_v31 = vld [vmem:[%s10229_s3 + $0x28c] ss:$16 sps:$4 sm:$0xff]  }
  0x5a   :  { %1442 = vmatprep.subr.bf16.mxu1 %v6846_v33  ;;  %v6930_v33 = vld [vmem:[%s10229_s3 + $0x4ac] ss:$16 sps:$4 sm:$0xff]  }
  0x5b   :  { %v6933_v34 = vld [vmem:[%s10229_s3 + $0x26c] ss:$16 sps:$4 sm:$0xff]  }
  0x5c   :  { %1365 = vmatpush1.bf16.msra.mxu0 %v6847_v38  ;;  %v6939_v38 = vld [vmem:[%s10229_s3 + $0x24c] ss:$16 sps:$4 sm:$0xff]  }
  0x5d   :  { %1443 = vmatpush1.bf16.msra.mxu1 %v6844_v37  ;;  %1366 = vmatprep.subr.bf16.mxu0 %v6855_v40  ;;  %v6936_v37 = vld [vmem:[%s10229_s3 + $0x48c] ss:$16 sps:$4 sm:$0xff]  }
  0x5e   :  { %1444 = vmatprep.subr.bf16.mxu1 %v6852_v39  ;;  %v6934_v39 = vld [vmem:[%s10229_s3 + $0x488] ss:$16 sps:$4 sm:$0xff]   ;;  %v6942_v40 = vld [vmem:[%s10229_s3 + $0x46c] ss:$16 sps:$4 sm:$0xff]  }
  0x60   :  { %1367 = vmatpush1.bf16.msra.mxu0 %v6853_v42  ;;  %v6940_v42 = vld [vmem:[%s10229_s3 + $0x468] ss:$16 sps:$4 sm:$0xff]  }
  0x61   :  { %1445 = vmatpush1.bf16.msra.mxu1 %v6850_v41  ;;  %1368 = vmatprep.subr.bf16.mxu0 %v6861_v44  ;;  %v6945_v41 = vld [vmem:[%s10229_s3 + $0x22c] ss:$16 sps:$4 sm:$0xff]  }
  0x62   :  { %1446 = vmatprep.subr.bf16.mxu1 %v6858_v43  ;;  %v6943_v43 = vld [vmem:[%s10229_s3 + $0x228] ss:$16 sps:$4 sm:$0xff]   ;;  %v6948_v44 = vld [vmem:[%s10229_s3 + $0x44c] ss:$16 sps:$4 sm:$0xff]  }
  0x64   :  { %1369 = vmatpush2.bf16.msra.mxu0 %v6859_v46  ;;  %v6946_v46 = vld [vmem:[%s10229_s3 + $0x448] ss:$16 sps:$4 sm:$0xff]  }
  0x65   :  { %1447 = vmatpush1.bf16.msra.mxu1 %v6856_v45  ;;  %1370 = vmatprep.subr.bf16.mxu0 %v6867_v48  ;;  %v6951_v45 = vld [vmem:[%s10229_s3 + $0x20c] ss:$16 sps:$4 sm:$0xff]  }
  0x66   :  { %1448 = vmatprep.subr.bf16.mxu1 %v6864_v47  ;;  %v6949_v47 = vld [vmem:[%s10229_s3 + $0x208] ss:$16 sps:$4 sm:$0xff]   ;;  %v6954_v48 = vld [vmem:[%s10229_s3 + $0x42c] ss:$16 sps:$4 sm:$0xff]  }
  0x68   :  { %1371 = vmatpush2.bf16.msra.mxu0 %v6865_v50  ;;  %v6952_v50 = vld [vmem:[%s10229_s3 + $0x428] ss:$16 sps:$4 sm:$0xff]  }
  0x69   :  { %1449 = vmatpush1.bf16.msra.mxu1 %v6862_v49  ;;  %1372 = vmatprep.subr.bf16.mxu0 %v6873_v53  ;;  %v6957_v49 = vld [vmem:[%s10229_s3 + $0x3ec] ss:$16 sps:$4 sm:$0xff]  }
  0x6a   :  { %1450 = vmatprep.subr.bf16.mxu1 %v6870_v51  ;;  %v6955_v51 = vld [vmem:[%s10229_s3 + $0x3e8] ss:$16 sps:$4 sm:$0xff]   ;;  %v6960_v53 = vld [vmem:[%s10229_s3 + $0x40c] ss:$16 sps:$4 sm:$0xff]  }
  0x6c   :  { %1373 = vmatpush2.bf16.msra.mxu0 %v6871_v55  ;;  %v6958_v55 = vld [vmem:[%s10229_s3 + $0x408] ss:$16 sps:$4 sm:$0xff]  }
  0x6d   :  { %1451 = vmatpush2.bf16.msra.mxu1 %v6868_v54  ;;  %1374 = vmatprep.subr.bf16.mxu0 %v6879_v57  ;;  %v6963_v54 = vld [vmem:[%s10229_s3 + $0x3cc] ss:$16 sps:$4 sm:$0xff]  }
  0x6e   :  { %1452 = vmatprep.subr.bf16.mxu1 %v6876_v56  ;;  %v6961_v56 = vld [vmem:[%s10229_s3 + $0x3c8] ss:$16 sps:$4 sm:$0xff]   ;;  %v6966_v57 = vld [vmem:[%s10229_s3 + $0x5ec] ss:$16 sps:$4 sm:$0xff]  }
  0x70   :  { %1375 = vmatpush2.bf16.msra.mxu0 %v6877_v59  ;;  %v6964_v59 = vld [vmem:[%s10229_s3 + $0x5e8] ss:$16 sps:$4 sm:$0xff]  }
  0x71   :  { %1453 = vmatpush2.bf16.msra.mxu1 %v6874_v58  ;;  %1376 = vmatprep.subr.bf16.mxu0 %v6885_v61  ;;  %v6969_v58 = vld [vmem:[%s10229_s3 + $0x3ac] ss:$16 sps:$4 sm:$0xff]  }
  0x72   :  { %1454 = vmatprep.subr.bf16.mxu1 %v6882_v60  ;;  %v6967_v60 = vld [vmem:[%s10229_s3 + $0x3a8] ss:$16 sps:$4 sm:$0xff]   ;;  %v6972_v61 = vld [vmem:[%s10229_s3 + $0x5cc] ss:$16 sps:$4 sm:$0xff]  }
  0x74   :  { %1377 = vmatpush2.bf16.msra.mxu0 %v6883_v63  ;;  %v6970_v63 = vld [vmem:[%s10229_s3 + $0x5c8] ss:$16 sps:$4 sm:$0xff]  }
  0x75   :  { %1455 = vmatpush2.bf16.msra.mxu1 %v6880_v62  ;;  %1378 = vmatprep.subr.bf16.mxu0 %v6891_v1  ;;  %v6975_v62 = vld [vmem:[%s10229_s3 + $0x38c] ss:$16 sps:$4 sm:$0xff]  }
  0x76   :  { %1456 = vmatprep.subr.bf16.mxu1 %v6888_v0  ;;  %v6973_v0 = vld [vmem:[%s10229_s3 + $0x388] ss:$16 sps:$4 sm:$0xff]   ;;  %v6978_v1 = vld [vmem:[%s10229_s3 + $0x5ac] ss:$16 sps:$4 sm:$0xff]  }
  0x78   :  { %1379 = vmatpush2.bf16.msra.mxu0 %v6889_v3  ;;  %v6976_v3 = vld [vmem:[%s10229_s3 + $0x5a8] ss:$16 sps:$4 sm:$0xff]  }
  0x79   :  { %1457 = vmatpush2.bf16.msra.mxu1 %v6886_v2  ;;  %1380 = vmatprep.subr.bf16.mxu0 %v6897_v5  ;;  %v6981_v2 = vld [vmem:[%s10229_s3 + $0x36c] ss:$16 sps:$4 sm:$0xff]  }
  0x7a   :  { %1458 = vmatprep.subr.bf16.mxu1 %v6894_v4  ;;  %v6979_v4 = vld [vmem:[%s10229_s3 + $0x368] ss:$16 sps:$4 sm:$0xff]   ;;  %v6984_v5 = vld [vmem:[%s10229_s3 + $0x58c] ss:$16 sps:$4 sm:$0xff]  }
  0x7c   :  { %1381 = vmatpush2.bf16.msra.mxu0 %v6895_v7  ;;  %v6982_v7 = vld [vmem:[%s10229_s3 + $0x588] ss:$16 sps:$4 sm:$0xff]  }
  0x7d   :  { %1459 = vmatpush2.bf16.msra.mxu1 %v6892_v6  ;;  %1382 = vmatprep.subr.bf16.mxu0 %v6903_v11  ;;  %v6987_v6 = vld [vmem:[%s10229_s3 + $0x34c] ss:$16 sps:$4 sm:$0xff]  }
  0x7e   :  { %1460 = vmatprep.subr.bf16.mxu1 %v6900_v10  ;;  %v6985_v10 = vld [vmem:[%s10229_s3 + $0x348] ss:$16 sps:$4 sm:$0xff]   ;;  %v6990_v11 = vld [vmem:[%s10229_s3 + $0x56c] ss:$16 sps:$4 sm:$0xff]  }
  0x80   :  { %1383 = vmatpush2.bf16.msra.mxu0 %v6901_v13  ;;  %v6988_v13 = vld [vmem:[%s10229_s3 + $0x568] ss:$16 sps:$4 sm:$0xff]  }
  0x81   :  { %1461 = vmatpush2.bf16.msra.mxu1 %v6898_v12  ;;  %1475 = vmatprep.subr.bf16.mxu0 %v6909_v17  ;;  %v6993_v12 = vld [vmem:[%s10229_s3 + $0x32c] ss:$16 sps:$4 sm:$0xff]  }
  0x82   :  { %1462 = vmatprep.subr.bf16.mxu1 %v6906_v14  ;;  %v6991_v14 = vld [vmem:[%s10229_s3 + $0x328] ss:$16 sps:$4 sm:$0xff]   ;;  %v6999_v17 = vld [vmem:[%s10229_s3 + $0x30c] ss:$16 sps:$4 sm:$0xff]  }
  0x83   :  { %1385 = vmatmul.mubr.bf16.vlgmr.msra.gmra.mxu0 %v8319_v20 }
  0x84   :  { %1476 = vmatpush1.bf16.msra.mxu0 %v6907_v21  ;;  %1507 = vmatprep.mubr.bf16.mxu0 %v8045_v52  ;;  %v6925_v52 = vld [vmem:[%s10229_s3 + $0x288] ss:$16 sps:$4 sm:$0xff]  }
  0x85   :  { %1463 = vmatpush2.bf16.msra.mxu1 %v6904_v18  ;;  %1477 = vmatprep.subr.bf16.mxu0 %v6915_v23  ;;  %v6994_v18 = vld [vmem:[%s10229_s3 + $0x548] ss:$16 sps:$4 sm:$0xff]   ;;  %v7005_v23 = vld [vmem:[%s10229_s3 + $0x60c] ss:$16 sps:$4 sm:$0xff]  }
  0x86   :  { %1464 = vmatprep.subr.bf16.mxu1 %v6912_v22  ;;  %v6997_v21 = vld [vmem:[%s10229_s3 + $0x308] ss:$16 sps:$4 sm:$0xff]   ;;  %v7002_v22 = vld [vmem:[%s10229_s3 + $0x52c] ss:$16 sps:$4 sm:$0xff]  }
  0x88   :  { %1478 = vmatpush1.bf16.msra.mxu0 %v6913_v25  ;;  %v7003_v25 = vld [vmem:[%s10229_s3 + $0x608] ss:$16 sps:$4 sm:$0xff]  }
  0x89   :  { %1465 = vmatpush2.bf16.msra.mxu1 %v6910_v24  ;;  %1479 = vmatprep.subr.bf16.mxu0 %v6921_v27  ;;  %v7000_v24 = vld [vmem:[%s10229_s3 + $0x528] ss:$16 sps:$4 sm:$0xff]   ;;  %v7011_v27 = vld [vmem:[%s10231_s5 + $0xe4] ss:$16 sps:$4 sm:$0xff]  }
  0x8a   :  { %1516 = vmatprep.subr.bf16.mxu1 %v6918_v26  ;;  %v7008_v26 = vld [vmem:[%s10229_s3 + $0x50c] ss:$16 sps:$4 sm:$0xff]  }
  0x8c   :  { %1467 = vmatmul.mubr.bf16.vlgmr.msra.gmra.mxu1 %v8106_v8  ;;  %1480 = vmatpush1.bf16.msra.mxu0 %v6919_v29  ;;  %v6931_v8 = vld [vmem:[%s10229_s3 + $0x268] ss:$16 sps:$4 sm:$0xff]   ;;  %v7009_v29 = vld [vmem:[%s10231_s5 + $0xe0] ss:$16 sps:$4 sm:$0xff]  }
  0x8d   :  { %1517 = vmatpush1.bf16.msra.mxu1 %v6916_v28  ;;  %1481 = vmatprep.subr.bf16.mxu0 %v6927_v31  ;;  %v7006_v28 = vld [vmem:[%s10229_s3 + $0x508] ss:$16 sps:$4 sm:$0xff]   ;;  %v7012_v31 = vld [vmem:[%s10231_s5 + $0xc0] ss:$16 sps:$4 sm:$0xff]  }
  0x8e   :  { %1518 = vmatprep.subr.bf16.mxu1 %v6924_v30  ;;  %1548 = vmatprep.mubr.bf16.mxu1 %v8190_v36  ;;  %v6937_v36 = vld [vmem:[%s10229_s3 + $0x248] ss:$16 sps:$4 sm:$0xff]   ;;  %v7014_v30 = vld [vmem:[%s10231_s5 + $0xc4] ss:$16 sps:$4 sm:$0xff]  }
  0x90   :  { %1482 = vmatpush1.bf16.msra.mxu0 %v6925_v52  ;;  %v7020_v52 = vld [vmem:[%s10231_s5 + $0x84] ss:$16 sps:$4 sm:$0xff]  }
  0x91   :  { %1519 = vmatpush1.bf16.msra.mxu1 %v6922_v32  ;;  %1483 = vmatprep.subr.bf16.mxu0 %v6933_v34  ;;  %v7015_v32 = vld [vmem:[%s10231_s5 + $0xa0] ss:$16 sps:$4 sm:$0xff]   ;;  %v7023_v34 = vld [vmem:[%s10231_s5 + $0x64] ss:$16 sps:$4 sm:$0xff]  }
  0x92   :  { %1520 = vmatprep.subr.bf16.mxu1 %v6930_v33  ;;  %v7065_v33 = vld [vmem:[%s10231_s5 + $0x2e4] ss:$16 sps:$4 sm:$0xff]  }
  0x94   :  { %1484 = vmatpush1.bf16.msra.mxu0 %v6931_v8  ;;  %v7069_v8 = vld [vmem:[%s10231_s5 + $0x2c0] ss:$16 sps:$4 sm:$0xff]  }
  0x95   :  { %1521 = vmatpush1.bf16.msra.mxu1 %v6928_v35  ;;  %1485 = vmatprep.subr.bf16.mxu0 %v6939_v38  ;;  %v7021_v35 = vld [vmem:[%s10231_s5 + $0x60] ss:$16 sps:$4 sm:$0xff]   ;;  %v7026_v38 = vld [vmem:[%s10231_s5 + $0x44] ss:$16 sps:$4 sm:$0xff]  }
  0x96   :  { %1522 = vmatprep.subr.bf16.mxu1 %v6936_v37  ;;  %v7071_v37 = vld [vmem:[%s10231_s5 + $0x2c4] ss:$16 sps:$4 sm:$0xff]  }
  0x98   :  { %1486 = vmatpush1.bf16.msra.mxu0 %v6937_v36  ;;  %v7075_v36 = vld [vmem:[%s10231_s5 + $0x2a0] ss:$16 sps:$4 sm:$0xff]  }
  0x99   :  { %1523 = vmatpush1.bf16.msra.mxu1 %v6934_v39  ;;  %1487 = vmatprep.subr.bf16.mxu0 %v6945_v41  ;;  %v7024_v39 = vld [vmem:[%s10231_s5 + $0x40] ss:$16 sps:$4 sm:$0xff]   ;;  %v7029_v41 = vld [vmem:[%s10231_s5 + $0x24] ss:$16 sps:$4 sm:$0xff]  }
  0x9a   :  { %1524 = vmatprep.subr.bf16.mxu1 %v6942_v40  ;;  %v7077_v40 = vld [vmem:[%s10231_s5 + $0x2a4] ss:$16 sps:$4 sm:$0xff]  }
  0x9c   :  { %1488 = vmatpush1.bf16.msra.mxu0 %v6943_v43  ;;  %v7081_v43 = vld [vmem:[%s10231_s5 + $0x280] ss:$16 sps:$4 sm:$0xff]  }
  0x9d   :  { %1525 = vmatpush1.bf16.msra.mxu1 %v6940_v42  ;;  %1489 = vmatprep.subr.bf16.mxu0 %v6951_v45  ;;  %v7027_v42 = vld [vmem:[%s10231_s5 + $0x20] ss:$16 sps:$4 sm:$0xff]   ;;  %v7032_v45 = vld [vmem:[%s10231_s5 + $0x4] ss:$16 sps:$4 sm:$0xff]  }
  0x9e   :  { %1526 = vmatprep.subr.bf16.mxu1 %v6948_v44  ;;  %v7083_v44 = vld [vmem:[%s10231_s5 + $0x284] ss:$16 sps:$4 sm:$0xff]  }
  0xa0   :  { %1490 = vmatpush1.bf16.msra.mxu0 %v6949_v47  ;;  %v7087_v47 = vld [vmem:[%s10231_s5 + $0x260] ss:$16 sps:$4 sm:$0xff]  }
  0xa1   :  { %1527 = vmatpush1.bf16.msra.mxu1 %v6946_v46  ;;  %1491 = vmatprep.subr.bf16.mxu0 %v6957_v49  ;;  %v7030_v46 = vld [vmem:[%s10231_s5] ss:$16 sps:$4 sm:$0xff]   ;;  %v7035_v49 = vld [vmem:[%s10231_s5 + $0x1e4] ss:$16 sps:$4 sm:$0xff]  }
  0xa2   :  { %1528 = vmatprep.subr.bf16.mxu1 %v6954_v48  ;;  %v7089_v48 = vld [vmem:[%s10231_s5 + $0x264] ss:$16 sps:$4 sm:$0xff]  }
  0xa4   :  { %1492 = vmatpush2.bf16.msra.mxu0 %v6955_v51  ;;  %v7093_v51 = vld [vmem:[%s10231_s5 + $0x240] ss:$16 sps:$4 sm:$0xff]  }
  0xa5   :  { %1529 = vmatpush1.bf16.msra.mxu1 %v6952_v50  ;;  %1493 = vmatprep.subr.bf16.mxu0 %v6963_v54  ;;  %v7033_v50 = vld [vmem:[%s10231_s5 + $0x1e0] ss:$16 sps:$4 sm:$0xff]   ;;  %v7038_v54 = vld [vmem:[%s10231_s5 + $0x1c4] ss:$16 sps:$4 sm:$0xff]  }
  0xa6   :  { %1530 = vmatprep.subr.bf16.mxu1 %v6960_v53  ;;  %v7095_v53 = vld [vmem:[%s10231_s5 + $0x244] ss:$16 sps:$4 sm:$0xff]  }
  0xa8   :  { %1494 = vmatpush2.bf16.msra.mxu0 %v6961_v56  ;;  %v7099_v56 = vld [vmem:[%s10231_s5 + $0x220] ss:$16 sps:$4 sm:$0xff]  }
  0xa9   :  { %1531 = vmatpush1.bf16.msra.mxu1 %v6958_v55  ;;  %1495 = vmatprep.subr.bf16.mxu0 %v6969_v58  ;;  %v7036_v55 = vld [vmem:[%s10231_s5 + $0x1c0] ss:$16 sps:$4 sm:$0xff]   ;;  %v7041_v58 = vld [vmem:[%s10231_s5 + $0x1a4] ss:$16 sps:$4 sm:$0xff]  }
  0xaa   :  { %1532 = vmatprep.subr.bf16.mxu1 %v6966_v57  ;;  %v7101_v57 = vld [vmem:[%s10231_s5 + $0x224] ss:$16 sps:$4 sm:$0xff]  }
  0xac   :  { %1496 = vmatpush2.bf16.msra.mxu0 %v6967_v60  ;;  %v7105_v60 = vld [vmem:[%s10231_s5 + $0x200] ss:$16 sps:$4 sm:$0xff]  }
  0xad   :  { %1533 = vmatpush2.bf16.msra.mxu1 %v6964_v59  ;;  %1497 = vmatprep.subr.bf16.mxu0 %v6975_v62  ;;  %v7039_v59 = vld [vmem:[%s10231_s5 + $0x1a0] ss:$16 sps:$4 sm:$0xff]   ;;  %v7044_v62 = vld [vmem:[%s10231_s5 + $0x184] ss:$16 sps:$4 sm:$0xff]  }
  0xae   :  { %1534 = vmatprep.subr.bf16.mxu1 %v6972_v61  ;;  %v7107_v61 = vld [vmem:[%s10231_s5 + $0x204] ss:$16 sps:$4 sm:$0xff]  }
  0xb0   :  { %1498 = vmatpush2.bf16.msra.mxu0 %v6973_v0  ;;  %v7111_v0 = vld [vmem:[%s10231_s5 + $0x3e0] ss:$16 sps:$4 sm:$0xff]  }
  0xb1   :  { %1535 = vmatpush2.bf16.msra.mxu1 %v6970_v63  ;;  %1499 = vmatprep.subr.bf16.mxu0 %v6981_v2  ;;  %v7042_v63 = vld [vmem:[%s10231_s5 + $0x180] ss:$16 sps:$4 sm:$0xff]   ;;  %v7047_v2 = vld [vmem:[%s10231_s5 + $0x164] ss:$16 sps:$4 sm:$0xff]  }
  0xb2   :  { %1536 = vmatprep.subr.bf16.mxu1 %v6978_v1  ;;  %v7113_v1 = vld [vmem:[%s10231_s5 + $0x3e4] ss:$16 sps:$4 sm:$0xff]  }
  0xb4   :  { %1500 = vmatpush2.bf16.msra.mxu0 %v6979_v4  ;;  %v7117_v4 = vld [vmem:[%s10231_s5 + $0x3c0] ss:$16 sps:$4 sm:$0xff]  }
  0xb5   :  { %1537 = vmatpush2.bf16.msra.mxu1 %v6976_v3  ;;  %1501 = vmatprep.subr.bf16.mxu0 %v6987_v6  ;;  %v7045_v3 = vld [vmem:[%s10231_s5 + $0x160] ss:$16 sps:$4 sm:$0xff]   ;;  %v7050_v6 = vld [vmem:[%s10231_s5 + $0x144] ss:$16 sps:$4 sm:$0xff]  }
  0xb6   :  { %1538 = vmatprep.subr.bf16.mxu1 %v6984_v5  ;;  %v7119_v5 = vld [vmem:[%s10231_s5 + $0x3c4] ss:$16 sps:$4 sm:$0xff]  }
  0xb8   :  { %1502 = vmatpush2.bf16.msra.mxu0 %v6985_v10  ;;  %v7123_v10 = vld [vmem:[%s10231_s5 + $0x3a0] ss:$16 sps:$4 sm:$0xff]  }
  0xb9   :  { %1539 = vmatpush2.bf16.msra.mxu1 %v6982_v7  ;;  %1503 = vmatprep.subr.bf16.mxu0 %v6993_v12  ;;  %v7048_v7 = vld [vmem:[%s10231_s5 + $0x140] ss:$16 sps:$4 sm:$0xff]   ;;  %v7053_v12 = vld [vmem:[%s10231_s5 + $0x124] ss:$16 sps:$4 sm:$0xff]  }
  0xba   :  { %1540 = vmatprep.subr.bf16.mxu1 %v6990_v11  ;;  %v7125_v11 = vld [vmem:[%s10231_s5 + $0x3a4] ss:$16 sps:$4 sm:$0xff]  }
  0xbc   :  { %1504 = vmatpush2.bf16.msra.mxu0 %v6991_v14  ;;  %v7129_v14 = vld [vmem:[%s10231_s5 + $0x380] ss:$16 sps:$4 sm:$0xff]  }
  0xbd   :  { %1541 = vmatpush2.bf16.msra.mxu1 %v6988_v13  ;;  %1505 = vmatprep.subr.bf16.mxu0 %v6999_v17  ;;  %v7051_v13 = vld [vmem:[%s10231_s5 + $0x120] ss:$16 sps:$4 sm:$0xff]   ;;  %v7056_v17 = vld [vmem:[%s10231_s5 + $0x104] ss:$16 sps:$4 sm:$0xff]  }
  0xbe   :  { %1542 = vmatprep.subr.bf16.mxu1 %v6996_v15  ;;  %v7131_v15 = vld [vmem:[%s10231_s5 + $0x384] ss:$16 sps:$4 sm:$0xff]  }
  0xc0   :  { %1506 = vmatpush2.bf16.msra.mxu0 %v6997_v21 }
  0xc1   :  { %1543 = vmatpush2.bf16.msra.mxu1 %v6994_v18  ;;  %1571 = vmatprep.subr.bf16.mxu0 %v7005_v23  ;;  %v7054_v18 = vld [vmem:[%s10231_s5 + $0x100] ss:$16 sps:$4 sm:$0xff]   ;;  %v7137_v23 = vld [vmem:[%s10231_s5 + $0x364] ss:$16 sps:$4 sm:$0xff]  }
  0xc2   :  { %1544 = vmatprep.subr.bf16.mxu1 %v7002_v22 }
  0xc3   :  { %1508 = vmatmul.mubr.bf16.vlgmr.msra.gmra.mxu0 %v8108_v9  ;;  %v7017_v9 = vld [vmem:[%s10231_s5 + $0xa4] ss:$16 sps:$4 sm:$0xff]  }
  0xc4   :  { %1572 = vmatpush1.bf16.msra.mxu0 %v7003_v25  ;;  %1589 = vmatprep.mubr.bf16.mxu0 %v7800_v16 }
  0xc5   :  { %1545 = vmatpush2.bf16.msra.mxu1 %v7000_v24  ;;  %2396 = vmatprep.subr.bf16.mxu0 %v7011_v27  ;;  %v7135_v27 = vld [vmem:[%s10231_s5 + $0x360] ss:$16 sps:$4 sm:$0xff]  }
  0xc6   :  { %1546 = vmatprep.subr.bf16.mxu1 %v7008_v26  ;;  %v7059_v26 = vld [vmem:[%s10231_s5 + $0xec] ss:$16 sps:$4 sm:$0xff]  }
  0xc9   :  { %1547 = vmatpush2.bf16.msra.mxu1 %v7006_v28 }
  0xca   :  { %2437 = vmatprep.subr.bf16.mxu1 %v7065_v33  ;;  %v7147_v33 = vld [vmem:[%s10231_s5 + $0x320] ss:$16 sps:$4 sm:$0xff]  }
  0xcb   :  { %6097 = vmatmul.mubr.msk.bf16.vlgmr.msra.gmra.mxu0 %vm1266_vm0, %v8137_v19  ;;  %v7018_v19 = vld [vmem:[%s10231_s5 + $0x80] ss:$16 sps:$4 sm:$0xff]  }
  0xcc   :  { %1549 = vmatmul.mubr.bf16.vlgmr.msra.gmra.mxu1 %v8319_v20  ;;  %2397 = vmatpush1.bf16.msra.mxu0 %v7009_v29  ;;  %v7063_v20 = vld [vmem:[%s10231_s5 + $0x2e0] ss:$16 sps:$4 sm:$0xff]  }
  0xcd   :  { %2398 = vmatprep.subr.bf16.mxu0 %v7014_v30  ;;  %2438 = vmatpush1.bf16.msra.mxu1 %v7063_v20  ;;  %v7143_v30 = vld [vmem:[%s10231_s5 + $0x344] ss:$16 sps:$4 sm:$0xff]  }
  0xce   :  { %2439 = vmatprep.subr.bf16.mxu1 %v7071_v37  ;;  %v7150_v37 = vld [vmem:[%s10231_s5 + $0x300] ss:$16 sps:$4 sm:$0xff]  }
  0xd0   :  { %2399 = vmatpush1.bf16.msra.mxu0 %v7012_v31 }
  0xd1   :  { %2400 = vmatprep.subr.bf16.mxu0 %v7017_v9  ;;  %2440 = vmatpush1.bf16.msra.mxu1 %v7069_v8 }
  0xd2   :  { %2441 = vmatprep.subr.bf16.mxu1 %v7077_v40  ;;  %v8734_v40 = vld [vmem:[%s10230_s4] sm:$0xf] }
  0xd4   :  { %2401 = vmatpush1.bf16.msra.mxu0 %v7015_v32  ;;  %v7141_v32 = vld [vmem:[%s10231_s5 + $0x340] ss:$16 sps:$4 sm:$0xff]  }
  0xd5   :  { %2402 = vmatprep.subr.bf16.mxu0 %v7020_v52  ;;  %2442 = vmatpush1.bf16.msra.mxu1 %v7075_v36 }
  0xd6   :  { %2443 = vmatprep.subr.bf16.mxu1 %v7083_v44 }
  0xd8   :  { %2403 = vmatpush1.bf16.msra.mxu0 %v7018_v19  ;;  %v7149_v19 = vld [vmem:[%s10231_s5 + $0x324] ss:$16 sps:$4 sm:$0xff]  }
  0xd9   :  { %2404 = vmatprep.subr.bf16.mxu0 %v7023_v34  ;;  %2444 = vmatpush1.bf16.msra.mxu1 %v7081_v43 }
  0xda   :  { %2445 = vmatprep.subr.bf16.mxu1 %v7089_v48 }
  0xdc   :  { %2405 = vmatpush1.bf16.msra.mxu0 %v7021_v35  ;;  %v7152_v35 = vld [vmem:[%s10231_s5 + $0x304] ss:$16 sps:$4 sm:$0xff]  }
  0xdd   :  { %2406 = vmatprep.subr.bf16.mxu0 %v7026_v38  ;;  %2446 = vmatpush1.bf16.msra.mxu1 %v7087_v47  ;;  %v7155_v38 = vld [vmem:[%s10231_s5 + $0x2ec] ss:$16 sps:$4 sm:$0xff]  }
  0xde   :  { %2447 = vmatprep.subr.bf16.mxu1 %v7095_v53 }
  0xe0   :  { %2407 = vmatpush1.bf16.msra.mxu0 %v7024_v39  ;;  %v266_v39 = vlaneseq }
  0xe1   :  { %2408 = vmatprep.subr.bf16.mxu0 %v7029_v41  ;;  %2448 = vmatpush1.bf16.msra.mxu1 %v7093_v51 }
  0xe2   :  { %2449 = vmatprep.subr.bf16.mxu1 %v7101_v57  ;;  %v8729_v36 = vshrl.u32 %v266_v39, 7 }
  0xe4   :  { %2409 = vmatpush1.bf16.msra.mxu0 %v7027_v42  ;;  %v8737_v41 = vsub.s32 0, %v8729_v36  ;;  %v8740_v42 = vsub.s32 1, %v8729_v36 }
  0xe5   :  { %2410 = vmatprep.subr.bf16.mxu0 %v7032_v45  ;;  %2450 = vmatpush1.bf16.msra.mxu1 %v7099_v56 }
  0xe6   :  { %2451 = vmatprep.subr.bf16.mxu1 %v7107_v61  ;;  %v269_v43 = vrot.slane %v8734_v40, %v8737_v41  ;;  %v273_v44 = vrot.slane %v8734_v40, %v8740_v42 }
  0xe8   :  { %2411 = vmatpush1.bf16.msra.mxu0 %v7030_v46 }
  0xe9   :  { %2412 = vmatprep.subr.bf16.mxu0 %v7035_v49  ;;  %2452 = vmatpush1.bf16.msra.mxu1 %v7105_v60 }
  0xea   :  { %2453 = vmatprep.subr.bf16.mxu1 %v7113_v1 }
  0xec   :  { %2413 = vmatpush2.bf16.msra.mxu0 %v7033_v50 }
  0xed   :  { %2414 = vmatprep.subr.bf16.mxu0 %v7038_v54  ;;  %2454 = vmatpush2.bf16.msra.mxu1 %v7111_v0 }
  0xee   :  { %2455 = vmatprep.subr.bf16.mxu1 %v7119_v5 }
  0xf0   :  { %2415 = vmatpush2.bf16.msra.mxu0 %v7036_v55 }
  0xf1   :  { %2416 = vmatprep.subr.bf16.mxu0 %v7041_v58  ;;  %2456 = vmatpush2.bf16.msra.mxu1 %v7117_v4  ;;  %v7068_v4 = vld [vmem:[%s10231_s5 + $0xac] ss:$16 sps:$4 sm:$0xff]  }
  0xf2   :  { %2457 = vmatprep.subr.bf16.mxu1 %v7125_v11  ;;  %v7080_v11 = vld [vmem:[%s10231_s5 + $0x6c] ss:$16 sps:$4 sm:$0xff]  }
  0xf4   :  { %2417 = vmatpush2.bf16.msra.mxu0 %v7039_v59 }
  0xf5   :  { %2418 = vmatprep.subr.bf16.mxu0 %v7044_v62  ;;  %2458 = vmatpush2.bf16.msra.mxu1 %v7123_v10  ;;  %v7057_v62 = vld [vmem:[%s10231_s5 + $0xe8] ss:$16 sps:$4 sm:$0xff]  }
  0xf6   :  { %2459 = vmatprep.subr.bf16.mxu1 %v7131_v15  ;;  %v7072_v10 = vld [vmem:[%s10231_s5 + $0x88] ss:$16 sps:$4 sm:$0xff]   ;;  %v7092_v15 = vld [vmem:[%s10231_s5 + $0x2c] ss:$16 sps:$4 sm:$0xff]  }
  0xf8   :  { %2419 = vmatpush2.bf16.msra.mxu0 %v7042_v63  ;;  %v7062_v63 = vld [vmem:[%s10231_s5 + $0xcc] ss:$16 sps:$4 sm:$0xff]  }
  0xf9   :  { %2420 = vmatprep.subr.bf16.mxu0 %v7047_v2  ;;  %2460 = vmatpush2.bf16.msra.mxu1 %v7129_v14  ;;  %v7084_v14 = vld [vmem:[%s10231_s5 + $0x48] ss:$16 sps:$4 sm:$0xff]  }
  0xfa   :  { %2461 = vmatprep.subr.bf16.mxu1 %v7137_v23  ;;  %v7102_v23 = vld [vmem:[%s10231_s5 + $0x1e8] ss:$16 sps:$4 sm:$0xff]  }
  0xfc   :  { %2421 = vmatpush2.bf16.msra.mxu0 %v7045_v3  ;;  %v7060_v3 = vld [vmem:[%s10231_s5 + $0xc8] ss:$16 sps:$4 sm:$0xff]  }
  0xfd   :  { %2422 = vmatprep.subr.bf16.mxu0 %v7050_v6  ;;  %2462 = vmatpush2.bf16.msra.mxu1 %v7135_v27  ;;  %v7066_v6 = vld [vmem:[%s10231_s5 + $0xa8] ss:$16 sps:$4 sm:$0xff]  }
  0xfe   :  { %2463 = vmatprep.subr.bf16.mxu1 %v7143_v30 }
 0x100   :  { %2423 = vmatpush2.bf16.msra.mxu0 %v7048_v7  ;;  %v7074_v7 = vld [vmem:[%s10231_s5 + $0x8c] ss:$16 sps:$4 sm:$0xff]  }
 0x101   :  { %2424 = vmatprep.subr.bf16.mxu0 %v7053_v12  ;;  %2464 = vmatpush2.bf16.msra.mxu1 %v7141_v32  ;;  %v7078_v12 = vld [vmem:[%s10231_s5 + $0x68] ss:$16 sps:$4 sm:$0xff]  }
 0x102   :  { %2465 = vmatprep.subr.bf16.mxu1 %v7149_v19 }
 0x103   :  { %v1304_v21 = vpop.f32.mrf.mxu0 }
 0x104   :  { %v1345_v22 = vpop.f32.mrf.mxu1  ;;  %2425 = vmatpush2.bf16.msra.mxu0 %v7051_v13  ;;  %v1305_v45 = vadd.f32 %v1304_v21, %v269_v43  ;;  %v7086_v13 = vld [vmem:[%s10231_s5 + $0x4c] ss:$16 sps:$4 sm:$0xff]   ;;  %v7096_v21 = vld [vmem:[%s10231_s5 + $0x8] ss:$16 sps:$4 sm:$0xff]  }
 0x105   :  { %v1306_v24 = vpop.f32.mrf.mxu0  ;;  %2426 = vmatprep.subr.bf16.mxu0 %v7056_v17  ;;  %2466 = vmatpush2.bf16.msra.mxu1 %v7147_v33  ;;  %v7090_v17 = vld [vmem:[%s10231_s5 + $0x28] ss:$16 sps:$4 sm:$0xff]  }
 0x106   :  { %v1347_v25 = vpop.f32.mrf.mxu1  ;;  %2467 = vmatprep.subr.bf16.mxu1 %v7152_v35  ;;  %v1307_v46 = vadd.f32 %v1306_v24, %v273_v44  ;;  %v1346_v47 = vadd.f32 %v1345_v22, %v1305_v45  ;;  %v7104_v22 = vld [vmem:[%s10231_s5 + $0x1ec] ss:$16 sps:$4 sm:$0xff]  }
 0x107   :  { %v1308_v28 = vpop.f32.mrf.mxu0  ;;  %v7110_v24 = vld [vmem:[%s10231_s5 + $0x1cc] ss:$16 sps:$4 sm:$0xff]  }
 0x108   :  { %v1349_v29 = vpop.f32.mrf.mxu1  ;;  %2427 = vmatpush2.bf16.msra.mxu0 %v7054_v18  ;;  %v1348_v49 = vadd.f32 %v1347_v25, %v1307_v46  ;;  %v7098_v18 = vld [vmem:[%s10231_s5 + $0xc] ss:$16 sps:$4 sm:$0xff]   ;;  %v7108_v25 = vld [vmem:[%s10231_s5 + $0x1c8] ss:$16 sps:$4 sm:$0xff]  }
 0x109   :  { %v1309_v31 = vpop.f32.mrf.mxu0  ;;  %2478 = vmatprep.subr.bf16.mxu0 %v7059_v26  ;;  %2468 = vmatpush2.bf16.msra.mxu1 %v7150_v37 }
 0x10a   :  { %v1350_v9 = vpop.f32.mrf.mxu1  ;;  %2519 = vmatprep.subr.bf16.mxu1 %v7155_v38 }
 0x10c   :  { %v1427_v52 = vpop.f32.mrf.mxu1 }
 0x10e   :  { %v1429_v20 = vpop.f32.mrf.mxu1 }
 0x110   :  { %v1431_v34 = vpop.f32.mrf.mxu1 }
 0x112   :  { %v1432_v8 = vpop.f32.mrf.mxu1 }
 0x143   :  { %v1386_v48 = vpop.f32.mrf.mxu0 }
 0x144   :  { %v1387_v50 = vadd.f32 %v1386_v48, %v1346_v47 }
 0x145   :  { %v1388_v51 = vpop.f32.mrf.mxu0 }
 0x146   :  { %v1428_v53 = vadd.f32 %v1427_v52, %v1387_v50  ;;  %v1389_v54 = vadd.f32 %v1388_v51, %v1348_v49 }
 0x147   :  { %v1390_v55 = vpop.f32.mrf.mxu0 }
 0x148   :  { %v1430_v56 = vadd.f32 %v1429_v20, %v1389_v54  ;;  %v1598_v57 = vmax.f32 %v1428_v53, 0.0 }
 0x149   :  { %v1391_v58 = vpop.f32.mrf.mxu0 }
 0x14a   :  { %v1599_v59 = vmax.f32 %v1430_v56, 0.0  ;;  %v8754_v0 = vpack.c.bf16 %v1598_v57, %v1598_v57 }
 0x14c   :  { %v8746_v60 = vpop.f32.mrf.mxu1  ;;  %v1603_v61 = vpack.c.bf16 %v1599_v59, %v1599_v59 }
 0x14e   :  { %v8756_v1 = vpop.f32.mrf.mxu1  ;;  %2428 = vmatprep.mubr.bf16.mxu0 %v1603_v61 }
 0x14f   :  { %2429 = vmatmul.mubr.bf16.vlgmr.msra.gmra.mxu0 %v8754_v0 }
 0x150   :  { %v1472_v2 = vpop.f32.mrf.mxu1  ;;  %2479 = vmatpush1.bf16.msra.mxu0 %v7057_v62  ;;  %2510 = vmatprep.mubr.bf16.mxu0 %v1603_v61 }
 0x151   :  { %2480 = vmatprep.subr.bf16.mxu0 %v7062_v63 }
 0x152   :  { %v1473_v5 = vpop.f32.mrf.mxu1 }
 0x154   :  { %2481 = vmatpush1.bf16.msra.mxu0 %v7060_v3 }
 0x155   :  { %2482 = vmatprep.subr.bf16.mxu0 %v7068_v4 }
 0x158   :  { %2483 = vmatpush1.bf16.msra.mxu0 %v7066_v6 }
 0x159   :  { %2484 = vmatprep.subr.bf16.mxu0 %v7074_v7 }
 0x15c   :  { %2485 = vmatpush1.bf16.msra.mxu0 %v7072_v10 }
 0x15d   :  { %2486 = vmatprep.subr.bf16.mxu0 %v7080_v11 }
 0x160   :  { %2487 = vmatpush1.bf16.msra.mxu0 %v7078_v12 }
 0x161   :  { %2488 = vmatprep.subr.bf16.mxu0 %v7086_v13 }
 0x164   :  { %2489 = vmatpush1.bf16.msra.mxu0 %v7084_v14 }
 0x165   :  { %2490 = vmatprep.subr.bf16.mxu0 %v7092_v15 }
 0x168   :  { %2491 = vmatpush1.bf16.msra.mxu0 %v7090_v17 }
 0x169   :  { %2492 = vmatprep.subr.bf16.mxu0 %v7098_v18 }
 0x16c   :  { %2493 = vmatpush1.bf16.msra.mxu0 %v7096_v21 }
 0x16d   :  { %2494 = vmatprep.subr.bf16.mxu0 %v7104_v22 }
 0x170   :  { %2495 = vmatpush2.bf16.msra.mxu0 %v7102_v23 }
 0x171   :  { %22 = vsyncpa [#allocation3], 0  ;;  %2496 = vmatprep.subr.bf16.mxu0 %v7110_v24  ;;  %v7116_v26 = vld [vmem:[%s10231_s5 + $0x1ac] ss:$16 sps:$4 sm:$0xff]   ;;  %v7114_v27 = vld [vmem:[%s10231_s5 + $0x1a8] ss:$16 sps:$4 sm:$0xff]  }
 0x172   :  { %v7122_v28 = vld [vmem:[%s10231_s5 + $0x18c] ss:$16 sps:$4 sm:$0xff]   ;;  %v7120_v29 = vld [vmem:[%s10231_s5 + $0x188] ss:$16 sps:$4 sm:$0xff]   ;;  %v8832_v32 = vsub.s32 2, %v8729_v36  ;;  %v8841_v20 = vsub.s32 3, %v8729_v36 }
 0x173   :  { %v7128_v30 = vld [vmem:[%s10231_s5 + $0x16c] ss:$16 sps:$4 sm:$0xff]   ;;  %v7126_v31 = vld [vmem:[%s10231_s5 + $0x168] ss:$16 sps:$4 sm:$0xff]   ;;  %v7203_v5 = vld [vmem:[%s10233_s7 + $0x70] sm:$0xff]   ;;  %s7801_s4 = smov 4  }
 0x174   :  { %2497 = vmatpush2.bf16.msra.mxu0 %v7108_v25  ;;  %v7134_v9 = vld [vmem:[%s10231_s5 + $0x14c] ss:$16 sps:$4 sm:$0xff]   ;;  %v7132_v52 = vld [vmem:[%s10231_s5 + $0x148] ss:$16 sps:$4 sm:$0xff]   ;;  %v277_v34 = vrot.slane %v8734_v40, %v8832_v32  ;;  %v281_v38 = vrot.slane %v8734_v40, %v8841_v20  ;;  %v7204_v10 = vld [vmem:[%s10233_s7 + $0x30] sm:$0xff]   ;;  %vm2983_vm1 = vcmask 1041408  }
 0x175   :  { %2498 = vmatprep.subr.bf16.mxu0 %v7116_v26  ;;  %v7140_v19 = vld [vmem:[%s10231_s5 + $0x12c] ss:$16 sps:$4 sm:$0xff]   ;;  %v7138_v35 = vld [vmem:[%s10231_s5 + $0x128] ss:$16 sps:$4 sm:$0xff]   ;;  %v7207_v15 = vld [vmem:[%s10233_s7 + $0x60] sm:$0xff]   ;;  %s7803_s30 = smov 124  }
 0x176   :  { %v7146_v37 = vld [vmem:[%s10231_s5 + $0x10c] ss:$16 sps:$4 sm:$0xff]   ;;  %v1469_v43 = vadd.f32 %v8746_v60, %v277_v34  ;;  %v7144_v44 = vld [vmem:[%s10231_s5 + $0x108] ss:$16 sps:$4 sm:$0xff]   ;;  %v1471_v46 = vadd.f32 %v8756_v1, %v281_v38  ;;  %v7208_v21 = vld [vmem:[%s10233_s7 + $0x20] sm:$0xff]   ;;  %vm2936_vm4 = vcmask 31744  }
 0x177   :  { %v7153_v1 = vld [vmem:[%s10231_s5 + $0x2e8] ss:$16 sps:$4 sm:$0xff]   ;;  %v7158_v3 = vld [vmem:[%s10231_s5 + $0x2cc] ss:$16 sps:$4 sm:$0xff]  }
 0x178   :  { %2499 = vmatpush2.bf16.msra.mxu0 %v7114_v27  ;;  %v7202_v4 = vld [vmem:[%s10233_s7 + $0x38] sm:$0xff]   ;;  %v7205_v11 = vld [vmem:[%s10233_s7 + $0x68] sm:$0xff]  }
 0x179   :  { %2500 = vmatprep.subr.bf16.mxu0 %v7122_v28  ;;  %v7156_v6 = vld [vmem:[%s10231_s5 + $0x2c8] ss:$16 sps:$4 sm:$0xff]   ;;  %v7161_v7 = vld [vmem:[%s10231_s5 + $0x2ac] ss:$16 sps:$4 sm:$0xff]  }
 0x17a   :  { %v7159_v12 = vld [vmem:[%s10231_s5 + $0x2a8] ss:$16 sps:$4 sm:$0xff]   ;;  %v7164_v13 = vld [vmem:[%s10231_s5 + $0x28c] ss:$16 sps:$4 sm:$0xff]  }
 0x17b   :  { %v7206_v14 = vld [vmem:[%s10233_s7 + $0x28] sm:$0xff]  }
 0x17c   :  { %2501 = vmatpush2.bf16.msra.mxu0 %v7120_v29  ;;  %v7162_v17 = vld [vmem:[%s10231_s5 + $0x288] ss:$16 sps:$4 sm:$0xff]   ;;  %v7167_v18 = vld [vmem:[%s10231_s5 + $0x26c] ss:$16 sps:$4 sm:$0xff]  }
 0x17d   :  { %2502 = vmatprep.subr.bf16.mxu0 %v7128_v30  ;;  %v7165_v22 = vld [vmem:[%s10231_s5 + $0x268] ss:$16 sps:$4 sm:$0xff]   ;;  %v7170_v23 = vld [vmem:[%s10231_s5 + $0x24c] ss:$16 sps:$4 sm:$0xff]  }
 0x17e   :  { %v7168_v24 = vld [vmem:[%s10231_s5 + $0x248] ss:$16 sps:$4 sm:$0xff]   ;;  %v7173_v25 = vld [vmem:[%s10231_s5 + $0x22c] ss:$16 sps:$4 sm:$0xff]  }
 0x17f   :  { %v7171_v26 = vld [vmem:[%s10231_s5 + $0x228] ss:$16 sps:$4 sm:$0xff]   ;;  %v7176_v27 = vld [vmem:[%s10231_s5 + $0x20c] ss:$16 sps:$4 sm:$0xff]  }
 0x180   :  { %2503 = vmatpush2.bf16.msra.mxu0 %v7126_v31  ;;  %v7174_v28 = vld [vmem:[%s10231_s5 + $0x208] ss:$16 sps:$4 sm:$0xff]   ;;  %v7179_v29 = vld [vmem:[%s10231_s5 + $0x3ec] ss:$16 sps:$4 sm:$0xff]  }
 0x181   :  { %2504 = vmatprep.subr.bf16.mxu0 %v7134_v9  ;;  %v7177_v30 = vld [vmem:[%s10231_s5 + $0x3e8] ss:$16 sps:$4 sm:$0xff]   ;;  %v7182_v31 = vld [vmem:[%s10231_s5 + $0x3cc] ss:$16 sps:$4 sm:$0xff]  }
 0x182   :  { %v7180_v9 = vld [vmem:[%s10231_s5 + $0x3c8] ss:$16 sps:$4 sm:$0xff]  }
 0x183   :  { %v1509_v33 = vpop.f32.mrf.mxu0  ;;  %v7186_v34 = vld [vmem:[%s10231_s5 + $0x388] ss:$16 sps:$4 sm:$0xff]  }
 0x184   :  { %2505 = vmatpush2.bf16.msra.mxu0 %v7132_v52  ;;  %v1510_v47 = vadd.f32 %v1509_v33, %v1469_v43  ;;  %v7185_v52 = vld [vmem:[%s10231_s5 + $0x3ac] ss:$16 sps:$4 sm:$0xff]   ;;  %v7192_v38 = vld [vmem:[%s10231_s5 + $0x348] ss:$16 sps:$4 sm:$0xff]  }
 0x185   :  { %v1511_v8 = vpop.f32.mrf.mxu0  ;;  %2506 = vmatprep.subr.bf16.mxu0 %v7140_v19  ;;  %v7183_v19 = vld [vmem:[%s10231_s5 + $0x3a8] ss:$16 sps:$4 sm:$0xff]   ;;  %v7188_v33 = vld [vmem:[%s10231_s5 + $0x38c] ss:$16 sps:$4 sm:$0xff]  }
 0x186   :  { %v1512_v50 = vadd.f32 %v1511_v8, %v1471_v46  ;;  %v7189_v8 = vld [vmem:[%s10231_s5 + $0x368] ss:$16 sps:$4 sm:$0xff]  }
 0x187   :  { %v1513_v39 = vpop.f32.mrf.mxu0  ;;  %v7195_v43 = vld [vmem:[%s10231_s5 + $0x328] ss:$16 sps:$4 sm:$0xff]  }
 0x188   :  { %2507 = vmatpush2.bf16.msra.mxu0 %v7138_v35  ;;  %v7191_v35 = vld [vmem:[%s10231_s5 + $0x36c] ss:$16 sps:$4 sm:$0xff]  }
 0x189   :  { %v1514_v45 = vpop.f32.mrf.mxu0  ;;  %2508 = vmatprep.subr.bf16.mxu0 %v7146_v37  ;;  %v7194_v37 = vld [vmem:[%s10231_s5 + $0x34c] ss:$16 sps:$4 sm:$0xff]  }
 0x18a   :  { %v7197_v39 = vld [vmem:[%s10231_s5 + $0x32c] ss:$16 sps:$4 sm:$0xff]   ;;  %v7198_v45 = vld [vmem:[%s10231_s5 + $0x308] ss:$16 sps:$4 sm:$0xff]  }
 0x18b   :  { %v1591_v49 = vpop.f32.mrf.mxu0  ;;  %v7209_v46 = vld [vmem:[%s10233_s7 + $0x58] sm:$0xff]  }
 0x18c   :  { %v1550_v48 = vpop.f32.mrf.mxu1  ;;  %2509 = vmatpush2.bf16.msra.mxu0 %v7144_v44  ;;  %v7200_v44 = vld [vmem:[%s10231_s5 + $0x30c] ss:$16 sps:$4 sm:$0xff]  }
 0x18d   :  { %v1551_v51 = vadd.f32 %v1550_v48, %v1510_v47  ;;  %v1593_v40 = vpop.f32.mrf.mxu0  ;;  %v7210_v47 = vld [vmem:[%s10233_s7 + $0x18] sm:$0xff]   ;;  %v7211_v48 = vld [vmem:[%s10233_s7 + $0x50] sm:$0xff]  }
 0x18e   :  { %v1552_v53 = vpop.f32.mrf.mxu1 }
 0x18f   :  { %v1592_v54 = vadd.f32 %v1591_v49, %v1551_v51  ;;  %v1553_v55 = vadd.f32 %v1552_v53, %v1512_v50  ;;  %2511 = vmatmul.mubr.bf16.vlgmr.msra.gmra.mxu0 %v8754_v0  ;;  %v1595_v57 = vpop.f32.mrf.mxu0  ;;  %v7201_v0 = vld [vmem:[%s10233_s7 + $0x78] sm:$0xff]   ;;  %v7212_v49 = vld [vmem:[%s10233_s7 + $0x10] sm:$0xff]   ;;  %v7213_v50 = vld [vmem:[%s10233_s7 + $0x48] sm:$0xff]  }
 0x190   :  { %v1554_v56 = vpop.f32.mrf.mxu1  ;;  %6622 = vmatprep.subr.bf16.mxu0 %v7201_v0  ;;  %v7214_v51 = vld [vmem:[%s10233_s7 + $0x8] sm:$0xff]   ;;  %v7215_v53 = vld [vmem:[%s10233_s7 + $0x40] sm:$0xff]   ;;  %v7220_v57 = vld [vmem:[%s10233_s7 + $0xb0] sm:$0xff]  }
 0x191   :  { %v1594_v58 = vadd.f32 %v1593_v40, %v1553_v55  ;;  %v1600_v59 = vmax.f32 %v1592_v54, 0.0  ;;  %v1596_v61 = vpop.f32.mrf.mxu0  ;;  %6623 = vmatpush3.bf16.msra.mxu0 %v7202_v4  ;;  %v7216_v40 = vld [vmem:[%s10233_s7] sm:$0xff]   ;;  %v7217_v54 = vld [vmem:[%s10233_s7 + $0xf8] sm:$0xff]   ;;  %v7219_v56 = vld [vmem:[%s10233_s7 + $0xf0] sm:$0xff]  }
 0x192   :  { %v1555_v60 = vpop.f32.mrf.mxu1  ;;  %6624 = vmatprep.subr.bf16.mxu0 %v7203_v5  ;;  %v7218_v55 = vld [vmem:[%s10233_s7 + $0xb8] sm:$0xff]   ;;  %v7224_v61 = vld [vmem:[%s10233_s7 + $0xa0] sm:$0xff]  }
 0x193   :  { %v1601_v62 = vmax.f32 %v1594_v58, 0.0  ;;  %v8862_v2 = vpack.c.bf16 %v1600_v59, %v1600_v59  ;;  %v7221_v58 = vld [vmem:[%s10233_s7 + $0xe8] sm:$0xff]   ;;  %v7223_v60 = vld [vmem:[%s10233_s7 + $0xe0] sm:$0xff]  }
 0x194   :  { %v7222_v59 = vld [vmem:[%s10233_s7 + $0xa8] sm:$0xff]  }
 0x195   :  { %v1605_v63 = vpack.c.bf16 %v1601_v62, %v1601_v62  ;;  %6625 = vmatpush3.bf16.msra.mxu0 %v7204_v10  ;;  %v7225_v62 = vld [vmem:[%s10233_s7 + $0xd8] sm:$0xff]   ;;  %v7231_v10 = vld [vmem:[%s10233_s7 + $0xc0] sm:$0xff]  }
 0x196   :  { %6626 = vmatprep.subr.bf16.mxu0 %v7205_v11  ;;  %v7232_v11 = vld [vmem:[%s10233_s7 + $0x80] sm:$0xff]  }
 0x197   :  { %2469 = vmatprep.mubr.bf16.mxu1 %v1605_v63 }
 0x198   :  { %2470 = vmatmul.mubr.bf16.vlgmr.msra.gmra.mxu1 %v8862_v2 }
 0x199   :  { %2520 = vmatpush1.bf16.msra.mxu1 %v7153_v1  ;;  %2551 = vmatprep.mubr.bf16.mxu1 %v1605_v63  ;;  %v7226_v63 = vld [vmem:[%s10233_s7 + $0x98] sm:$0xff]   ;;  %v7227_v1 = vld [vmem:[%s10233_s7 + $0xd0] sm:$0xff]  }
 0x19a   :  { %2521 = vmatprep.subr.bf16.mxu1 %v7158_v3  ;;  %6627 = vmatpush3.bf16.msra.mxu0 %v7206_v14 }
 0x19b   :  { %6628 = vmatprep.subr.bf16.mxu0 %v7207_v15 }
 0x19d   :  { %2522 = vmatpush1.bf16.msra.mxu1 %v7156_v6  ;;  %v7229_v6 = vld [vmem:[%s10233_s7 + $0xc8] sm:$0xff]  }
 0x19e   :  { %2523 = vmatprep.subr.bf16.mxu1 %v7161_v7  ;;  %6629 = vmatpush3.bf16.msra.mxu0 %v7208_v21  ;;  %v7230_v7 = vld [vmem:[%s10233_s7 + $0x88] sm:$0xff]  }
 0x19f   :  { %6630 = vmatprep.subr.bf16.mxu0 %v7209_v46 }
 0x1a1   :  { %2524 = vmatpush1.bf16.msra.mxu1 %v7159_v12  ;;  %v2925_v12 = vld [vmem:[%s10227_s1] sm:$0xff] }
 0x1a2   :  { %2525 = vmatprep.subr.bf16.mxu1 %v7164_v13  ;;  %6631 = vmatpush3.bf16.msra.mxu0 %v7210_v47  ;;  %v1734_v13 = vld [vmem:[%s10232_s6] sm:$0xf] }
 0x1a3   :  { %6632 = vmatprep.subr.bf16.mxu0 %v7211_v48  ;;  %2927 = vrot.lane.b32.xlu0 %v2925_v12, %s7801_s4  ;;  %v1743_v21 = vrot.slane %v1734_v13, %v8740_v42 }
 0x1a5   :  { %2526 = vmatpush1.bf16.msra.mxu1 %v7162_v17  ;;  %v1739_v17 = vrot.slane %v1734_v13, %v8737_v41 }
 0x1a6   :  { %2527 = vmatprep.subr.bf16.mxu1 %v7167_v18  ;;  %6633 = vmatpush3.bf16.msra.mxu0 %v7212_v49 }
 0x1a7   :  { %6634 = vmatprep.subr.bf16.mxu0 %v7213_v50  ;;  %v2939_v50 = vld [vmem:[%s10235_s9] sm:$0xff]  ;;  %s7804_s9 = smov [#allocation2]  }
 0x1a8   :  { %s5890_s3 = sshll.u32 %s7804_s9, 4  ;;  %s5891_s3 = int_to_ptr.vmem [resolvable:$true] %s5890_s3 }
 0x1a9   :  { %2528 = vmatpush1.bf16.msra.mxu1 %v7165_v22  ;;  %s7778_s28 = scalar_lea.vmem %s5891_s3, 896  ;;  %p7783_p1 = scmp.lt.s32.totalorder %s5891_s3, %s5891_s3 }
 0x1aa   :  { %2529 = vmatprep.subr.bf16.mxu1 %v7170_v23  ;;  %6635 = vmatpush3.bf16.msra.mxu0 %v7214_v51  ;;  %v7802_v51 = vmov 1983009808   ;;  %p7779_p0 = scmp.ne.s32.totalorder %s5891_s3, %s7778_s28  ;;  %p7784_p2 = scmp.lt.s32.totalorder %s7778_s28, %s7778_s28 }
 0x1ab   :  { %6636 = vmatprep.subr.bf16.mxu0 %v7215_v53  ;;  %v2965_v53 = vunpack.c.l.s4 %v7802_v51  ;;  %v7258_v51 = vld [vmem:[%s10237_s11 + $0x60] ss:$16 sps:$4 sm:$0xff]  }
 0x1ac   :  { %p7785_p3 = por %p7784_p2, %p7783_p1 }
 0x1ad   :  { %2530 = vmatpush1.bf16.msra.mxu1 %v7168_v24 }
 0x1ae   :  { %2531 = vmatprep.subr.bf16.mxu1 %v7173_v25  ;;  %6637 = vmatpush3.bf16.msra.mxu0 %v7216_v40  ;;  %v2966_v40 = vunpack.c.0.s8 %v2965_v53  ;;  %v7261_v53 = vld [vmem:[%s10237_s11 + $0x260] ss:$16 sps:$4 sm:$0xff]   ;;  %p7786_p4 = pnand %p7785_p3, %p7779_p0 }
 0x1b1   :  { %2532 = vmatpush1.bf16.msra.mxu1 %v7171_v26 }
 0x1b2   :  { %2533 = vmatprep.subr.bf16.mxu1 %v7176_v27 }
 0x1b5   :  { %2534 = vmatpush1.bf16.msra.mxu1 %v7174_v28 }
 0x1b6   :  { %2535 = vmatprep.subr.bf16.mxu1 %v7179_v29 }
 0x1b9   :  { %2536 = vmatpush2.bf16.msra.mxu1 %v7177_v30 }
 0x1ba   :  { %2537 = vmatprep.subr.bf16.mxu1 %v7182_v31 }
 0x1bd   :  { %2538 = vmatpush2.bf16.msra.mxu1 %v7180_v9 }
 0x1be   :  { %2539 = vmatprep.subr.bf16.mxu1 %v7185_v52 }
 0x1c1   :  { %2540 = vmatpush2.bf16.msra.mxu1 %v7183_v19 }
 0x1c2   :  { %2541 = vmatprep.subr.bf16.mxu1 %v7188_v33  ;;  %v1747_v33 = vrot.slane %v1734_v13, %v8832_v32 }
 0x1c5   :  { %2542 = vmatpush2.bf16.msra.mxu1 %v7186_v34  ;;  %v1751_v34 = vrot.slane %v1734_v13, %v8841_v20 }
 0x1c6   :  { %2543 = vmatprep.subr.bf16.mxu1 %v7191_v35 }
 0x1c9   :  { %2544 = vmatpush2.bf16.msra.mxu1 %v7189_v8 }
 0x1ca   :  { %2545 = vmatprep.subr.bf16.mxu1 %v7194_v37 }
 0x1cd   :  { %2546 = vmatpush2.bf16.msra.mxu1 %v7192_v38 }
 0x1ce   :  { %2547 = vmatprep.subr.bf16.mxu1 %v7197_v39 }
 0x1d1   :  { %2548 = vmatpush2.bf16.msra.mxu1 %v7195_v43 }
 0x1d2   :  { %2549 = vmatprep.subr.bf16.mxu1 %v7200_v44 }
 0x1d5   :  { %2550 = vmatpush2.bf16.msra.mxu1 %v7198_v45 }
 0x1d6   :  { %6644 = vmatprep.subr.bf16.mxu1 %v7217_v54  ;;  %v2963_v54 = vcombine.high %v2939_v50, %v2939_v50 }
 0x1d8   :  { %2552 = vmatmul.mubr.bf16.vlgmr.msra.gmra.mxu1 %v8862_v2  ;;  %v7228_v2 = vld [vmem:[%s10233_s7 + $0x90] sm:$0xff]  }
 0x1d9   :  { %6645 = vmatpush3.bf16.msra.mxu1 %v7218_v55  ;;  %v2969_v55 = vsub.s32 %v2966_v40, %v8729_v36  ;;  %v7266_v40 = vld [vmem:[%s10237_s11 + $0x44] ss:$16 sps:$4 sm:$0xff]  }
 0x1da   :  { %6646 = vmatprep.subr.bf16.mxu1 %v7219_v56 }
 0x1db   :  { %v2970_v56 = vrot.slane %v2939_v50, %v2969_v55  ;;  %v7263_v50 = vld [vmem:[%s10237_s11 + $0x264] ss:$16 sps:$4 sm:$0xff]  }
 0x1dd   :  { %6647 = vmatpush3.bf16.msra.mxu1 %v7220_v57  ;;  %v2977_v57 = vrot.slane %v2963_v54, %v2969_v55  ;;  %v7269_v54 = vld [vmem:[%s10237_s11 + $0x244] ss:$16 sps:$4 sm:$0xff]   ;;  %v7264_v55 = vld [vmem:[%s10237_s11 + $0x40] ss:$16 sps:$4 sm:$0xff]  }
 0x1de   :  { %6648 = vmatprep.subr.bf16.mxu1 %v7221_v58  ;;  %v2978_v58 = vcombine.high %v2970_v56, %v2970_v56 }
 0x1e0   :  { %6259 = vmatprep.subr.msk.bf16.mxu0 %vm2983_vm1, %v2978_v58  ;;  %v7275_v58 = vld [vmem:[%s10237_s11 + $0x224] ss:$16 sps:$4 sm:$0xff]  }
 0x1e1   :  { %6649 = vmatpush3.bf16.msra.mxu1 %v7222_v59  ;;  %v2985_v59 = vsel %vm2983_vm1, %v2970_v56, 0  ;;  %v7267_v56 = vld [vmem:[%s10237_s11 + $0x240] ss:$16 sps:$4 sm:$0xff]  }
 0x1e2   :  { %6650 = vmatprep.subr.bf16.mxu1 %v7223_v60  ;;  %v2979_v60 = vcombine.high %v2977_v57, %v2977_v57 }
 0x1e5   :  { %6651 = vmatpush3.bf16.msra.mxu1 %v7224_v61  ;;  %v2991_v61 = vsel %vm2983_vm1, %v2977_v57, 0  ;;  %v7272_v57 = vld [vmem:[%s10237_s11 + $0x24] ss:$16 sps:$4 sm:$0xff]  }
 0x1e6   :  { %6652 = vmatprep.subr.bf16.mxu1 %v7225_v62 }
 0x1e9   :  { %6653 = vmatpush3.bf16.msra.mxu1 %v7226_v63 }
 0x1ea   :  { %6654 = vmatprep.subr.bf16.mxu1 %v7227_v1 }
 0x1ed   :  { %6655 = vmatpush3.bf16.msra.mxu1 %v7228_v2 }
 0x1ee   :  { %6656 = vmatprep.subr.bf16.mxu1 %v7229_v6 }
 0x1f1   :  { %6657 = vmatpush3.bf16.msra.mxu1 %v7230_v7 }
 0x1f2   :  { %6658 = vmatprep.subr.bf16.mxu1 %v7231_v10 }
 0x1f5   :  { %6659 = vmatpush3.bf16.msra.mxu1 %v7232_v11 }
 0x1f6   :  { %6261 = vmatprep.subr.msk.bf16.mxu1 %vm2983_vm1, %v2979_v60  ;;  %v7273_v60 = vld [vmem:[%s10237_s11 + $0x220] ss:$16 sps:$4 sm:$0xff]  }
 0x20f   :  { %v2430_v3 = vpop.f32.mrf.mxu0 }
 0x210   :  { %v2431_v23 = vadd.f32 %v2430_v3, %v1739_v17  ;;  %v6226_v3 = vld [vmem:[%s10234_s8] ss:$0 sm:$0xff] }
 0x211   :  { %v2432_v0 = vpop.f32.mrf.mxu0 }
 0x212   :  { %v2433_v25 = vadd.f32 %v2432_v0, %v1743_v21 }
 0x213   :  { %v2434_v4 = vpop.f32.mrf.mxu0 }
 0x215   :  { %v2435_v5 = vpop.f32.mrf.mxu0 }
 0x24f   :  { %v2512_v14 = vpop.f32.mrf.mxu0 }
 0x250   :  { %v2513_v35 = vadd.f32 %v2512_v14, %v1747_v33 }
 0x251   :  { %v2514_v15 = vpop.f32.mrf.mxu0 }
 0x252   :  { %v2515_v37 = vadd.f32 %v2514_v15, %v1751_v34  ;;  %v7242_v34 = vld [vmem:[%s10237_s11 + $0xc4] ss:$16 sps:$4 sm:$0xff]  }
 0x253   :  { %v2516_v18 = vpop.f32.mrf.mxu0 }
 0x255   :  { %v2517_v22 = vpop.f32.mrf.mxu0 }
 0x256   :  { %v7236_v22 = vld [vmem:[%s10237_s11 + $0xe4] ss:$16 sps:$4 sm:$0xff]  }
 0x258   :  { %v2471_v24 = vpop.f32.mrf.mxu1 }
 0x259   :  { %v2472_v26 = vadd.f32 %v2471_v24, %v2431_v23  ;;  %v7239_v23 = vld [vmem:[%s10237_s11 + $0x2e4] ss:$16 sps:$4 sm:$0xff]  }
 0x25a   :  { %v2473_v27 = vpop.f32.mrf.mxu1 }
 0x25b   :  { %v2474_v28 = vadd.f32 %v2473_v27, %v2433_v25  ;;  %v2560_v29 = vmax.f32 %v2472_v26, 0.0  ;;  %v2928_v27 = vpop.permute.xlu0 %2927 }
 0x25c   :  { %v2475_v30 = vpop.f32.mrf.mxu1 }
 0x25d   :  { %v2561_v31 = vmax.f32 %v2474_v28, 0.0  ;;  %v2564_v19 = vpack.c.bf16 %v2560_v29, %v2560_v29 }
 0x25e   :  { %v2476_v9 = vpop.f32.mrf.mxu1 }
 0x25f   :  { %v2565_v52 = vpack.c.bf16 %v2561_v31, %v2561_v31 }
 0x261   :  { %2863 = vmatprep.mubr.bf16.mxu0 %v2565_v52  ;;  %v7234_v52 = vld [vmem:[%s10237_s11 + $0xe0] ss:$16 sps:$4 sm:$0xff]  }
 0x262   :  { %2864 = vmatmul.mubr.bf16.vlgmr.msra.gmra.mxu0 %v2564_v19  ;;  %v7237_v19 = vld [vmem:[%s10237_s11 + $0x2e0] ss:$16 sps:$4 sm:$0xff]  }
 0x263   :  { %3028 = vmatprep.mubr.bf16.mxu0 %v7800_v16  ;;  %3011 = vmatpush1.bf16.msra.mxu0 %v2985_v59  ;;  %v7270_v59 = vld [vmem:[%s10237_s11 + $0x20] ss:$16 sps:$4 sm:$0xff]  }
 0x264   :  { %3876 = vmatprep.subr.bf16.mxu0 %v7236_v22  ;;  %v7311_v22 = vld [vmem:[%s10237_s11 + $0x364] ss:$16 sps:$4 sm:$0xff]  }
 0x298   :  { %v2553_v8 = vpop.f32.mrf.mxu1 }
 0x299   :  { %v2554_v38 = vadd.f32 %v2553_v8, %v2513_v35  ;;  %v7245_v35 = vld [vmem:[%s10237_s11 + $0x2c4] ss:$16 sps:$4 sm:$0xff]   ;;  %v7240_v8 = vld [vmem:[%s10237_s11 + $0xc0] ss:$16 sps:$4 sm:$0xff]  }
 0x29a   :  { %v2555_v39 = vpop.f32.mrf.mxu1 }
 0x29b   :  { %v2556_v43 = vadd.f32 %v2555_v39, %v2515_v37  ;;  %v2562_v44 = vmax.f32 %v2554_v38, 0.0  ;;  %v7243_v37 = vld [vmem:[%s10237_s11 + $0x2c0] ss:$16 sps:$4 sm:$0xff]   ;;  %v7248_v38 = vld [vmem:[%s10237_s11 + $0xa4] ss:$16 sps:$4 sm:$0xff]  }
 0x29c   :  { %v2557_v45 = vpop.f32.mrf.mxu1  ;;  %v7251_v39 = vld [vmem:[%s10237_s11 + $0x2a4] ss:$16 sps:$4 sm:$0xff]  }
 0x29d   :  { %v2563_v46 = vmax.f32 %v2556_v43, 0.0  ;;  %v2566_v49 = vpack.c.bf16 %v2562_v44, %v2562_v44  ;;  %v7246_v43 = vld [vmem:[%s10237_s11 + $0xa0] ss:$16 sps:$4 sm:$0xff]   ;;  %v7254_v45 = vld [vmem:[%s10237_s11 + $0x84] ss:$16 sps:$4 sm:$0xff]  }
 0x29e   :  { %v2558_v47 = vpop.f32.mrf.mxu1  ;;  %v7249_v44 = vld [vmem:[%s10237_s11 + $0x2a0] ss:$16 sps:$4 sm:$0xff]  }
 0x29f   :  { %v2567_v48 = vpack.c.bf16 %v2563_v46, %v2563_v46  ;;  %v7257_v46 = vld [vmem:[%s10237_s11 + $0x284] ss:$16 sps:$4 sm:$0xff]   ;;  %v7252_v47 = vld [vmem:[%s10237_s11 + $0x80] ss:$16 sps:$4 sm:$0xff]  }
 0x2a1   :  { %2903 = vmatprep.mubr.bf16.mxu1 %v2567_v48  ;;  %v7255_v48 = vld [vmem:[%s10237_s11 + $0x280] ss:$16 sps:$4 sm:$0xff]  }
 0x2a2   :  { %2904 = vmatmul.mubr.bf16.vlgmr.msra.gmra.mxu1 %v2566_v49  ;;  %v7260_v49 = vld [vmem:[%s10237_s11 + $0x64] ss:$16 sps:$4 sm:$0xff]  }
 0x2a3   :  { %3069 = vmatprep.mubr.bf16.mxu1 %v7800_v16  ;;  %3052 = vmatpush1.bf16.msra.mxu1 %v2991_v61  ;;  %v7278_v61 = vld [vmem:[%s10237_s11 + $0x4] ss:$16 sps:$4 sm:$0xff]  }
 0x2a4   :  { %3917 = vmatprep.subr.bf16.mxu1 %v7239_v23  ;;  %v7306_v23 = vld [vmem:[%s10237_s11 + $0x160] ss:$16 sps:$4 sm:$0xff]  }
 0x322   :  { %v6638_v16 = vpop.f32.mrf.mxu0 }
 0x324   :  { %v6639_v62 = vpop.f32.mrf.mxu0 }
 0x325   :  { %v6640_v2 = vadd.f32 %v6639_v62, %v6638_v16  ;;  %v7281_v16 = vld [vmem:[%s10237_s11 + $0x204] ss:$16 sps:$4 sm:$0xff]   ;;  %v7276_v62 = vld [vmem:[%s10237_s11] ss:$16 sps:$4 sm:$0xff]  }
 0x326   :  { %v6641_v63 = vpop.f32.mrf.mxu0 }
 0x327   :  { %v2866_v5 = vadd.f32 %v6640_v2, %v6226_v3  ;;  %v7279_v63 = vld [vmem:[%s10237_s11 + $0x200] ss:$16 sps:$4 sm:$0xff]   ;;  %v7287_v2 = vld [vmem:[%s10237_s11 + $0x3e4] ss:$16 sps:$4 sm:$0xff]  }
 0x328   :  { %v6642_v1 = vpop.f32.mrf.mxu0  ;;  %v7282_v3 = vld [vmem:[%s10237_s11 + $0x1e0] ss:$16 sps:$4 sm:$0xff]  }
 0x329   :  { %v7284_v1 = vld [vmem:[%s10237_s11 + $0x1e4] ss:$16 sps:$4 sm:$0xff]  }
 0x362   :  { %v6660_v0 = vpop.f32.mrf.mxu1 }
 0x364   :  { %v6661_v4 = vpop.f32.mrf.mxu1 }
 0x365   :  { %v6662_v6 = vadd.f32 %v6661_v4, %v6660_v0  ;;  %v7285_v0 = vld [vmem:[%s10237_s11 + $0x3e0] ss:$16 sps:$4 sm:$0xff]   ;;  %v7290_v4 = vld [vmem:[%s10237_s11 + $0x1c4] ss:$16 sps:$4 sm:$0xff]  }
 0x366   :  { %v6663_v7 = vpop.f32.mrf.mxu1 }
 0x367   :  { %v2906_v10 = vadd.f32 %v6662_v6, %v2866_v5  ;;  %v7293_v5 = vld [vmem:[%s10237_s11 + $0x3c4] ss:$16 sps:$4 sm:$0xff]   ;;  %v7288_v6 = vld [vmem:[%s10237_s11 + $0x1c0] ss:$16 sps:$4 sm:$0xff]  }
 0x368   :  { %v6664_v11 = vpop.f32.mrf.mxu1  ;;  %v7291_v7 = vld [vmem:[%s10237_s11 + $0x3c0] ss:$16 sps:$4 sm:$0xff]  }
 0x369   :  { %v2912_v12 = vmin.f32 %v2906_v10, 20.0  ;;  %vm2911_vm3 = vcmp.gt.f32.partialorder %v2906_v10, 20.0  ;;  %v7299_v11 = vld [vmem:[%s10237_s11 + $0x3a4] ss:$16 sps:$4 sm:$0xff]  }
 0x36b   :  { %v2913_v13 = vmul.f32 1.442695, %v2912_v12  ;;  %v7294_v12 = vld [vmem:[%s10237_s11 + $0x1a0] ss:$16 sps:$4 sm:$0xff]  }
 0x36d   :  { %7746 = vpow2.f32 %v2913_v13  ;;  %v7297_v13 = vld [vmem:[%s10237_s11 + $0x3a0] ss:$16 sps:$4 sm:$0xff]  }
 0x37a   :  { %v7747_v14 = vpop.eup %7746 }
 0x37b   :  { %v2915_v15 = vadd.f32 1.0, %v7747_v14  ;;  %v2918_v17 = vmul.f32 -0.5, %v7747_v14  ;;  %v2921_v21 = vand.u32 2147483647, %v7747_v14 }
 0x37d   :  { %7748 = vlog2.f32 %v2915_v15  ;;  %v2919_v18 = vadd.f32 1.0, %v2918_v17  ;;  %vm2922_vm2 = vcmp.lt.f32.partialorder %v2921_v21, 0.0004427343  ;;  %v7305_v15 = vld [vmem:[%s10237_s11 + $0x384] ss:$16 sps:$4 sm:$0xff]  }
 0x37e   :  { %v7300_v17 = vld [vmem:[%s10237_s11 + $0x180] ss:$16 sps:$4 sm:$0xff]   ;;  %v7308_v21 = vld [vmem:[%s10237_s11 + $0x164] ss:$16 sps:$4 sm:$0xff]  }
 0x37f   :  { %v2920_v26 = vmul.f32 %v7747_v14, %v2919_v18  ;;  %v7302_v14 = vld [vmem:[%s10237_s11 + $0x184] ss:$16 sps:$4 sm:$0xff]   ;;  %v7303_v18 = vld [vmem:[%s10237_s11 + $0x380] ss:$16 sps:$4 sm:$0xff]  }
 0x38a   :  { %v7749_v24 = vpop.eup %7748 }
 0x38b   :  { %v2917_v25 = vmul.f32 0.6931472, %v7749_v24  ;;  %v7309_v24 = vld [vmem:[%s10237_s11 + $0x360] ss:$16 sps:$4 sm:$0xff]  }
 0x38d   :  { %v2923_v28 = vsel %vm2922_vm2, %v2920_v26, %v2917_v25  ;;  %v7314_v25 = vld [vmem:[%s10237_s11 + $0x144] ss:$16 sps:$4 sm:$0xff]  }
 0x38e   :  { %v2924_v29 = vsel %vm2911_vm3, %v2906_v10, %v2923_v28  ;;  %v7317_v26 = vld [vmem:[%s10237_s11 + $0x344] ss:$16 sps:$4 sm:$0xff]   ;;  %v7315_v28 = vld [vmem:[%s10237_s11 + $0x340] ss:$16 sps:$4 sm:$0xff]  }
 0x38f   :  { %v2930_v30 = vmul.f32 %v2928_v27, %v2924_v29  ;;  %v7312_v27 = vld [vmem:[%s10237_s11 + $0x140] ss:$16 sps:$4 sm:$0xff]   ;;  %v7320_v29 = vld [vmem:[%s10237_s11 + $0x124] ss:$16 sps:$4 sm:$0xff]  }
 0x391   :  { %2932 = vrot.lane.b32.xlu0 %v2930_v30, %s7803_s30  ;;  %v7323_v30 = vld [vmem:[%s10237_s11 + $0x324] ss:$16 sps:$4 sm:$0xff]  }
 0x403   :  { %v2933_v31 = vpop.permute.xlu0 %2932 }
 0x404   :  { %v2935_v9 = vadd.f32 %v2933_v31, %v2906_v10  ;;  %v7296_v10 = vld [vmem:[%s10237_s11 + $0x1a4] ss:$16 sps:$4 sm:$0xff]   ;;  %v7318_v31 = vld [vmem:[%s10237_s11 + $0x120] ss:$16 sps:$4 sm:$0xff]  }
 0x406   :  { %2937 = vst.msk [vmem:[%s10241_s15] sm:$0xff] %vm2936_vm4, %v2935_v9  ;;  %v2938_v33 = vpack.c.bf16 %v2935_v9, %v2935_v9  ;;  %v7321_v9 = vld [vmem:[%s10237_s11 + $0x320] ss:$16 sps:$4 sm:$0xff]  }
 0x408   :  { %6260 = vmatmul.mubr.msk.bf16.vlgmr.msra.gmra.mxu0 %vm2936_vm4, %v2938_v33  ;;  %6262 = vmatmul.mubr.msk.bf16.vlgmr.msra.gmra.mxu1 %vm2936_vm4, %v2938_v33  ;;  %v7324_v33 = vld [vmem:[%s10237_s11 + $0x100] ss:$16 sps:$4 sm:$0xff]  }
 0x409   :  { %3877 = vmatpush1.bf16.msra.mxu0 %v7234_v52  ;;  %3918 = vmatpush1.bf16.msra.mxu1 %v7237_v19  ;;  %v7326_v52 = vld [vmem:[%s10237_s11 + $0x104] ss:$16 sps:$4 sm:$0xff]  }
 0x40a   :  { %3878 = vmatprep.subr.bf16.mxu0 %v7242_v34  ;;  %3919 = vmatprep.subr.bf16.mxu1 %v7245_v35  ;;  %v7329_v19 = vld [vmem:[%s10237_s11 + $0x304] ss:$16 sps:$4 sm:$0xff]   ;;  %v7327_v34 = vld [vmem:[%s10237_s11 + $0x300] ss:$16 sps:$4 sm:$0xff]   ;;  %v7332_v35 = vld [vmem:[%s10237_s11 + $0xec] ss:$16 sps:$4 sm:$0xff]  }
 0x40d   :  { %3879 = vmatpush1.bf16.msra.mxu0 %v7240_v8  ;;  %3920 = vmatpush1.bf16.msra.mxu1 %v7243_v37  ;;  %v7335_v8 = vld [vmem:[%s10237_s11 + $0x2ec] ss:$16 sps:$4 sm:$0xff]   ;;  %v2940_v37 = vld [vmem:[%s10236_s10] sm:$0xf] }
 0x40e   :  { %3880 = vmatprep.subr.bf16.mxu0 %v7248_v38  ;;  %3921 = vmatprep.subr.bf16.mxu1 %v7251_v39  ;;  %v2945_v38 = vrot.slane %v2940_v37, %v8737_v41  ;;  %v2953_v39 = vrot.slane %v2940_v37, %v8832_v32 }
 0x411   :  { %3881 = vmatpush1.bf16.msra.mxu0 %v7246_v43  ;;  %3922 = vmatpush1.bf16.msra.mxu1 %v7249_v44  ;;  %v2949_v43 = vrot.slane %v2940_v37, %v8740_v42  ;;  %v2957_v44 = vrot.slane %v2940_v37, %v8841_v20  ;;  %v7386_v37 = vld [vmem:[%s10237_s11 + $0x1cc] ss:$16 sps:$4 sm:$0xff]  }
 0x412   :  { %3882 = vmatprep.subr.bf16.mxu0 %v7254_v45  ;;  %3923 = vmatprep.subr.bf16.mxu1 %v7257_v46 }
 0x415   :  { %3883 = vmatpush1.bf16.msra.mxu0 %v7252_v47  ;;  %3924 = vmatpush1.bf16.msra.mxu1 %v7255_v48 }
 0x416   :  { %3884 = vmatprep.subr.bf16.mxu0 %v7260_v49  ;;  %3925 = vmatprep.subr.bf16.mxu1 %v7263_v50 }
 0x419   :  { %3885 = vmatpush1.bf16.msra.mxu0 %v7258_v51  ;;  %3926 = vmatpush1.bf16.msra.mxu1 %v7261_v53 }
 0x41a   :  { %3886 = vmatprep.subr.bf16.mxu0 %v7266_v40  ;;  %3927 = vmatprep.subr.bf16.mxu1 %v7269_v54 }
 0x41d   :  { %3887 = vmatpush1.bf16.msra.mxu0 %v7264_v55  ;;  %3928 = vmatpush1.bf16.msra.mxu1 %v7267_v56 }
 0x41e   :  { %3888 = vmatprep.subr.bf16.mxu0 %v7272_v57  ;;  %3929 = vmatprep.subr.bf16.mxu1 %v7275_v58 }
 0x421   :  { %3889 = vmatpush1.bf16.msra.mxu0 %v7270_v59  ;;  %3930 = vmatpush1.bf16.msra.mxu1 %v7273_v60 }
 0x422   :  { %3890 = vmatprep.subr.bf16.mxu0 %v7278_v61  ;;  %3931 = vmatprep.subr.bf16.mxu1 %v7281_v16 }
 0x425   :  { %3891 = vmatpush1.bf16.msra.mxu0 %v7276_v62  ;;  %3932 = vmatpush1.bf16.msra.mxu1 %v7279_v63  ;;  %v7330_v62 = vld [vmem:[%s10237_s11 + $0xe8] ss:$16 sps:$4 sm:$0xff]  }
 0x426   :  { %3892 = vmatprep.subr.bf16.mxu0 %v7284_v1  ;;  %3933 = vmatprep.subr.bf16.mxu1 %v7287_v2  ;;  %v7333_v63 = vld [vmem:[%s10237_s11 + $0x2e8] ss:$16 sps:$4 sm:$0xff]  }
 0x429   :  { %3893 = vmatpush2.bf16.msra.mxu0 %v7282_v3  ;;  %3934 = vmatpush2.bf16.msra.mxu1 %v7285_v0  ;;  %v7338_v3 = vld [vmem:[%s10237_s11 + $0xcc] ss:$16 sps:$4 sm:$0xff]  }
 0x42a   :  { %3894 = vmatprep.subr.bf16.mxu0 %v7290_v4  ;;  %3935 = vmatprep.subr.bf16.mxu1 %v7293_v5  ;;  %v7341_v0 = vld [vmem:[%s10237_s11 + $0x2cc] ss:$16 sps:$4 sm:$0xff]   ;;  %v7336_v4 = vld [vmem:[%s10237_s11 + $0xc8] ss:$16 sps:$4 sm:$0xff]  }
 0x42b   :  { %v7339_v5 = vld [vmem:[%s10237_s11 + $0x2c8] ss:$16 sps:$4 sm:$0xff]  }
 0x42d   :  { %3895 = vmatpush2.bf16.msra.mxu0 %v7288_v6  ;;  %3936 = vmatpush2.bf16.msra.mxu1 %v7291_v7  ;;  %v7344_v6 = vld [vmem:[%s10237_s11 + $0xac] ss:$16 sps:$4 sm:$0xff]  }
 0x42e   :  { %3896 = vmatprep.subr.bf16.mxu0 %v7296_v10  ;;  %3937 = vmatprep.subr.bf16.mxu1 %v7299_v11  ;;  %v7347_v7 = vld [vmem:[%s10237_s11 + $0x2ac] ss:$16 sps:$4 sm:$0xff]   ;;  %v7342_v10 = vld [vmem:[%s10237_s11 + $0xa8] ss:$16 sps:$4 sm:$0xff]  }
 0x42f   :  { %v7345_v11 = vld [vmem:[%s10237_s11 + $0x2a8] ss:$16 sps:$4 sm:$0xff]  }
 0x431   :  { %3897 = vmatpush2.bf16.msra.mxu0 %v7294_v12  ;;  %3938 = vmatpush2.bf16.msra.mxu1 %v7297_v13  ;;  %v7350_v12 = vld [vmem:[%s10237_s11 + $0x8c] ss:$16 sps:$4 sm:$0xff]  }
 0x432   :  { %3898 = vmatprep.subr.bf16.mxu0 %v7302_v14  ;;  %3939 = vmatprep.subr.bf16.mxu1 %v7305_v15  ;;  %v7353_v13 = vld [vmem:[%s10237_s11 + $0x28c] ss:$16 sps:$4 sm:$0xff]   ;;  %v7348_v14 = vld [vmem:[%s10237_s11 + $0x88] ss:$16 sps:$4 sm:$0xff]  }
 0x433   :  { %v7351_v15 = vld [vmem:[%s10237_s11 + $0x288] ss:$16 sps:$4 sm:$0xff]  }
 0x435   :  { %3899 = vmatpush2.bf16.msra.mxu0 %v7300_v17  ;;  %3940 = vmatpush2.bf16.msra.mxu1 %v7303_v18  ;;  %v7356_v17 = vld [vmem:[%s10237_s11 + $0x6c] ss:$16 sps:$4 sm:$0xff]  }
 0x436   :  { %3900 = vmatprep.subr.bf16.mxu0 %v7308_v21  ;;  %3941 = vmatprep.subr.bf16.mxu1 %v7311_v22  ;;  %v7359_v18 = vld [vmem:[%s10237_s11 + $0x26c] ss:$16 sps:$4 sm:$0xff]   ;;  %v7354_v21 = vld [vmem:[%s10237_s11 + $0x68] ss:$16 sps:$4 sm:$0xff]  }
 0x437   :  { %v7357_v22 = vld [vmem:[%s10237_s11 + $0x268] ss:$16 sps:$4 sm:$0xff]  }
 0x439   :  { %3901 = vmatpush2.bf16.msra.mxu0 %v7306_v23  ;;  %3942 = vmatpush2.bf16.msra.mxu1 %v7309_v24  ;;  %v7362_v23 = vld [vmem:[%s10237_s11 + $0x4c] ss:$16 sps:$4 sm:$0xff]  }
 0x43a   :  { %3902 = vmatprep.subr.bf16.mxu0 %v7314_v25  ;;  %3943 = vmatprep.subr.bf16.mxu1 %v7317_v26  ;;  %v7365_v24 = vld [vmem:[%s10237_s11 + $0x24c] ss:$16 sps:$4 sm:$0xff]   ;;  %v7360_v25 = vld [vmem:[%s10237_s11 + $0x48] ss:$16 sps:$4 sm:$0xff]  }
 0x43b   :  { %v7363_v26 = vld [vmem:[%s10237_s11 + $0x248] ss:$16 sps:$4 sm:$0xff]  }
 0x43d   :  { %3903 = vmatpush2.bf16.msra.mxu0 %v7312_v27  ;;  %3944 = vmatpush2.bf16.msra.mxu1 %v7315_v28  ;;  %v7368_v27 = vld [vmem:[%s10237_s11 + $0x2c] ss:$16 sps:$4 sm:$0xff]  }
 0x43e   :  { %3904 = vmatprep.subr.bf16.mxu0 %v7320_v29  ;;  %3945 = vmatprep.subr.bf16.mxu1 %v7323_v30  ;;  %v7371_v28 = vld [vmem:[%s10237_s11 + $0x22c] ss:$16 sps:$4 sm:$0xff]   ;;  %v7366_v29 = vld [vmem:[%s10237_s11 + $0x28] ss:$16 sps:$4 sm:$0xff]  }
 0x43f   :  { %v7369_v30 = vld [vmem:[%s10237_s11 + $0x228] ss:$16 sps:$4 sm:$0xff]  }
 0x441   :  { %3905 = vmatpush2.bf16.msra.mxu0 %v7318_v31  ;;  %3946 = vmatpush2.bf16.msra.mxu1 %v7321_v9  ;;  %v7374_v31 = vld [vmem:[%s10237_s11 + $0xc] ss:$16 sps:$4 sm:$0xff]  }
 0x442   :  { %3906 = vmatprep.subr.bf16.mxu0 %v7326_v52  ;;  %3947 = vmatprep.subr.bf16.mxu1 %v7329_v19  ;;  %v7377_v9 = vld [vmem:[%s10237_s11 + $0x20c] ss:$16 sps:$4 sm:$0xff]   ;;  %v7372_v52 = vld [vmem:[%s10237_s11 + $0x8] ss:$16 sps:$4 sm:$0xff]  }
 0x443   :  { %v7375_v19 = vld [vmem:[%s10237_s11 + $0x208] ss:$16 sps:$4 sm:$0xff]  }
 0x445   :  { %3907 = vmatpush2.bf16.msra.mxu0 %v7324_v33  ;;  %3948 = vmatpush2.bf16.msra.mxu1 %v7327_v34  ;;  %v7380_v33 = vld [vmem:[%s10237_s11 + $0x1ec] ss:$16 sps:$4 sm:$0xff]  }
 0x446   :  { %3958 = vmatprep.subr.bf16.mxu0 %v7332_v35  ;;  %3999 = vmatprep.subr.bf16.mxu1 %v7335_v8  ;;  %v7383_v34 = vld [vmem:[%s10237_s11 + $0x3ec] ss:$16 sps:$4 sm:$0xff]   ;;  %v7378_v35 = vld [vmem:[%s10237_s11 + $0x1e8] ss:$16 sps:$4 sm:$0xff]  }
 0x447   :  { %v7381_v8 = vld [vmem:[%s10237_s11 + $0x3e8] ss:$16 sps:$4 sm:$0xff]  }
 0x4c8   :  { %v3030_v45 = vpop.f32.mrf.mxu0  ;;  %v3071_v46 = vpop.f32.mrf.mxu1 }
 0x4c9   :  { %v3031_v47 = vadd.f32 %v3030_v45, %v2945_v38  ;;  %v3072_v48 = vadd.f32 %v3071_v46, %v2953_v39  ;;  %v7389_v38 = vld [vmem:[%s10237_s11 + $0x3cc] ss:$16 sps:$4 sm:$0xff]   ;;  %v7384_v39 = vld [vmem:[%s10237_s11 + $0x1c8] ss:$16 sps:$4 sm:$0xff]  }
 0x4ca   :  { %v3032_v49 = vpop.f32.mrf.mxu0  ;;  %v3073_v50 = vpop.f32.mrf.mxu1  ;;  %v7395_v45 = vld [vmem:[%s10237_s11 + $0x3ac] ss:$16 sps:$4 sm:$0xff]   ;;  %v7390_v46 = vld [vmem:[%s10237_s11 + $0x1a8] ss:$16 sps:$4 sm:$0xff]  }
 0x4cb   :  { %v3033_v51 = vadd.f32 %v3032_v49, %v2949_v43  ;;  %v3074_v53 = vadd.f32 %v3073_v50, %v2957_v44  ;;  %v3078_v40 = vmax.f32 %v3031_v47, 0.0  ;;  %v3080_v54 = vmax.f32 %v3072_v48, 0.0  ;;  %v7387_v43 = vld [vmem:[%s10237_s11 + $0x3c8] ss:$16 sps:$4 sm:$0xff]   ;;  %v7392_v44 = vld [vmem:[%s10237_s11 + $0x1ac] ss:$16 sps:$4 sm:$0xff]  }
 0x4cc   :  { %v3034_v55 = vpop.f32.mrf.mxu0  ;;  %v3075_v56 = vpop.f32.mrf.mxu1  ;;  %v7393_v47 = vld [vmem:[%s10237_s11 + $0x3a8] ss:$16 sps:$4 sm:$0xff]   ;;  %v7398_v48 = vld [vmem:[%s10237_s11 + $0x18c] ss:$16 sps:$4 sm:$0xff]  }
 0x4cd   :  { %v3079_v57 = vmax.f32 %v3033_v51, 0.0  ;;  %v3081_v58 = vmax.f32 %v3074_v53, 0.0  ;;  %v9285_v1 = vpack.c.bf16 %v3078_v40, %v3078_v40  ;;  %v9287_v2 = vpack.c.bf16 %v3080_v54, %v3080_v54  ;;  %v7401_v49 = vld [vmem:[%s10237_s11 + $0x38c] ss:$16 sps:$4 sm:$0xff]   ;;  %v7396_v50 = vld [vmem:[%s10237_s11 + $0x188] ss:$16 sps:$4 sm:$0xff]  }
 0x4ce   :  { %v3035_v59 = vpop.f32.mrf.mxu0  ;;  %v3076_v60 = vpop.f32.mrf.mxu1  ;;  %v7399_v51 = vld [vmem:[%s10237_s11 + $0x388] ss:$16 sps:$4 sm:$0xff]   ;;  %v7404_v53 = vld [vmem:[%s10237_s11 + $0x16c] ss:$16 sps:$4 sm:$0xff]  }
 0x4cf   :  { %v3083_v61 = vpack.c.bf16 %v3079_v57, %v3079_v57  ;;  %v3085_v16 = vpack.c.bf16 %v3081_v58, %v3081_v58  ;;  %v7407_v40 = vld [vmem:[%s10237_s11 + $0x36c] ss:$16 sps:$4 sm:$0xff]   ;;  %v7402_v54 = vld [vmem:[%s10237_s11 + $0x168] ss:$16 sps:$4 sm:$0xff]  }
 0x4d0   :  { %v7405_v55 = vld [vmem:[%s10237_s11 + $0x368] ss:$16 sps:$4 sm:$0xff]   ;;  %v7410_v56 = vld [vmem:[%s10237_s11 + $0x14c] ss:$16 sps:$4 sm:$0xff]  }
 0x4d1   :  { %3908 = vmatprep.mubr.bf16.mxu0 %v3083_v61  ;;  %3949 = vmatprep.mubr.bf16.mxu1 %v3085_v16  ;;  %v7413_v57 = vld [vmem:[%s10237_s11 + $0x34c] ss:$16 sps:$4 sm:$0xff]   ;;  %v7408_v58 = vld [vmem:[%s10237_s11 + $0x148] ss:$16 sps:$4 sm:$0xff]  }
 0x4d2   :  { %3909 = vmatmul.mubr.bf16.vlgmr.msra.gmra.mxu0 %v9285_v1  ;;  %3950 = vmatmul.mubr.bf16.vlgmr.msra.gmra.mxu1 %v9287_v2  ;;  %v7411_v59 = vld [vmem:[%s10237_s11 + $0x348] ss:$16 sps:$4 sm:$0xff]   ;;  %v7416_v60 = vld [vmem:[%s10237_s11 + $0x12c] ss:$16 sps:$4 sm:$0xff]  }
 0x4d3   :  { %3959 = vmatpush1.bf16.msra.mxu0 %v7330_v62  ;;  %4000 = vmatpush1.bf16.msra.mxu1 %v7333_v63  ;;  %v7417_v62 = vld [vmem:[%s10237_s11 + $0x328] ss:$16 sps:$4 sm:$0xff]   ;;  %v7422_v63 = vld [vmem:[%s10237_s11 + $0x10c] ss:$16 sps:$4 sm:$0xff]  }
 0x4d4   :  { %3990 = vmatprep.mubr.bf16.mxu0 %v3083_v61  ;;  %4031 = vmatprep.mubr.bf16.mxu1 %v3085_v16  ;;  %v7419_v61 = vld [vmem:[%s10237_s11 + $0x32c] ss:$16 sps:$4 sm:$0xff]   ;;  %v7414_v16 = vld [vmem:[%s10237_s11 + $0x128] ss:$16 sps:$4 sm:$0xff]  }
 0x4d5   :  { %3960 = vmatprep.subr.bf16.mxu0 %v7338_v3  ;;  %4001 = vmatprep.subr.bf16.mxu1 %v7341_v0  ;;  %v7425_v3 = vld [vmem:[%s10237_s11 + $0x30c] ss:$16 sps:$4 sm:$0xff]   ;;  %v7420_v0 = vld [vmem:[%s10237_s11 + $0x108] ss:$16 sps:$4 sm:$0xff]  }
 0x4d7   :  { %3961 = vmatpush1.bf16.msra.mxu0 %v7336_v4  ;;  %4002 = vmatpush1.bf16.msra.mxu1 %v7339_v5  ;;  %v7423_v4 = vld [vmem:[%s10237_s11 + $0x308] ss:$16 sps:$4 sm:$0xff]  }
 0x4d8   :  { %3962 = vmatprep.subr.bf16.mxu0 %v7344_v6  ;;  %4003 = vmatprep.subr.bf16.mxu1 %v7347_v7  ;;  %v7428_v5 = vld [vmem:[%s10239_s13 + $0x18c] ss:$28 sps:$4 sm:$0xff]   ;;  %v7431_v7 = vld [vmem:[%s10239_s13 + $0x154] ss:$28 sps:$4 sm:$0xff]  }
 0x4d9   :  { %v7426_v6 = vld [vmem:[%s10239_s13 + $0x188] ss:$28 sps:$4 sm:$0xff]  }
 0x4db   :  { %3963 = vmatpush1.bf16.msra.mxu0 %v7342_v10  ;;  %4004 = vmatpush1.bf16.msra.mxu1 %v7345_v11  ;;  %v7429_v10 = vld [vmem:[%s10239_s13 + $0x150] ss:$28 sps:$4 sm:$0xff]   ;;  %v7434_v11 = vld [vmem:[%s10239_s13 + $0x11c] ss:$28 sps:$4 sm:$0xff]  }
 0x4dc   :  { %3964 = vmatprep.subr.bf16.mxu0 %v7350_v12  ;;  %4005 = vmatprep.subr.bf16.mxu1 %v7353_v13  ;;  %v7432_v12 = vld [vmem:[%s10239_s13 + $0x118] ss:$28 sps:$4 sm:$0xff]   ;;  %v7474_v13 = vld [vmem:[%s10239_s13 + $0x508] ss:$28 sps:$4 sm:$0xff]  }
 0x4df   :  { %3965 = vmatpush1.bf16.msra.mxu0 %v7348_v14  ;;  %4006 = vmatpush1.bf16.msra.mxu1 %v7351_v15  ;;  %v7476_v14 = vld [vmem:[%s10239_s13 + $0x50c] ss:$28 sps:$4 sm:$0xff]  }
 0x4e0   :  { %3966 = vmatprep.subr.bf16.mxu0 %v7356_v17  ;;  %4007 = vmatprep.subr.bf16.mxu1 %v7359_v18  ;;  %v7440_v15 = vld [vmem:[%s10239_s13 + $0xac] ss:$28 sps:$4 sm:$0xff]  }
 0x4e1   :  { %v7438_v17 = vld [vmem:[%s10239_s13 + $0xa8] ss:$28 sps:$4 sm:$0xff]   ;;  %v7480_v18 = vld [vmem:[%s10239_s13 + $0x4d0] ss:$28 sps:$4 sm:$0xff]  }
 0x4e3   :  { %3967 = vmatpush1.bf16.msra.mxu0 %v7354_v21  ;;  %4008 = vmatpush1.bf16.msra.mxu1 %v7357_v22  ;;  %v7482_v21 = vld [vmem:[%s10239_s13 + $0x4d4] ss:$28 sps:$4 sm:$0xff]  }
 0x4e4   :  { %3968 = vmatprep.subr.bf16.mxu0 %v7362_v23  ;;  %4009 = vmatprep.subr.bf16.mxu1 %v7365_v24  ;;  %v7443_v22 = vld [vmem:[%s10239_s13 + $0x74] ss:$28 sps:$4 sm:$0xff]  }
 0x4e5   :  { %v7441_v23 = vld [vmem:[%s10239_s13 + $0x70] ss:$28 sps:$4 sm:$0xff]   ;;  %v7486_v24 = vld [vmem:[%s10239_s13 + $0x498] ss:$28 sps:$4 sm:$0xff]  }
 0x4e7   :  { %3969 = vmatpush1.bf16.msra.mxu0 %v7360_v25  ;;  %4010 = vmatpush1.bf16.msra.mxu1 %v7363_v26  ;;  %v7488_v25 = vld [vmem:[%s10239_s13 + $0x49c] ss:$28 sps:$4 sm:$0xff]  }
 0x4e8   :  { %3970 = vmatprep.subr.bf16.mxu0 %v7368_v27  ;;  %4011 = vmatprep.subr.bf16.mxu1 %v7371_v28  ;;  %v7446_v26 = vld [vmem:[%s10239_s13 + $0x3c] ss:$28 sps:$4 sm:$0xff]  }
 0x4e9   :  { %v7444_v27 = vld [vmem:[%s10239_s13 + $0x38] ss:$28 sps:$4 sm:$0xff]   ;;  %v7492_v28 = vld [vmem:[%s10239_s13 + $0x460] ss:$28 sps:$4 sm:$0xff]  }
 0x4eb   :  { %3971 = vmatpush1.bf16.msra.mxu0 %v7366_v29  ;;  %4012 = vmatpush1.bf16.msra.mxu1 %v7369_v30  ;;  %v7494_v29 = vld [vmem:[%s10239_s13 + $0x464] ss:$28 sps:$4 sm:$0xff]  }
 0x4ec   :  { %3972 = vmatprep.subr.bf16.mxu0 %v7374_v31  ;;  %4013 = vmatprep.subr.bf16.mxu1 %v7377_v9  ;;  %v7449_v30 = vld [vmem:[%s10239_s13 + $0x4] ss:$28 sps:$4 sm:$0xff]  }
 0x4ed   :  { %v7447_v31 = vld [vmem:[%s10239_s13] ss:$28 sps:$4 sm:$0xff]   ;;  %v7498_v9 = vld [vmem:[%s10239_s13 + $0x428] ss:$28 sps:$4 sm:$0xff]  }
 0x4ef   :  { %3973 = vmatpush1.bf16.msra.mxu0 %v7372_v52  ;;  %4014 = vmatpush1.bf16.msra.mxu1 %v7375_v19  ;;  %v7500_v52 = vld [vmem:[%s10239_s13 + $0x42c] ss:$28 sps:$4 sm:$0xff]  }
 0x4f0   :  { %3974 = vmatprep.subr.bf16.mxu0 %v7380_v33  ;;  %4015 = vmatprep.subr.bf16.mxu1 %v7383_v34  ;;  %v7452_v19 = vld [vmem:[%s10239_s13 + $0x34c] ss:$28 sps:$4 sm:$0xff]  }
 0x4f1   :  { %v7450_v33 = vld [vmem:[%s10239_s13 + $0x348] ss:$28 sps:$4 sm:$0xff]   ;;  %v7504_v34 = vld [vmem:[%s10239_s13 + $0x3f0] ss:$28 sps:$4 sm:$0xff]  }
 0x4f3   :  { %3975 = vmatpush2.bf16.msra.mxu0 %v7378_v35  ;;  %4016 = vmatpush2.bf16.msra.mxu1 %v7381_v8  ;;  %v7506_v35 = vld [vmem:[%s10239_s13 + $0x3f4] ss:$28 sps:$4 sm:$0xff]  }
 0x4f4   :  { %3976 = vmatprep.subr.bf16.mxu0 %v7386_v37  ;;  %4017 = vmatprep.subr.bf16.mxu1 %v7389_v38  ;;  %v7455_v8 = vld [vmem:[%s10239_s13 + $0x314] ss:$28 sps:$4 sm:$0xff]  }
 0x4f5   :  { %v7453_v37 = vld [vmem:[%s10239_s13 + $0x310] ss:$28 sps:$4 sm:$0xff]   ;;  %v7510_v38 = vld [vmem:[%s10239_s13 + $0x3b8] ss:$28 sps:$4 sm:$0xff]  }
 0x4f7   :  { %3977 = vmatpush2.bf16.msra.mxu0 %v7384_v39  ;;  %4018 = vmatpush2.bf16.msra.mxu1 %v7387_v43  ;;  %v7512_v39 = vld [vmem:[%s10239_s13 + $0x3bc] ss:$28 sps:$4 sm:$0xff]  }
 0x4f8   :  { %3978 = vmatprep.subr.bf16.mxu0 %v7392_v44  ;;  %4019 = vmatprep.subr.bf16.mxu1 %v7395_v45  ;;  %v7458_v43 = vld [vmem:[%s10239_s13 + $0x2dc] ss:$28 sps:$4 sm:$0xff]  }
 0x4f9   :  { %v7456_v44 = vld [vmem:[%s10239_s13 + $0x2d8] ss:$28 sps:$4 sm:$0xff]   ;;  %v7516_v45 = vld [vmem:[%s10239_s13 + $0x380] ss:$28 sps:$4 sm:$0xff]  }
 0x4fb   :  { %3979 = vmatpush2.bf16.msra.mxu0 %v7390_v46  ;;  %4020 = vmatpush2.bf16.msra.mxu1 %v7393_v47  ;;  %v7518_v46 = vld [vmem:[%s10239_s13 + $0x384] ss:$28 sps:$4 sm:$0xff]  }
 0x4fc   :  { %3980 = vmatprep.subr.bf16.mxu0 %v7398_v48  ;;  %4021 = vmatprep.subr.bf16.mxu1 %v7401_v49  ;;  %v7461_v47 = vld [vmem:[%s10239_s13 + $0x2a4] ss:$28 sps:$4 sm:$0xff]  }
 0x4fd   :  { %v7459_v48 = vld [vmem:[%s10239_s13 + $0x2a0] ss:$28 sps:$4 sm:$0xff]   ;;  %v7522_v49 = vld [vmem:[%s10239_s13 + $0x6c8] ss:$28 sps:$4 sm:$0xff]  }
 0x4ff   :  { %3981 = vmatpush2.bf16.msra.mxu0 %v7396_v50  ;;  %4022 = vmatpush2.bf16.msra.mxu1 %v7399_v51  ;;  %v7524_v50 = vld [vmem:[%s10239_s13 + $0x6cc] ss:$28 sps:$4 sm:$0xff]  }
 0x500   :  { %3982 = vmatprep.subr.bf16.mxu0 %v7404_v53  ;;  %4023 = vmatprep.subr.bf16.mxu1 %v7407_v40  ;;  %v7464_v51 = vld [vmem:[%s10239_s13 + $0x26c] ss:$28 sps:$4 sm:$0xff]  }
 0x501   :  { %v7462_v53 = vld [vmem:[%s10239_s13 + $0x268] ss:$28 sps:$4 sm:$0xff]   ;;  %v7528_v40 = vld [vmem:[%s10239_s13 + $0x690] ss:$28 sps:$4 sm:$0xff]  }
 0x503   :  { %3983 = vmatpush2.bf16.msra.mxu0 %v7402_v54  ;;  %4024 = vmatpush2.bf16.msra.mxu1 %v7405_v55  ;;  %v7530_v54 = vld [vmem:[%s10239_s13 + $0x694] ss:$28 sps:$4 sm:$0xff]  }
 0x504   :  { %3984 = vmatprep.subr.bf16.mxu0 %v7410_v56  ;;  %4025 = vmatprep.subr.bf16.mxu1 %v7413_v57  ;;  %v7467_v55 = vld [vmem:[%s10239_s13 + $0x234] ss:$28 sps:$4 sm:$0xff]  }
 0x505   :  { %v7465_v56 = vld [vmem:[%s10239_s13 + $0x230] ss:$28 sps:$4 sm:$0xff]   ;;  %v7534_v57 = vld [vmem:[%s10239_s13 + $0x658] ss:$28 sps:$4 sm:$0xff]  }
 0x507   :  { %3985 = vmatpush2.bf16.msra.mxu0 %v7408_v58  ;;  %4026 = vmatpush2.bf16.msra.mxu1 %v7411_v59  ;;  %v7536_v58 = vld [vmem:[%s10239_s13 + $0x65c] ss:$28 sps:$4 sm:$0xff]  }
 0x508   :  { %3986 = vmatprep.subr.bf16.mxu0 %v7416_v60  ;;  %4027 = vmatprep.subr.bf16.mxu1 %v7419_v61  ;;  %v7470_v59 = vld [vmem:[%s10239_s13 + $0x1fc] ss:$28 sps:$4 sm:$0xff]  }
 0x509   :  { %v7468_v60 = vld [vmem:[%s10239_s13 + $0x1f8] ss:$28 sps:$4 sm:$0xff]   ;;  %v7540_v61 = vld [vmem:[%s10239_s13 + $0x620] ss:$28 sps:$4 sm:$0xff]  }
 0x50b   :  { %3987 = vmatpush2.bf16.msra.mxu0 %v7414_v16  ;;  %4028 = vmatpush2.bf16.msra.mxu1 %v7417_v62  ;;  %v7542_v16 = vld [vmem:[%s10239_s13 + $0x624] ss:$28 sps:$4 sm:$0xff]  }
 0x50c   :  { %3988 = vmatprep.subr.bf16.mxu0 %v7422_v63  ;;  %4029 = vmatprep.subr.bf16.mxu1 %v7425_v3  ;;  %v7473_v62 = vld [vmem:[%s10239_s13 + $0x1c4] ss:$28 sps:$4 sm:$0xff]  }
 0x50d   :  { %v7471_v63 = vld [vmem:[%s10239_s13 + $0x1c0] ss:$28 sps:$4 sm:$0xff]   ;;  %v7546_v3 = vld [vmem:[%s10239_s13 + $0x5e8] ss:$28 sps:$4 sm:$0xff]  }
 0x50f   :  { %3989 = vmatpush2.bf16.msra.mxu0 %v7420_v0  ;;  %4030 = vmatpush2.bf16.msra.mxu1 %v7423_v4  ;;  %v7548_v0 = vld [vmem:[%s10239_s13 + $0x5ec] ss:$28 sps:$4 sm:$0xff]   ;;  %v7479_v4 = vld [vmem:[%s10239_s13 + $0x194] ss:$28 sps:$4 sm:$0xff]  }
 0x510   :  { %5493 = vmatprep.subr.bf16.mxu0 %v7428_v5  ;;  %5534 = vmatprep.subr.bf16.mxu1 %v7476_v14  ;;  %v7552_v5 = vld [vmem:[%s10239_s13 + $0x5b0] ss:$28 sps:$4 sm:$0xff]  }
 0x512   :  { %3991 = vmatmul.mubr.bf16.vlgmr.msra.gmra.mxu0 %v9285_v1  ;;  %4032 = vmatmul.mubr.bf16.vlgmr.msra.gmra.mxu1 %v9287_v2  ;;  %v7437_v1 = vld [vmem:[%s10239_s13 + $0xe4] ss:$28 sps:$4 sm:$0xff]  }
 0x513   :  { %5494 = vmatpush1.bf16.msra.mxu0 %v7426_v6  ;;  %v7435_v2 = vld [vmem:[%s10239_s13 + $0xe0] ss:$28 sps:$4 sm:$0xff]   ;;  %5535 = vmatpush1.bf16.msra.mxu1 %v7474_v13  ;;  %v7554_v6 = vld [vmem:[%s10239_s13 + $0x5b4] ss:$28 sps:$4 sm:$0xff]  }
 0x514   :  { %5495 = vmatprep.subr.bf16.mxu0 %v7431_v7  ;;  %5536 = vmatprep.subr.bf16.mxu1 %v7482_v21  ;;  %v7560_v7 = vld [vmem:[%s10239_s13 + $0x57c] ss:$28 sps:$4 sm:$0xff]  }
 0x517   :  { %5496 = vmatpush1.bf16.msra.mxu0 %v7429_v10  ;;  %5537 = vmatpush1.bf16.msra.mxu1 %v7480_v18  ;;  %v7558_v10 = vld [vmem:[%s10239_s13 + $0x578] ss:$28 sps:$4 sm:$0xff]  }
 0x518   :  { %5497 = vmatprep.subr.bf16.mxu0 %v7434_v11  ;;  %5538 = vmatprep.subr.bf16.mxu1 %v7488_v25  ;;  %v7566_v11 = vld [vmem:[%s10239_s13 + $0x544] ss:$28 sps:$4 sm:$0xff]  }
 0x51b   :  { %5498 = vmatpush1.bf16.msra.mxu0 %v7432_v12  ;;  %5539 = vmatpush1.bf16.msra.mxu1 %v7486_v24  ;;  %v7564_v12 = vld [vmem:[%s10239_s13 + $0x540] ss:$28 sps:$4 sm:$0xff]  }
 0x51c   :  { %5499 = vmatprep.subr.bf16.mxu0 %v7437_v1  ;;  %5540 = vmatprep.subr.bf16.mxu1 %v7494_v29  ;;  %v7572_v1 = vld [vmem:[%s10239_s13 + $0x514] ss:$28 sps:$4 sm:$0xff]  }
 0x51f   :  { %5500 = vmatpush1.bf16.msra.mxu0 %v7435_v2  ;;  %5541 = vmatpush1.bf16.msra.mxu1 %v7492_v28  ;;  %v9674_v2 = vld [vmem:[%s10238_s12] sm:$0xf] }
 0x520   :  { %5501 = vmatprep.subr.bf16.mxu0 %v7440_v15  ;;  %5542 = vmatprep.subr.bf16.mxu1 %v7500_v52  ;;  %v3219_v13 = vrot.slane %v9674_v2, %v8737_v41  ;;  %v3223_v14 = vrot.slane %v9674_v2, %v8740_v42  ;;  %v7477_v52 = vld [vmem:[%s10239_s13 + $0x190] ss:$28 sps:$4 sm:$0xff]  }
 0x523   :  { %5502 = vmatpush1.bf16.msra.mxu0 %v7438_v17  ;;  %5543 = vmatpush1.bf16.msra.mxu1 %v7498_v9 }
 0x524   :  { %5503 = vmatprep.subr.bf16.mxu0 %v7443_v22  ;;  %5544 = vmatprep.subr.bf16.mxu1 %v7506_v35  ;;  %v7491_v35 = vld [vmem:[%s10239_s13 + $0x124] ss:$28 sps:$4 sm:$0xff]  }
 0x527   :  { %5504 = vmatpush1.bf16.msra.mxu0 %v7441_v23  ;;  %5545 = vmatpush1.bf16.msra.mxu1 %v7504_v34  ;;  %v7483_v34 = vld [vmem:[%s10239_s13 + $0x158] ss:$28 sps:$4 sm:$0xff]  }
 0x528   :  { %5505 = vmatprep.subr.bf16.mxu0 %v7446_v26  ;;  %5546 = vmatprep.subr.bf16.mxu1 %v7512_v39  ;;  %v7503_v39 = vld [vmem:[%s10239_s13 + $0xb4] ss:$28 sps:$4 sm:$0xff]  }
 0x52b   :  { %5506 = vmatpush1.bf16.msra.mxu0 %v7444_v27  ;;  %5547 = vmatpush1.bf16.msra.mxu1 %v7510_v38  ;;  %v7495_v38 = vld [vmem:[%s10239_s13 + $0xe8] ss:$28 sps:$4 sm:$0xff]  }
 0x52c   :  { %5507 = vmatprep.subr.bf16.mxu0 %v7449_v30  ;;  %5548 = vmatprep.subr.bf16.mxu1 %v7518_v46  ;;  %v7515_v46 = vld [vmem:[%s10239_s13 + $0x44] ss:$28 sps:$4 sm:$0xff]  }
 0x52f   :  { %5508 = vmatpush1.bf16.msra.mxu0 %v7447_v31  ;;  %5549 = vmatpush1.bf16.msra.mxu1 %v7516_v45  ;;  %v7507_v45 = vld [vmem:[%s10239_s13 + $0x78] ss:$28 sps:$4 sm:$0xff]  }
 0x530   :  { %5509 = vmatprep.subr.bf16.mxu0 %v7452_v19  ;;  %5550 = vmatprep.subr.bf16.mxu1 %v7524_v50  ;;  %v7527_v50 = vld [vmem:[%s10239_s13 + $0x354] ss:$28 sps:$4 sm:$0xff]  }
 0x533   :  { %5510 = vmatpush2.bf16.msra.mxu0 %v7450_v33  ;;  %5551 = vmatpush2.bf16.msra.mxu1 %v7522_v49  ;;  %v7485_v33 = vld [vmem:[%s10239_s13 + $0x15c] ss:$28 sps:$4 sm:$0xff]   ;;  %v7519_v49 = vld [vmem:[%s10239_s13 + $0x8] ss:$28 sps:$4 sm:$0xff]  }
 0x534   :  { %5511 = vmatprep.subr.bf16.mxu0 %v7455_v8  ;;  %5552 = vmatprep.subr.bf16.mxu1 %v7530_v54  ;;  %v7489_v8 = vld [vmem:[%s10239_s13 + $0x120] ss:$28 sps:$4 sm:$0xff]  }
 0x535   :  { %v7539_v54 = vld [vmem:[%s10239_s13 + $0x2e4] ss:$28 sps:$4 sm:$0xff]  }
 0x537   :  { %5512 = vmatpush2.bf16.msra.mxu0 %v7453_v37  ;;  %5553 = vmatpush2.bf16.msra.mxu1 %v7528_v40  ;;  %v7497_v37 = vld [vmem:[%s10239_s13 + $0xec] ss:$28 sps:$4 sm:$0xff]   ;;  %v7531_v40 = vld [vmem:[%s10239_s13 + $0x318] ss:$28 sps:$4 sm:$0xff]  }
 0x538   :  { %5513 = vmatprep.subr.bf16.mxu0 %v7458_v43  ;;  %5554 = vmatprep.subr.bf16.mxu1 %v7536_v58  ;;  %v7501_v43 = vld [vmem:[%s10239_s13 + $0xb0] ss:$28 sps:$4 sm:$0xff]  }
 0x539   :  { %v7551_v58 = vld [vmem:[%s10239_s13 + $0x274] ss:$28 sps:$4 sm:$0xff]  }
 0x53b   :  { %5514 = vmatpush2.bf16.msra.mxu0 %v7456_v44  ;;  %5555 = vmatpush2.bf16.msra.mxu1 %v7534_v57  ;;  %v7509_v44 = vld [vmem:[%s10239_s13 + $0x7c] ss:$28 sps:$4 sm:$0xff]   ;;  %v7543_v57 = vld [vmem:[%s10239_s13 + $0x2a8] ss:$28 sps:$4 sm:$0xff]  }
 0x53c   :  { %5515 = vmatprep.subr.bf16.mxu0 %v7461_v47  ;;  %5556 = vmatprep.subr.bf16.mxu1 %v7542_v16  ;;  %v7513_v47 = vld [vmem:[%s10239_s13 + $0x40] ss:$28 sps:$4 sm:$0xff]   ;;  %v7555_v16 = vld [vmem:[%s10239_s13 + $0x238] ss:$28 sps:$4 sm:$0xff]  }
 0x53f   :  { %5516 = vmatpush2.bf16.msra.mxu0 %v7459_v48  ;;  %5557 = vmatpush2.bf16.msra.mxu1 %v7540_v61  ;;  %v7521_v48 = vld [vmem:[%s10239_s13 + $0xc] ss:$28 sps:$4 sm:$0xff]   ;;  %v3227_v61 = vrot.slane %v9674_v2, %v8832_v32 }
 0x540   :  { %5517 = vmatprep.subr.bf16.mxu0 %v7464_v51  ;;  %5558 = vmatprep.subr.bf16.mxu1 %v7548_v0  ;;  %v7525_v51 = vld [vmem:[%s10239_s13 + $0x350] ss:$28 sps:$4 sm:$0xff]  }
 0x543   :  { %5518 = vmatpush2.bf16.msra.mxu0 %v7462_v53  ;;  %5559 = vmatpush2.bf16.msra.mxu1 %v7546_v3  ;;  %v7533_v53 = vld [vmem:[%s10239_s13 + $0x31c] ss:$28 sps:$4 sm:$0xff]  }
 0x544   :  { %5519 = vmatprep.subr.bf16.mxu0 %v7467_v55  ;;  %5560 = vmatprep.subr.bf16.mxu1 %v7554_v6  ;;  %v7537_v55 = vld [vmem:[%s10239_s13 + $0x2e0] ss:$28 sps:$4 sm:$0xff]  }
 0x547   :  { %5520 = vmatpush2.bf16.msra.mxu0 %v7465_v56  ;;  %5561 = vmatpush2.bf16.msra.mxu1 %v7552_v5  ;;  %v7545_v56 = vld [vmem:[%s10239_s13 + $0x2ac] ss:$28 sps:$4 sm:$0xff]   ;;  %v7561_v5 = vld [vmem:[%s10239_s13 + $0x200] ss:$28 sps:$4 sm:$0xff]  }
 0x548   :  { %5521 = vmatprep.subr.bf16.mxu0 %v7470_v59  ;;  %5562 = vmatprep.subr.bf16.mxu1 %v7560_v7  ;;  %v7549_v59 = vld [vmem:[%s10239_s13 + $0x270] ss:$28 sps:$4 sm:$0xff]  }
 0x54b   :  { %5522 = vmatpush2.bf16.msra.mxu0 %v7468_v60  ;;  %5563 = vmatpush2.bf16.msra.mxu1 %v7558_v10  ;;  %v7557_v60 = vld [vmem:[%s10239_s13 + $0x23c] ss:$28 sps:$4 sm:$0xff]   ;;  %v7569_v10 = vld [vmem:[%s10239_s13 + $0x1cc] ss:$28 sps:$4 sm:$0xff]  }
 0x54c   :  { %5523 = vmatprep.subr.bf16.mxu0 %v7473_v62  ;;  %5564 = vmatprep.subr.bf16.mxu1 %v7566_v11  ;;  %v7563_v62 = vld [vmem:[%s10239_s13 + $0x204] ss:$28 sps:$4 sm:$0xff]  }
 0x54f   :  { %5524 = vmatpush2.bf16.msra.mxu0 %v7471_v63  ;;  %5565 = vmatpush2.bf16.msra.mxu1 %v7564_v12  ;;  %v3231_v63 = vrot.slane %v9674_v2, %v8841_v20 }
 0x550   :  { %5575 = vmatprep.subr.bf16.mxu0 %v7479_v4  ;;  %5616 = vmatprep.subr.bf16.mxu1 %v7572_v1 }
 0x592   :  { %v3910_v15 = vpop.f32.mrf.mxu0  ;;  %v3951_v17 = vpop.f32.mrf.mxu1 }
 0x593   :  { %v3911_v18 = vadd.f32 %v3910_v15, %v3219_v13 }
 0x594   :  { %v3912_v21 = vpop.f32.mrf.mxu0  ;;  %v3953_v22 = vpop.f32.mrf.mxu1 }
 0x595   :  { %v3952_v23 = vadd.f32 %v3951_v17, %v3911_v18  ;;  %v3913_v24 = vadd.f32 %v3912_v21, %v3223_v14  ;;  %v7567_v14 = vld [vmem:[%s10239_s13 + $0x1c8] ss:$28 sps:$4 sm:$0xff]   ;;  %v7575_v21 = vld [vmem:[%s10239_s13 + $0x19c] ss:$28 sps:$4 sm:$0xff]  }
 0x596   :  { %v3914_v25 = vpop.f32.mrf.mxu0  ;;  %v3955_v26 = vpop.f32.mrf.mxu1 }
 0x597   :  { %v3954_v27 = vadd.f32 %v3953_v22, %v3913_v24  ;;  %v4040_v28 = vmax.f32 %v3952_v23, 0.0  ;;  %v7570_v24 = vld [vmem:[%s10239_s13 + $0x510] ss:$28 sps:$4 sm:$0xff]   ;;  %v7573_v26 = vld [vmem:[%s10239_s13 + $0x198] ss:$28 sps:$4 sm:$0xff]  }
 0x598   :  { %v3915_v29 = vpop.f32.mrf.mxu0  ;;  %v3956_v30 = vpop.f32.mrf.mxu1 }
 0x599   :  { %v4041_v31 = vmax.f32 %v3954_v27, 0.0  ;;  %v9685_v19 = vpack.c.bf16 %v4040_v28, %v4040_v28  ;;  %v7578_v27 = vld [vmem:[%s10239_s13 + $0x4dc] ss:$28 sps:$4 sm:$0xff]   ;;  %v7581_v28 = vld [vmem:[%s10239_s13 + $0x164] ss:$28 sps:$4 sm:$0xff]  }
 0x59a   :  { %v7576_v29 = vld [vmem:[%s10239_s13 + $0x4d8] ss:$28 sps:$4 sm:$0xff]   ;;  %v7579_v30 = vld [vmem:[%s10239_s13 + $0x160] ss:$28 sps:$4 sm:$0xff]  }
 0x59b   :  { %v9680_v9 = vpack.c.bf16 %v4041_v31, %v4041_v31  ;;  %v7584_v31 = vld [vmem:[%s10239_s13 + $0x4a4] ss:$28 sps:$4 sm:$0xff]  }
 0x59d   :  { %5525 = vmatprep.mubr.bf16.mxu0 %v9680_v9 }
 0x59e   :  { %5526 = vmatmul.mubr.bf16.vlgmr.msra.gmra.mxu0 %v9685_v19 }
 0x59f   :  { %5576 = vmatpush1.bf16.msra.mxu0 %v7477_v52  ;;  %5607 = vmatprep.mubr.bf16.mxu0 %v9680_v9  ;;  %v7587_v52 = vld [vmem:[%s10239_s13 + $0x12c] ss:$28 sps:$4 sm:$0xff]  }
 0x5a0   :  { %5577 = vmatprep.subr.bf16.mxu0 %v7485_v33  ;;  %v7582_v33 = vld [vmem:[%s10239_s13 + $0x4a0] ss:$28 sps:$4 sm:$0xff]  }
 0x5a3   :  { %5578 = vmatpush1.bf16.msra.mxu0 %v7483_v34  ;;  %v7585_v34 = vld [vmem:[%s10239_s13 + $0x128] ss:$28 sps:$4 sm:$0xff]  }
 0x5a4   :  { %5579 = vmatprep.subr.bf16.mxu0 %v7491_v35  ;;  %v7590_v35 = vld [vmem:[%s10239_s13 + $0x46c] ss:$28 sps:$4 sm:$0xff]  }
 0x5a7   :  { %5580 = vmatpush1.bf16.msra.mxu0 %v7489_v8  ;;  %v7593_v8 = vld [vmem:[%s10239_s13 + $0xf4] ss:$28 sps:$4 sm:$0xff]  }
 0x5a8   :  { %5581 = vmatprep.subr.bf16.mxu0 %v7497_v37  ;;  %v7588_v37 = vld [vmem:[%s10239_s13 + $0x468] ss:$28 sps:$4 sm:$0xff]  }
 0x5ab   :  { %5582 = vmatpush1.bf16.msra.mxu0 %v7495_v38  ;;  %v7591_v38 = vld [vmem:[%s10239_s13 + $0xf0] ss:$28 sps:$4 sm:$0xff]  }
 0x5ac   :  { %5583 = vmatprep.subr.bf16.mxu0 %v7503_v39  ;;  %v7596_v39 = vld [vmem:[%s10239_s13 + $0x434] ss:$28 sps:$4 sm:$0xff]  }
 0x5af   :  { %5584 = vmatpush1.bf16.msra.mxu0 %v7501_v43  ;;  %v7599_v43 = vld [vmem:[%s10239_s13 + $0xbc] ss:$28 sps:$4 sm:$0xff]  }
 0x5b0   :  { %5585 = vmatprep.subr.bf16.mxu0 %v7509_v44  ;;  %v7594_v44 = vld [vmem:[%s10239_s13 + $0x430] ss:$28 sps:$4 sm:$0xff]  }
 0x5b3   :  { %5586 = vmatpush1.bf16.msra.mxu0 %v7507_v45  ;;  %v7597_v45 = vld [vmem:[%s10239_s13 + $0xb8] ss:$28 sps:$4 sm:$0xff]  }
 0x5b4   :  { %5587 = vmatprep.subr.bf16.mxu0 %v7515_v46  ;;  %v7602_v46 = vld [vmem:[%s10239_s13 + $0x3fc] ss:$28 sps:$4 sm:$0xff]  }
 0x5b7   :  { %5588 = vmatpush1.bf16.msra.mxu0 %v7513_v47  ;;  %v7605_v47 = vld [vmem:[%s10239_s13 + $0x84] ss:$28 sps:$4 sm:$0xff]  }
 0x5b8   :  { %5589 = vmatprep.subr.bf16.mxu0 %v7521_v48  ;;  %v7600_v48 = vld [vmem:[%s10239_s13 + $0x3f8] ss:$28 sps:$4 sm:$0xff]  }
 0x5bb   :  { %5590 = vmatpush1.bf16.msra.mxu0 %v7519_v49  ;;  %v7603_v49 = vld [vmem:[%s10239_s13 + $0x80] ss:$28 sps:$4 sm:$0xff]  }
 0x5bc   :  { %5591 = vmatprep.subr.bf16.mxu0 %v7527_v50  ;;  %v7608_v50 = vld [vmem:[%s10239_s13 + $0x3c4] ss:$28 sps:$4 sm:$0xff]  }
 0x5bf   :  { %5592 = vmatpush2.bf16.msra.mxu0 %v7525_v51  ;;  %v7611_v51 = vld [vmem:[%s10239_s13 + $0x4c] ss:$28 sps:$4 sm:$0xff]  }
 0x5c0   :  { %5593 = vmatprep.subr.bf16.mxu0 %v7533_v53  ;;  %v7606_v53 = vld [vmem:[%s10239_s13 + $0x3c0] ss:$28 sps:$4 sm:$0xff]  }
 0x5c3   :  { %5594 = vmatpush2.bf16.msra.mxu0 %v7531_v40  ;;  %v7609_v40 = vld [vmem:[%s10239_s13 + $0x48] ss:$28 sps:$4 sm:$0xff]  }
 0x5c4   :  { %5595 = vmatprep.subr.bf16.mxu0 %v7539_v54  ;;  %v7614_v54 = vld [vmem:[%s10239_s13 + $0x38c] ss:$28 sps:$4 sm:$0xff]  }
 0x5c7   :  { %5596 = vmatpush2.bf16.msra.mxu0 %v7537_v55  ;;  %v7617_v55 = vld [vmem:[%s10239_s13 + $0x14] ss:$28 sps:$4 sm:$0xff]  }
 0x5c8   :  { %5597 = vmatprep.subr.bf16.mxu0 %v7545_v56  ;;  %v7612_v56 = vld [vmem:[%s10239_s13 + $0x388] ss:$28 sps:$4 sm:$0xff]  }
 0x5cb   :  { %5598 = vmatpush2.bf16.msra.mxu0 %v7543_v57  ;;  %v7615_v57 = vld [vmem:[%s10239_s13 + $0x10] ss:$28 sps:$4 sm:$0xff]  }
 0x5cc   :  { %5599 = vmatprep.subr.bf16.mxu0 %v7551_v58  ;;  %v7620_v58 = vld [vmem:[%s10239_s13 + $0x6d4] ss:$28 sps:$4 sm:$0xff]  }
 0x5cf   :  { %5600 = vmatpush2.bf16.msra.mxu0 %v7549_v59  ;;  %v7623_v59 = vld [vmem:[%s10239_s13 + $0x35c] ss:$28 sps:$4 sm:$0xff]  }
 0x5d0   :  { %5601 = vmatprep.subr.bf16.mxu0 %v7557_v60  ;;  %v7618_v60 = vld [vmem:[%s10239_s13 + $0x6d0] ss:$28 sps:$4 sm:$0xff]  }
 0x5d2   :  { %v3992_v3 = vpop.f32.mrf.mxu0  ;;  %v4033_v0 = vpop.f32.mrf.mxu1 }
 0x5d3   :  { %v3993_v4 = vadd.f32 %v3992_v3, %v3227_v61  ;;  %5602 = vmatpush2.bf16.msra.mxu0 %v7555_v16  ;;  %v7621_v61 = vld [vmem:[%s10239_s13 + $0x358] ss:$28 sps:$4 sm:$0xff]   ;;  %v7627_v3 = vld [vmem:[%s10239_s13 + $0x320] ss:$28 sps:$4 sm:$0xff]  }
 0x5d4   :  { %v3994_v6 = vpop.f32.mrf.mxu0  ;;  %v4035_v7 = vpop.f32.mrf.mxu1  ;;  %5603 = vmatprep.subr.bf16.mxu0 %v7563_v62  ;;  %v7626_v16 = vld [vmem:[%s10239_s13 + $0x69c] ss:$28 sps:$4 sm:$0xff]   ;;  %v7629_v62 = vld [vmem:[%s10239_s13 + $0x324] ss:$28 sps:$4 sm:$0xff]  }
 0x5d5   :  { %v4034_v11 = vadd.f32 %v4033_v0, %v3993_v4  ;;  %v3995_v12 = vadd.f32 %v3994_v6, %v3231_v63  ;;  %v7624_v63 = vld [vmem:[%s10239_s13 + $0x698] ss:$28 sps:$4 sm:$0xff]   ;;  %v7632_v0 = vld [vmem:[%s10239_s13 + $0x664] ss:$28 sps:$4 sm:$0xff]   ;;  %v7635_v4 = vld [vmem:[%s10239_s13 + $0x2ec] ss:$28 sps:$4 sm:$0xff]  }
 0x5d6   :  { %v3996_v1 = vpop.f32.mrf.mxu0  ;;  %v4037_v13 = vpop.f32.mrf.mxu1  ;;  %v7633_v6 = vld [vmem:[%s10239_s13 + $0x2e8] ss:$28 sps:$4 sm:$0xff]  }
 0x5d7   :  { %v4036_v2 = vadd.f32 %v4035_v7, %v3995_v12  ;;  %5604 = vmatpush2.bf16.msra.mxu0 %v7561_v5  ;;  %v4042_v15 = vmax.f32 %v4034_v11, 0.0  ;;  %v7630_v5 = vld [vmem:[%s10239_s13 + $0x660] ss:$28 sps:$4 sm:$0xff]   ;;  %v7638_v7 = vld [vmem:[%s10239_s13 + $0x62c] ss:$28 sps:$4 sm:$0xff]  }
 0x5d8   :  { %v3997_v17 = vpop.f32.mrf.mxu0  ;;  %v4038_v18 = vpop.f32.mrf.mxu1  ;;  %5605 = vmatprep.subr.bf16.mxu0 %v7569_v10  ;;  %v7641_v10 = vld [vmem:[%s10239_s13 + $0x2b4] ss:$28 sps:$4 sm:$0xff]   ;;  %v7636_v11 = vld [vmem:[%s10239_s13 + $0x628] ss:$28 sps:$4 sm:$0xff]   ;;  %v7647_v13 = vld [vmem:[%s10239_s13 + $0x27c] ss:$28 sps:$4 sm:$0xff]  }
 0x5d9   :  { %v4043_v22 = vmax.f32 %v4036_v2, 0.0  ;;  %v9792_v25 = vpack.c.bf16 %v4042_v15, %v4042_v15  ;;  %v7639_v12 = vld [vmem:[%s10239_s13 + $0x2b0] ss:$28 sps:$4 sm:$0xff]   ;;  %v7650_v15 = vld [vmem:[%s10239_s13 + $0x5bc] ss:$28 sps:$4 sm:$0xff]  }
 0x5da   :  { %v7644_v1 = vld [vmem:[%s10239_s13 + $0x5f4] ss:$28 sps:$4 sm:$0xff]   ;;  %v7653_v17 = vld [vmem:[%s10239_s13 + $0x244] ss:$28 sps:$4 sm:$0xff]  }
 0x5db   :  { %v9787_v23 = vpack.c.bf16 %v4043_v22, %v4043_v22  ;;  %5606 = vmatpush2.bf16.msra.mxu0 %v7567_v14  ;;  %v7642_v2 = vld [vmem:[%s10239_s13 + $0x5f0] ss:$28 sps:$4 sm:$0xff]   ;;  %v7645_v14 = vld [vmem:[%s10239_s13 + $0x278] ss:$28 sps:$4 sm:$0xff]   ;;  %v7656_v22 = vld [vmem:[%s10239_s13 + $0x584] ss:$28 sps:$4 sm:$0xff]  }
 0x5dc   :  { %5657 = vmatprep.subr.bf16.mxu0 %v7575_v21  ;;  %v7648_v18 = vld [vmem:[%s10239_s13 + $0x5b8] ss:$28 sps:$4 sm:$0xff]   ;;  %v7651_v21 = vld [vmem:[%s10239_s13 + $0x240] ss:$28 sps:$4 sm:$0xff]  }
 0x5dd   :  { %5566 = vmatprep.mubr.bf16.mxu1 %v9787_v23 }
 0x5de   :  { %5567 = vmatmul.mubr.bf16.vlgmr.msra.gmra.mxu1 %v9792_v25  ;;  %5608 = vmatmul.mubr.bf16.vlgmr.msra.gmra.mxu0 %v9685_v19 }
 0x5df   :  { %5617 = vmatpush1.bf16.msra.mxu1 %v7570_v24  ;;  %5648 = vmatprep.mubr.bf16.mxu1 %v9787_v23  ;;  %v7659_v24 = vld [vmem:[%s10239_s13 + $0x20c] ss:$28 sps:$4 sm:$0xff]  }
 0x5e0   :  { %5658 = vmatpush1.bf16.msra.mxu0 %v7573_v26  ;;  %5689 = vmatprep.mubr.bf16.mxu0 %v9680_v9  ;;  %v7654_v26 = vld [vmem:[%s10239_s13 + $0x580] ss:$28 sps:$4 sm:$0xff]  }
 0x5e1   :  { %5618 = vmatprep.subr.bf16.mxu1 %v7578_v27  ;;  %5659 = vmatprep.subr.bf16.mxu0 %v7581_v28  ;;  %v7657_v27 = vld [vmem:[%s10239_s13 + $0x208] ss:$28 sps:$4 sm:$0xff]  }
 0x5e2   :  { %v7662_v28 = vld [vmem:[%s10239_s13 + $0x54c] ss:$28 sps:$4 sm:$0xff]  }
 0x5e3   :  { %5619 = vmatpush1.bf16.msra.mxu1 %v7576_v29  ;;  %v7665_v29 = vld [vmem:[%s10239_s13 + $0x1d4] ss:$28 sps:$4 sm:$0xff]  }
 0x5e4   :  { %5660 = vmatpush1.bf16.msra.mxu0 %v7579_v30  ;;  %5620 = vmatprep.subr.bf16.mxu1 %v7584_v31  ;;  %v7660_v30 = vld [vmem:[%s10239_s13 + $0x548] ss:$28 sps:$4 sm:$0xff]   ;;  %v7663_v31 = vld [vmem:[%s10239_s13 + $0x1d0] ss:$28 sps:$4 sm:$0xff]  }
 0x5e5   :  { %5661 = vmatprep.subr.bf16.mxu0 %v7587_v52  ;;  %v7668_v52 = vld [vmem:[%s10239_s13 + $0x51c] ss:$28 sps:$4 sm:$0xff]  }
 0x5e7   :  { %5621 = vmatpush1.bf16.msra.mxu1 %v7582_v33  ;;  %v7669_v33 = vld [vmem:[%s10239_s13 + $0x360] ss:$28 sps:$4 sm:$0xff]  }
 0x5e8   :  { %5662 = vmatpush1.bf16.msra.mxu0 %v7585_v34  ;;  %5622 = vmatprep.subr.bf16.mxu1 %v7590_v35  ;;  %v7666_v34 = vld [vmem:[%s10239_s13 + $0x518] ss:$28 sps:$4 sm:$0xff]   ;;  %v7670_v35 = vld [vmem:[%s10239_s13 + $0x1a0] ss:$28 sps:$4 sm:$0xff]  }
 0x5e9   :  { %5663 = vmatprep.subr.bf16.mxu0 %v7593_v8  ;;  %v7673_v8 = vld [vmem:[%s10239_s13 + $0x4e4] ss:$28 sps:$4 sm:$0xff]  }
 0x5eb   :  { %5623 = vmatpush1.bf16.msra.mxu1 %v7588_v37  ;;  %v7674_v37 = vld [vmem:[%s10239_s13 + $0x328] ss:$28 sps:$4 sm:$0xff]  }
 0x5ec   :  { %5664 = vmatpush1.bf16.msra.mxu0 %v7591_v38  ;;  %5624 = vmatprep.subr.bf16.mxu1 %v7596_v39  ;;  %v7671_v38 = vld [vmem:[%s10239_s13 + $0x4e0] ss:$28 sps:$4 sm:$0xff]   ;;  %v7675_v39 = vld [vmem:[%s10239_s13 + $0x168] ss:$28 sps:$4 sm:$0xff]  }
 0x5ed   :  { %5665 = vmatprep.subr.bf16.mxu0 %v7599_v43  ;;  %v7678_v43 = vld [vmem:[%s10239_s13 + $0x4ac] ss:$28 sps:$4 sm:$0xff]  }
 0x5ef   :  { %5625 = vmatpush1.bf16.msra.mxu1 %v7594_v44  ;;  %v7679_v44 = vld [vmem:[%s10239_s13 + $0x2f0] ss:$28 sps:$4 sm:$0xff]  }
 0x5f0   :  { %5666 = vmatpush1.bf16.msra.mxu0 %v7597_v45  ;;  %5626 = vmatprep.subr.bf16.mxu1 %v7602_v46  ;;  %v7676_v45 = vld [vmem:[%s10239_s13 + $0x4a8] ss:$28 sps:$4 sm:$0xff]   ;;  %v7680_v46 = vld [vmem:[%s10239_s13 + $0x130] ss:$28 sps:$4 sm:$0xff]  }
 0x5f1   :  { %5667 = vmatprep.subr.bf16.mxu0 %v7605_v47  ;;  %v7684_v47 = vld [vmem:[%s10239_s13 + $0x2b8] ss:$28 sps:$4 sm:$0xff]  }
 0x5f3   :  { %5627 = vmatpush1.bf16.msra.mxu1 %v7600_v48  ;;  %v7681_v48 = vld [vmem:[%s10239_s13 + $0x470] ss:$28 sps:$4 sm:$0xff]  }
 0x5f4   :  { %5668 = vmatpush1.bf16.msra.mxu0 %v7603_v49  ;;  %5628 = vmatprep.subr.bf16.mxu1 %v7608_v50  ;;  %v7685_v49 = vld [vmem:[%s10239_s13 + $0xf8] ss:$28 sps:$4 sm:$0xff]  }
 0x5f5   :  { %5669 = vmatprep.subr.bf16.mxu0 %v7611_v51  ;;  %v7688_v50 = vld [vmem:[%s10239_s13 + $0x43c] ss:$28 sps:$4 sm:$0xff]  }
 0x5f6   :  { %v7689_v51 = vld [vmem:[%s10239_s13 + $0x280] ss:$28 sps:$4 sm:$0xff]  }
 0x5f7   :  { %5629 = vmatpush1.bf16.msra.mxu1 %v7606_v53  ;;  %v7686_v53 = vld [vmem:[%s10239_s13 + $0x438] ss:$28 sps:$4 sm:$0xff]  }
 0x5f8   :  { %5670 = vmatpush1.bf16.msra.mxu0 %v7609_v40  ;;  %5630 = vmatprep.subr.bf16.mxu1 %v7614_v54  ;;  %v7690_v40 = vld [vmem:[%s10239_s13 + $0xc0] ss:$28 sps:$4 sm:$0xff]  }
 0x5f9   :  { %5671 = vmatprep.subr.bf16.mxu0 %v7617_v55  ;;  %v7693_v54 = vld [vmem:[%s10239_s13 + $0x404] ss:$28 sps:$4 sm:$0xff]  }
 0x5fa   :  { %v7694_v55 = vld [vmem:[%s10239_s13 + $0x248] ss:$28 sps:$4 sm:$0xff]  }
 0x5fb   :  { %5631 = vmatpush1.bf16.msra.mxu1 %v7612_v56  ;;  %v7691_v56 = vld [vmem:[%s10239_s13 + $0x400] ss:$28 sps:$4 sm:$0xff]  }
 0x5fc   :  { %5672 = vmatpush1.bf16.msra.mxu0 %v7615_v57  ;;  %5632 = vmatprep.subr.bf16.mxu1 %v7620_v58  ;;  %v7695_v57 = vld [vmem:[%s10239_s13 + $0x88] ss:$28 sps:$4 sm:$0xff]  }
 0x5fd   :  { %5673 = vmatprep.subr.bf16.mxu0 %v7623_v59  ;;  %v7698_v58 = vld [vmem:[%s10239_s13 + $0x3cc] ss:$28 sps:$4 sm:$0xff]  }
 0x5fe   :  { %v7699_v59 = vld [vmem:[%s10239_s13 + $0x210] ss:$28 sps:$4 sm:$0xff]  }
 0x5ff   :  { %5633 = vmatpush2.bf16.msra.mxu1 %v7618_v60  ;;  %v7696_v60 = vld [vmem:[%s10239_s13 + $0x3c8] ss:$28 sps:$4 sm:$0xff]  }
 0x600   :  { %5674 = vmatpush2.bf16.msra.mxu0 %v7621_v61  ;;  %5634 = vmatprep.subr.bf16.mxu1 %v7626_v16  ;;  %v7700_v61 = vld [vmem:[%s10239_s13 + $0x50] ss:$28 sps:$4 sm:$0xff]  }
 0x601   :  { %5675 = vmatprep.subr.bf16.mxu0 %v7629_v62  ;;  %v7703_v16 = vld [vmem:[%s10239_s13 + $0x394] ss:$28 sps:$4 sm:$0xff]  }
 0x602   :  { %v7704_v62 = vld [vmem:[%s10239_s13 + $0x1d8] ss:$28 sps:$4 sm:$0xff]  }
 0x603   :  { %5635 = vmatpush2.bf16.msra.mxu1 %v7624_v63  ;;  %v7701_v63 = vld [vmem:[%s10239_s13 + $0x390] ss:$28 sps:$4 sm:$0xff]  }
 0x604   :  { %5676 = vmatpush2.bf16.msra.mxu0 %v7627_v3  ;;  %5636 = vmatprep.subr.bf16.mxu1 %v7632_v0  ;;  %v7705_v3 = vld [vmem:[%s10239_s13 + $0x18] ss:$28 sps:$4 sm:$0xff]  }
 0x605   :  { %5677 = vmatprep.subr.bf16.mxu0 %v7635_v4  ;;  %v7708_v0 = vld [vmem:[%s10239_s13 + $0x6dc] ss:$28 sps:$4 sm:$0xff]  }
 0x606   :  { %v7706_v4 = vld [vmem:[%s10239_s13 + $0x6d8] ss:$28 sps:$4 sm:$0xff]  }
 0x607   :  { %5637 = vmatpush2.bf16.msra.mxu1 %v7630_v5  ;;  %v7711_v5 = vld [vmem:[%s10239_s13 + $0x6a4] ss:$28 sps:$4 sm:$0xff]  }
 0x608   :  { %5678 = vmatpush2.bf16.msra.mxu0 %v7633_v6  ;;  %5638 = vmatprep.subr.bf16.mxu1 %v7638_v7  ;;  %v7709_v6 = vld [vmem:[%s10239_s13 + $0x6a0] ss:$28 sps:$4 sm:$0xff]   ;;  %v7714_v7 = vld [vmem:[%s10239_s13 + $0x66c] ss:$28 sps:$4 sm:$0xff]  }
 0x609   :  { %5679 = vmatprep.subr.bf16.mxu0 %v7641_v10  ;;  %v7712_v10 = vld [vmem:[%s10239_s13 + $0x668] ss:$28 sps:$4 sm:$0xff]  }
 0x60b   :  { %5639 = vmatpush2.bf16.msra.mxu1 %v7636_v11  ;;  %v7717_v11 = vld [vmem:[%s10239_s13 + $0x634] ss:$28 sps:$4 sm:$0xff]  }
 0x60c   :  { %5680 = vmatpush2.bf16.msra.mxu0 %v7639_v12  ;;  %5640 = vmatprep.subr.bf16.mxu1 %v7644_v1  ;;  %v7720_v12 = vld [vmem:[%s10239_s13 + $0x5fc] ss:$28 sps:$4 sm:$0xff]  }
 0x60d   :  { %5681 = vmatprep.subr.bf16.mxu0 %v7647_v13  ;;  %v7718_v1 = vld [vmem:[%s10239_s13 + $0x5f8] ss:$28 sps:$4 sm:$0xff]   ;;  %v7723_v13 = vld [vmem:[%s10239_s13 + $0x5c4] ss:$28 sps:$4 sm:$0xff]  }
 0x60f   :  { %5641 = vmatpush2.bf16.msra.mxu1 %v7642_v2  ;;  %v7721_v2 = vld [vmem:[%s10239_s13 + $0x5c0] ss:$28 sps:$4 sm:$0xff]  }
 0x610   :  { %5682 = vmatpush2.bf16.msra.mxu0 %v7645_v14  ;;  %5642 = vmatprep.subr.bf16.mxu1 %v7650_v15  ;;  %v7726_v14 = vld [vmem:[%s10239_s13 + $0x58c] ss:$28 sps:$4 sm:$0xff]  }
 0x611   :  { %5683 = vmatprep.subr.bf16.mxu0 %v7653_v17  ;;  %v7724_v15 = vld [vmem:[%s10239_s13 + $0x588] ss:$28 sps:$4 sm:$0xff]   ;;  %v7729_v17 = vld [vmem:[%s10239_s13 + $0x554] ss:$28 sps:$4 sm:$0xff]  }
 0x613   :  { %5643 = vmatpush2.bf16.msra.mxu1 %v7648_v18  ;;  %v7727_v18 = vld [vmem:[%s10239_s13 + $0x550] ss:$28 sps:$4 sm:$0xff]  }
 0x614   :  { %5684 = vmatpush2.bf16.msra.mxu0 %v7651_v21  ;;  %5644 = vmatprep.subr.bf16.mxu1 %v7656_v22  ;;  %v7730_v21 = vld [vmem:[%s10239_s13 + $0x6e0] ss:$28 sps:$4 sm:$0xff]  }
 0x615   :  { %5685 = vmatprep.subr.bf16.mxu0 %v7659_v24  ;;  %v7731_v22 = vld [vmem:[%s10239_s13 + $0x520] ss:$28 sps:$4 sm:$0xff]   ;;  %v7732_v24 = vld [vmem:[%s10239_s13 + $0x6a8] ss:$28 sps:$4 sm:$0xff]  }
 0x617   :  { %5645 = vmatpush2.bf16.msra.mxu1 %v7654_v26 }
 0x618   :  { %5686 = vmatpush2.bf16.msra.mxu0 %v7657_v27  ;;  %5646 = vmatprep.subr.bf16.mxu1 %v7662_v28  ;;  %v7733_v27 = vld [vmem:[%s10239_s13 + $0x4e8] ss:$28 sps:$4 sm:$0xff]  }
 0x619   :  { %5687 = vmatprep.subr.bf16.mxu0 %v7665_v29  ;;  %v7734_v29 = vld [vmem:[%s10239_s13 + $0x670] ss:$28 sps:$4 sm:$0xff]  }
 0x61b   :  { %5647 = vmatpush2.bf16.msra.mxu1 %v7660_v30 }
 0x61c   :  { %5688 = vmatpush2.bf16.msra.mxu0 %v7663_v31  ;;  %5698 = vmatprep.subr.bf16.mxu1 %v7668_v52  ;;  %v7735_v31 = vld [vmem:[%s10239_s13 + $0x4b0] ss:$28 sps:$4 sm:$0xff]  }
 0x61d   :  { %6666 = vmatprep.subr.bf16.mxu0 %v7669_v33  ;;  %v7737_v33 = vld [vmem:[%s10239_s13 + $0x478] ss:$28 sps:$4 sm:$0xff]  }
 0x61e   :  { %5649 = vmatmul.mubr.bf16.vlgmr.msra.gmra.mxu1 %v9792_v25 }
 0x61f   :  { %5690 = vmatmul.mubr.bf16.vlgmr.msra.gmra.mxu0 %v9685_v19  ;;  %5699 = vmatpush1.bf16.msra.mxu1 %v7666_v34  ;;  %v7738_v34 = vld [vmem:[%s10239_s13 + $0x600] ss:$28 sps:$4 sm:$0xff]  }
 0x620   :  { %5730 = vmatprep.mubr.bf16.mxu1 %v9787_v23  ;;  %6667 = vmatpush3.bf16.msra.mxu0 %v7670_v35  ;;  %v7739_v35 = vld [vmem:[%s10239_s13 + $0x440] ss:$28 sps:$4 sm:$0xff]  }
 0x621   :  { %5771 = vmatprep.mubr.bf16.mxu0 %v9680_v9  ;;  %5700 = vmatprep.subr.bf16.mxu1 %v7673_v8  ;;  %v7683_v9 = vld [vmem:[%s10239_s13 + $0x474] ss:$28 sps:$4 sm:$0xff]   ;;  %v7740_v8 = vld [vmem:[%s10239_s13 + $0x5c8] ss:$28 sps:$4 sm:$0xff]  }
 0x622   :  { %6668 = vmatprep.subr.bf16.mxu0 %v7674_v37  ;;  %v7741_v37 = vld [vmem:[%s10239_s13 + $0x408] ss:$28 sps:$4 sm:$0xff]  }
 0x623   :  { %5701 = vmatpush1.bf16.msra.mxu1 %v7671_v38  ;;  %v7742_v38 = vld [vmem:[%s10239_s13 + $0x590] ss:$28 sps:$4 sm:$0xff]  }
 0x624   :  { %6669 = vmatpush3.bf16.msra.mxu0 %v7675_v39  ;;  %5702 = vmatprep.subr.bf16.mxu1 %v7678_v43  ;;  %v7743_v39 = vld [vmem:[%s10239_s13 + $0x3d0] ss:$28 sps:$4 sm:$0xff]   ;;  %v7744_v43 = vld [vmem:[%s10239_s13 + $0x558] ss:$28 sps:$4 sm:$0xff]  }
 0x625   :  { %6670 = vmatprep.subr.bf16.mxu0 %v7679_v44  ;;  %v7745_v44 = vld [vmem:[%s10239_s13 + $0x398] ss:$28 sps:$4 sm:$0xff]  }
 0x627   :  { %5703 = vmatpush1.bf16.msra.mxu1 %v7676_v45  ;;  %v10185_v45 = vld [vmem:[%s10240_s14] sm:$0x7f] }
 0x628   :  { %6671 = vmatpush3.bf16.msra.mxu0 %v7680_v46  ;;  %5704 = vmatprep.subr.bf16.mxu1 %v7683_v9  ;;  %v4309_v46 = vrot.slane %v10185_v45, %v8737_v41  ;;  %v4313_v9 = vrot.slane %v10185_v45, %v8740_v42 }
 0x629   :  { %6672 = vmatprep.subr.bf16.mxu0 %v7684_v47 }
 0x62b   :  { %5705 = vmatpush1.bf16.msra.mxu1 %v7681_v48 }
 0x62c   :  { %6673 = vmatpush3.bf16.msra.mxu0 %v7685_v49  ;;  %5706 = vmatprep.subr.bf16.mxu1 %v7688_v50  ;;  %v5819_v49 = vld [vmem:[%s10228_s2] sm:$0xff] }
 0x62d   :  { %6674 = vmatprep.subr.bf16.mxu0 %v7689_v51 }
 0x62f   :  { %5707 = vmatpush1.bf16.msra.mxu1 %v7686_v53 }
 0x630   :  { %6675 = vmatpush3.bf16.msra.mxu0 %v7690_v40  ;;  %5708 = vmatprep.subr.bf16.mxu1 %v7693_v54  ;;  %v5820_v40 = vld [vmem:[%s10228_s2 + $0x8] sm:$0xff] }
 0x631   :  { %6676 = vmatprep.subr.bf16.mxu0 %v7694_v55 }
 0x633   :  { %5709 = vmatpush1.bf16.msra.mxu1 %v7691_v56 }
 0x634   :  { %6677 = vmatpush3.bf16.msra.mxu0 %v7695_v57  ;;  %5710 = vmatprep.subr.bf16.mxu1 %v7698_v58 }
 0x635   :  { %6678 = vmatprep.subr.bf16.mxu0 %v7699_v59 }
 0x637   :  { %5711 = vmatpush1.bf16.msra.mxu1 %v7696_v60 }
 0x638   :  { %6679 = vmatpush3.bf16.msra.mxu0 %v7700_v61  ;;  %5712 = vmatprep.subr.bf16.mxu1 %v7703_v16 }
 0x639   :  { %6680 = vmatprep.subr.bf16.mxu0 %v7704_v62 }
 0x63b   :  { %5713 = vmatpush1.bf16.msra.mxu1 %v7701_v63 }
 0x63c   :  { %6681 = vmatpush3.bf16.msra.mxu0 %v7705_v3  ;;  %5714 = vmatprep.subr.bf16.mxu1 %v7708_v0 }
 0x63f   :  { %5715 = vmatpush2.bf16.msra.mxu1 %v7706_v4  ;;  %5772 = vmatmul.mubr.bf16.vlgmr.msra.gmra.mxu0 %v9685_v19  ;;  %v7715_v19 = vld [vmem:[%s10239_s13 + $0x630] ss:$28 sps:$4 sm:$0xff]  }
 0x640   :  { %5716 = vmatprep.subr.bf16.mxu1 %v7711_v5  ;;  %v4317_v5 = vrot.slane %v10185_v45, %v8832_v32 }
 0x643   :  { %5717 = vmatpush2.bf16.msra.mxu1 %v7709_v6  ;;  %v4321_v6 = vrot.slane %v10185_v45, %v8841_v20 }
 0x644   :  { %5718 = vmatprep.subr.bf16.mxu1 %v7714_v7 }
 0x647   :  { %5719 = vmatpush2.bf16.msra.mxu1 %v7712_v10 }
 0x648   :  { %5720 = vmatprep.subr.bf16.mxu1 %v7717_v11  ;;  %v5821_v11 = vld [vmem:[%s10228_s2 + $0x10] sm:$0xff] }
 0x64b   :  { %5721 = vmatpush2.bf16.msra.mxu1 %v7715_v19 }
 0x64c   :  { %5722 = vmatprep.subr.bf16.mxu1 %v7720_v12 }
 0x64f   :  { %5723 = vmatpush2.bf16.msra.mxu1 %v7718_v1 }
 0x650   :  { %5724 = vmatprep.subr.bf16.mxu1 %v7723_v13 }
 0x653   :  { %5725 = vmatpush2.bf16.msra.mxu1 %v7721_v2  ;;  %v5822_v2 = vld [vmem:[%s10228_s2 + $0x18] sm:$0xff] }
 0x654   :  { %5726 = vmatprep.subr.bf16.mxu1 %v7726_v14 }
 0x657   :  { %5727 = vmatpush2.bf16.msra.mxu1 %v7724_v15 }
 0x658   :  { %5728 = vmatprep.subr.bf16.mxu1 %v7729_v17 }
 0x65b   :  { %5729 = vmatpush2.bf16.msra.mxu1 %v7727_v18 }
 0x65c   :  { %6688 = vmatprep.subr.bf16.mxu1 %v7730_v21 }
 0x65e   :  { %5731 = vmatmul.mubr.bf16.vlgmr.msra.gmra.mxu1 %v9792_v25  ;;  %v5527_v26 = vpop.f32.mrf.mxu0 }
 0x65f   :  { %6689 = vmatpush3.bf16.msra.mxu1 %v7731_v22  ;;  %5811 = vmatprep.mubr.bf16.mxu1 %v9787_v23  ;;  %v7736_v23 = vld [vmem:[%s10239_s13 + $0x638] ss:$28 sps:$4 sm:$0xff]   ;;  %v5528_v47 = vadd.f32 %v5527_v26, %v4309_v46  ;;  %v5823_v46 = vld [vmem:[%s10228_s2 + $0x20] sm:$0xff] }
 0x660   :  { %v5529_v28 = vpop.f32.mrf.mxu0  ;;  %6690 = vmatprep.subr.bf16.mxu1 %v7732_v24 }
 0x661   :  { %v5530_v51 = vadd.f32 %v5529_v28, %v4313_v9 }
 0x662   :  { %v5531_v30 = vpop.f32.mrf.mxu0 }
 0x663   :  { %6691 = vmatpush3.bf16.msra.mxu1 %v7733_v27 }
 0x664   :  { %v5532_v52 = vpop.f32.mrf.mxu0  ;;  %6692 = vmatprep.subr.bf16.mxu1 %v7734_v29 }
 0x667   :  { %6693 = vmatpush3.bf16.msra.mxu1 %v7735_v31 }
 0x668   :  { %6694 = vmatprep.subr.bf16.mxu1 %v7736_v23 }
 0x66b   :  { %6695 = vmatpush3.bf16.msra.mxu1 %v7737_v33 }
 0x66c   :  { %6696 = vmatprep.subr.bf16.mxu1 %v7738_v34 }
 0x66f   :  { %6697 = vmatpush3.bf16.msra.mxu1 %v7739_v35 }
 0x670   :  { %6698 = vmatprep.subr.bf16.mxu1 %v7740_v8  ;;  %v4324_v8 = vsub.s32 4, %v8729_v36 }
 0x673   :  { %6699 = vmatpush3.bf16.msra.mxu1 %v7741_v37  ;;  %v4328_v37 = vsub.s32 5, %v8729_v36 }
 0x674   :  { %6700 = vmatprep.subr.bf16.mxu1 %v7742_v38  ;;  %v4325_v38 = vrot.slane %v10185_v45, %v4324_v8 }
 0x677   :  { %6701 = vmatpush3.bf16.msra.mxu1 %v7743_v39  ;;  %v4329_v39 = vrot.slane %v10185_v45, %v4328_v37 }
 0x678   :  { %6702 = vmatprep.subr.bf16.mxu1 %v7744_v43 }
 0x67b   :  { %6703 = vmatpush3.bf16.msra.mxu1 %v7745_v44 }
 0x67e   :  { %5812 = vmatmul.mubr.bf16.vlgmr.msra.gmra.mxu1 %v9792_v25 }
 0x69e   :  { %v5568_v48 = vpop.f32.mrf.mxu1  ;;  %v5609_v50 = vpop.f32.mrf.mxu0 }
 0x69f   :  { %v5569_v25 = vadd.f32 %v5568_v48, %v5528_v47  ;;  %v5610_v7 = vadd.f32 %v5609_v50, %v4317_v5 }
 0x6a0   :  { %v5570_v53 = vpop.f32.mrf.mxu1  ;;  %v5611_v54 = vpop.f32.mrf.mxu0 }
 0x6a1   :  { %v5826_v55 = vadd.f32 %v5819_v49, %v5569_v25  ;;  %v5571_v41 = vadd.f32 %v5570_v53, %v5530_v51  ;;  %v5612_v19 = vadd.f32 %v5611_v54, %v4321_v6  ;;  %v5824_v49 = vld [vmem:[%s10228_s2 + $0x28] sm:$0xff] }
 0x6a2   :  { %v5572_v56 = vpop.f32.mrf.mxu1  ;;  %v5613_v57 = vpop.f32.mrf.mxu0 }
 0x6a3   :  { %v6615_v42 = vmul.f32 -1.442695, %v5826_v55  ;;  %v5827_v58 = vadd.f32 %v5820_v40, %v5571_v41 }
 0x6a4   :  { %v5573_v59 = vpop.f32.mrf.mxu1  ;;  %v5614_v60 = vpop.f32.mrf.mxu0 }
 0x6a5   :  { %7750 = vpow2.f32 %v6615_v42  ;;  %v6616_v61 = vmul.f32 -1.442695, %v5827_v58  ;;  %v4332_v58 = vsub.s32 6, %v8729_v36 }
 0x6a7   :  { %7752 = vpow2.f32 %v6616_v61  ;;  %v4333_v59 = vrot.slane %v10185_v45, %v4332_v58 }
 0x6b2   :  { %v7751_v16 = vpop.eup %7750 }
 0x6b3   :  { %v5854_v62 = vadd.f32 1.0, %v7751_v16 }
 0x6b4   :  { %v7753_v63 = vpop.eup %7752 }
 0x6b5   :  { %7754 = vrcp.f32 %v5854_v62  ;;  %v5855_v3 = vadd.f32 1.0, %v7753_v63 }
 0x6b7   :  { %7756 = vrcp.f32 %v5855_v3 }
 0x6c2   :  { %v7755_v0 = vpop.eup %7754 }
 0x6c3   :  { %5875 = vst [vmem:[#allocation2] sm:$0xff] %v7755_v0  ;;  %v5825_v0 = vld [vmem:[%s10228_s2 + $0x30] sm:$0xff] }
 0x6c4   :  { %v7757_v4 = vpop.eup %7756 }
 0x6c5   :  { %5876 = vst [vmem:[#allocation2 + $0x8] sm:$0xff] %v7757_v4 }
 0x6de   :  { %v5650_v10 = vpop.f32.mrf.mxu1 }
 0x6df   :  { %v5651_v12 = vadd.f32 %v5650_v10, %v5610_v7  ;;  %v5691_v1 = vpop.f32.mrf.mxu0 }
 0x6e0   :  { %v5652_v13 = vpop.f32.mrf.mxu1  ;;  %v5692_v43 = vadd.f32 %v5691_v1, %v4325_v38 }
 0x6e1   :  { %v5828_v14 = vadd.f32 %v5821_v11, %v5651_v12  ;;  %v5653_v15 = vadd.f32 %v5652_v13, %v5612_v19  ;;  %v5693_v32 = vpop.f32.mrf.mxu0 }
 0x6e2   :  { %v5654_v17 = vpop.f32.mrf.mxu1  ;;  %v5694_v9 = vadd.f32 %v5693_v32, %v4329_v39 }
 0x6e3   :  { %v6617_v18 = vmul.f32 -1.442695, %v5828_v14  ;;  %v5829_v20 = vadd.f32 %v5822_v2, %v5653_v15  ;;  %v5695_v21 = vpop.f32.mrf.mxu0 }
 0x6e4   :  { %v5655_v22 = vpop.f32.mrf.mxu1 }
 0x6e5   :  { %7758 = vpow2.f32 %v6617_v18  ;;  %v6618_v24 = vmul.f32 -1.442695, %v5829_v20  ;;  %v5696_v26 = vpop.f32.mrf.mxu0 }
 0x6e7   :  { %7760 = vpow2.f32 %v6618_v24 }
 0x6f2   :  { %v7759_v27 = vpop.eup %7758 }
 0x6f3   :  { %v5856_v28 = vadd.f32 1.0, %v7759_v27 }
 0x6f4   :  { %v7761_v29 = vpop.eup %7760 }
 0x6f5   :  { %7762 = vrcp.f32 %v5856_v28  ;;  %v5857_v30 = vadd.f32 1.0, %v7761_v29 }
 0x6f7   :  { %7764 = vrcp.f32 %v5857_v30 }
 0x6ff   :  { %v6682_v31 = vpop.f32.mrf.mxu0 }
 0x701   :  { %v6683_v52 = vpop.f32.mrf.mxu0 }
 0x702   :  { %v7763_v23 = vpop.eup %7762  ;;  %v6684_v60 = vadd.f32 %v6683_v52, %v6682_v31 }
 0x703   :  { %5877 = vst [vmem:[#allocation2 + $0x10] sm:$0xff] %v7763_v23  ;;  %v6685_v33 = vpop.f32.mrf.mxu0 }
 0x704   :  { %v7765_v34 = vpop.eup %7764  ;;  %v5774_v62 = vadd.f32 %v6684_v60, %v4333_v59 }
 0x705   :  { %5878 = vst [vmem:[#allocation2 + $0x18] sm:$0xff] %v7765_v34  ;;  %v6686_v35 = vpop.f32.mrf.mxu0 }
 0x71e   :  { %v5732_v44 = vpop.f32.mrf.mxu1 }
 0x71f   :  { %v5733_v47 = vadd.f32 %v5732_v44, %v5692_v43 }
 0x720   :  { %v5734_v48 = vpop.f32.mrf.mxu1 }
 0x721   :  { %v5830_v50 = vadd.f32 %v5823_v46, %v5733_v47  ;;  %v5735_v51 = vadd.f32 %v5734_v48, %v5694_v9 }
 0x722   :  { %v5736_v25 = vpop.f32.mrf.mxu1 }
 0x723   :  { %v6619_v53 = vmul.f32 -1.442695, %v5830_v50  ;;  %v5831_v40 = vadd.f32 %v5824_v49, %v5735_v51 }
 0x724   :  { %v5737_v54 = vpop.f32.mrf.mxu1 }
 0x725   :  { %7766 = vpow2.f32 %v6619_v53  ;;  %v6620_v55 = vmul.f32 -1.442695, %v5831_v40 }
 0x727   :  { %7768 = vpow2.f32 %v6620_v55 }
 0x732   :  { %v7767_v41 = vpop.eup %7766 }
 0x733   :  { %v5858_v56 = vadd.f32 1.0, %v7767_v41 }
 0x734   :  { %v7769_v57 = vpop.eup %7768 }
 0x735   :  { %7770 = vrcp.f32 %v5858_v56  ;;  %v5859_v42 = vadd.f32 1.0, %v7769_v57 }
 0x737   :  { %7772 = vrcp.f32 %v5859_v42 }
 0x73e   :  { %v6704_v61 = vpop.f32.mrf.mxu1 }
 0x740   :  { %v6705_v16 = vpop.f32.mrf.mxu1 }
 0x741   :  { %v6706_v63 = vadd.f32 %v6705_v16, %v6704_v61 }
 0x742   :  { %v7771_v3 = vpop.eup %7770  ;;  %v6707_v4 = vpop.f32.mrf.mxu1 }
 0x743   :  { %5879 = vst [vmem:[#allocation2 + $0x20] sm:$0xff] %v7771_v3  ;;  %v5814_v5 = vadd.f32 %v6706_v63, %v5774_v62 }
 0x744   :  { %v7773_v6 = vpop.eup %7772  ;;  %v6708_v7 = vpop.f32.mrf.mxu1 }
 0x745   :  { %5880 = vst [vmem:[#allocation2 + $0x28] sm:$0xff] %v7773_v6  ;;  %v5832_v10 = vadd.f32 %v5825_v0, %v5814_v5 }
 0x747   :  { %v6621_v36 = vmul.f32 -1.442695, %v5832_v10 }
 0x749   :  { %7774 = vpow2.f32 %v6621_v36 }
 0x756   :  { %v7775_v45 = vpop.eup %7774 }
 0x757   :  { %v5860_v11 = vadd.f32 1.0, %v7775_v45 }
 0x759   :  { %7776 = vrcp.f32 %v5860_v11 }
 0x766   :  { %v7777_v19 = vpop.eup %7776 }
 0x767   :  { %5881 = vst.msk [vmem:[#allocation2 + $0x30] sm:$0xff] %vm1266_vm0, %v7777_v19 }
 0x768   :  { %7789 = shalt.err (!%p7786_p4)
}
 0x769   :  { %5893 = dma.vmem_to_hbm [thread:$0]  %s5891_s3, 896, %s10242_s16, [#allocation3]  }
 0x76a   :  { %7798 = dma.done.wait [#allocation3], 896  }
 0x76b   :  { %7799 = vsyncadd [#allocation3], 4294966400 }
 0x76c   :  { %5899 = vsyncpa [#allocation3], 1 }

</bundles_post_ra>
